<compile_context>
chip_gen: v6e
topology: v6e:2x2x1
jax: 0.10.0
libtpu: 0.0.40
codegen_flags: <defaults>
</compile_context>

<pallas_src>
import numpy as np
import jax
import jax.numpy as jnp
from jax.experimental import pallas as pl
from jax.experimental.pallas import tpu as pltpu

H = 8
W = 8
HW = H * W            # 64 spatial positions
NEG_SLOPE = 0.01      # PyTorch LeakyReLU default


def _round_up(x, m):
    return ((x + m - 1) // m) * m


def _cdiv(a, b):
    return -(-a // b)


def _device_kind():
    try:
        return jax.devices()[0].device_kind.lower()
    except Exception:
        return ""


# ----------------------------------------------------------------------------
# Kernel: lane-dense GEMM chain, bf16 operands, f32 accumulation.
# ----------------------------------------------------------------------------
def _act(y_f32, b):
    """bias + LeakyReLU (max form) in b's dtype, then bf16 for the next GEMM."""
    y = y_f32.astype(b.dtype) + b
    y = jnp.maximum(y, NEG_SLOPE * y)          # == LeakyReLU for 0 < slope < 1
    return y.astype(jnp.bfloat16)


def make_kernel(fold01):
    if fold01:
        # Linear folded into conv1: 4 GEMMs total.
        def kernel(feat_ref, w1_ref, b1_ref, w2_ref, b2_ref, w3_ref, b3_ref,
                   wri_ref, bri_ref, out_ref):
            x = feat_ref[...]                                             # (TB, 256) bf16
            a1 = _act(jnp.dot(x, w1_ref[...],
                              preferred_element_type=jnp.float32), b1_ref[...])   # (TB, 2048)
            a2 = _act(jnp.dot(a1, w2_ref[...],
                              preferred_element_type=jnp.float32), b2_ref[...])   # (TB, 512)
            a3 = _act(jnp.dot(a2, w3_ref[...],
                              preferred_element_type=jnp.float32), b3_ref[...])   # (TB, 128)
            out_ref[...] = (jnp.dot(a3, wri_ref[...],
                                    preferred_element_type=jnp.float32) + bri_ref[...])
    else:
        # v5e path: keep the K=128 Linear GEMM separate (MXU is 128-deep).
        def kernel(feat_ref, w0_ref, b0_ref, w1_ref, b1_ref, w2_ref, b2_ref,
                   w3_ref, b3_ref, wri_ref, bri_ref, out_ref):
            x0 = (jnp.dot(feat_ref[...], w0_ref[...],
                          preferred_element_type=jnp.float32) + b0_ref[...])      # (TB, 128)
            a1 = _act(jnp.dot(x0.astype(jnp.bfloat16), w1_ref[...],
                              preferred_element_type=jnp.float32), b1_ref[...])   # (TB, 2048)
            a2 = _act(jnp.dot(a1, w2_ref[...],
                              preferred_element_type=jnp.float32), b2_ref[...])   # (TB, 512)
            a3 = _act(jnp.dot(a2, w3_ref[...],
                              preferred_element_type=jnp.float32), b3_ref[...])   # (TB, 128)
            out_ref[...] = (jnp.dot(a3, wri_ref[...],
                                    preferred_element_type=jnp.float32) + bri_ref[...])
    return kernel


# ----------------------------------------------------------------------------
# Host-side parameter folding (pure layout transforms, done once).
# ----------------------------------------------------------------------------
def _shift_mats(ksize, pad):
    """S[k, r_in, r_out] = 1 iff input pos r_in feeds output pos r_out for tap k."""
    S = np.zeros((ksize * ksize, HW, HW), np.float32)
    for dy in range(ksize):
        for dx in range(ksize):
            k = dy * ksize + dx
            for yo in range(H):
                for xo in range(W):
                    yi, xi = yo + dy - pad, xo + dx - pad
                    if 0 <= yi < H and 0 <= xi < W:
                        S[k, yi * W + xi, yo * W + xo] = 1.0
    return S


def _fold_conv(w, pad):
    """(C_out,C_in,k,k) conv -> (C_in*64, C_out*64) block matrix incl. zero-padding."""
    c_out, c_in, k, _ = w.shape
    S = _shift_mats(k, pad)
    big = np.einsum('oik,kab->iaob',
                    np.asarray(w, np.float32).reshape(c_out, c_in, k * k), S)
    return big.reshape(c_in * HW, c_out * HW)


def prepare_params(params, n_out, *, fold01=True, ep_dtype=jnp.bfloat16):
    p = {k: np.asarray(v, np.float32) for k, v in params.items()}

    w0 = np.kron(np.eye(16, dtype=np.float32), p["w_init"].T)                 # (256, 128)
    b0 = np.tile(p["b_init"], 16)                                             # (128,)
    w1 = _fold_conv(p["w1"], pad=2)                                           # (128, 2048)
    b1 = np.repeat(p["b1"], HW)                                               # (2048,)
    w2 = _fold_conv(p["w2"], pad=1)                                           # (2048, 512)
    b2 = np.repeat(p["b2"], HW)                                               # (512,)
    w3 = np.kron(p["w3"][:, :, 0, 0].T, np.eye(HW, dtype=np.float32))         # (512, 128)
    b3 = np.repeat(p["b3"], HW)                                               # (128,)

    # concat real/imag heads, pad columns to a multiple of 128 (lane-dense store)
    n_pad = _round_up(2 * n_out, 128)
    wri = np.zeros((2 * HW, n_pad), np.float32)
    wri[:, :n_out] = p["wr"].T
    wri[:, n_out:2 * n_out] = p["wi"].T
    bri = np.zeros((n_pad,), np.float32)
    bri[:n_out] = p["br"]
    bri[n_out:2 * n_out] = p["bi"]

    def bf(x):
        return jnp.asarray(x, jnp.bfloat16)

    def row(x, dt):
        return jnp.asarray(x, dt)[None, :]

    if fold01:
        # No activation between the Linear and conv1 -> fold into one K=256 GEMM.
        # Fold in f32 (including the bias propagation), then cast to bf16.
        w01 = w0 @ w1                                                          # (256, 2048)
        b01 = b0 @ w1 + b1                                                     # (2048,)
        w_args = [bf(w01), row(b01, ep_dtype),
                  bf(w2),  row(b2, ep_dtype),
                  bf(w3),  row(b3, ep_dtype),
                  bf(wri), row(bri, jnp.float32)]
    else:
        w_args = [bf(w0),  row(b0, jnp.float32),
                  bf(w1),  row(b1, ep_dtype),
                  bf(w2),  row(b2, ep_dtype),
                  bf(w3),  row(b3, ep_dtype),
                  bf(wri), row(bri, jnp.float32)]

    return dict(w_args=w_args, n_out=n_out, n_pad=n_pad, fold01=fold01)


# ----------------------------------------------------------------------------
# Wrapper
# ----------------------------------------------------------------------------
def _pick_tb(B):
    """Batch tile: multiple of 8, <= 256, minimal zero-padding, and >= 2 grid
    steps once B >= 32 so both v7x TensorCores get work (harmless on 1-TC chips)."""
    if B <= 16:
        return _round_up(B, 8), 1
    n_blocks = max(2 if B >= 32 else 1, _cdiv(B, 256))
    tb = _round_up(_cdiv(B, n_blocks), 8)
    return tb, n_blocks


def decoder_combiner(feature, prepped):
    B = feature.shape[0]
    n_out, n_pad = prepped["n_out"], prepped["n_pad"]
    w_args = prepped["w_args"]

    TB, n_blocks = _pick_tb(B)
    B_pad = TB * n_blocks

    # Pre-cast the only per-step HBM stream to bf16 (f32 accumulation in-kernel).
    feat = jnp.asarray(feature, jnp.bfloat16).reshape(B, 2 * 128)
    if B_pad != B:
        feat = jnp.pad(feat, ((0, B_pad - B), (0, 0)))

    def full(arr):
        nd = arr.ndim
        return pl.BlockSpec(arr.shape, lambda b, _nd=nd: (0,) * _nd)

    grid_spec = pltpu.PrefetchScalarGridSpec(
        num_scalar_prefetch=0,
        grid=(n_blocks,),
        in_specs=[pl.BlockSpec((TB, 2 * 128), lambda b: (b, 0))]
                 + [full(a) for a in w_args],
        out_specs=pl.BlockSpec((TB, n_pad), lambda b: (b, 0)),
    )

    out = pl.pallas_call(
        make_kernel(prepped["fold01"]),
        out_shape=jax.ShapeDtypeStruct((B_pad, n_pad), jnp.float32),
        grid_spec=grid_spec,
        compiler_params=pltpu.CompilerParams(dimension_semantics=("parallel",)),
    )(feat, *w_args)

    return out[:B, :n_out], out[:B, n_out:2 * n_out]


# ----------------------------------------------------------------------------
# Pure-JAX reference (matches the PyTorch forward, f32)
# ----------------------------------------------------------------------------
def reference(feature, p):
    h = feature @ p["w_init"].T + p["b_init"]            # (B, 16, 8)
    x = h.reshape(feature.shape[0], 2, 8, 8)

    def conv(x, w, b, pad):
        y = jax.lax.conv_general_dilated(
            x, w, (1, 1), [(pad, pad), (pad, pad)],
            dimension_numbers=("NCHW", "OIHW", "NCHW"))
        return jax.nn.leaky_relu(y + b[None, :, None, None], NEG_SLOPE)

    x = conv(x, p["w1"], p["b1"], 2)
    x = conv(x, p["w2"], p["b2"], 1)
    x = conv(x, p["w3"], p["b3"], 0)
    xf = x.reshape(x.shape[0], -1)                       # (B, 128), order c*64 + y*8 + x
    return xf @ p["wr"].T + p["br"], xf @ p["wi"].T + p["bi"]


# ----------------------------------------------------------------------------
# Main
# ----------------------------------------------------------------------------
if __name__ == "__main__":
    antenna, rf_chain, feedback_bit = 16, 4, 32          # feedback_bit unused in forward
    n_out = antenna * rf_chain
    B = 2

    key = jax.random.PRNGKey(0)
    ks = jax.random.split(key, 13)

    def uinit(k, shape, fan_in):
        bound = 1.0 / np.sqrt(fan_in)
        return jax.random.uniform(k, shape, jnp.float32, -bound, bound)

    params = {
        "w_init": uinit(ks[0], (8, 16), 16),       "b_init": uinit(ks[1], (8,), 16),
        "w1": uinit(ks[2], (32, 2, 5, 5), 2 * 25), "b1": uinit(ks[3], (32,), 2 * 25),
        "w2": uinit(ks[4], (8, 32, 3, 3), 32 * 9), "b2": uinit(ks[5], (8,), 32 * 9),
        "w3": uinit(ks[6], (2, 8, 1, 1), 8),       "b3": uinit(ks[7], (2,), 8),
        "wr": uinit(ks[8], (n_out, 128), 128),     "br": uinit(ks[9], (n_out,), 128),
        "wi": uinit(ks[10], (n_out, 128), 128),    "bi": uinit(ks[11], (n_out,), 128),
    }

    feature = jax.random.normal(ks[12], (B, 16, 16), jnp.float32)

    # Generation-specific choices per the perf review:
    #  - fold Linear into conv1 only on 256-deep-MXU chips (v6e/v7x),
    #  - bf16 bias+LeakyReLU epilogue only where the VPU has bf16 (v6e/v7x).
    kind = _device_kind()
    older_gen = any(t in kind for t in ("v2", "v3", "v4", "v5"))
    prepped = prepare_params(
        params, n_out,
        fold01=not older_gen,
        ep_dtype=jnp.float32 if older_gen else jnp.bfloat16)

    real, imag = decoder_combiner(feature, prepped)
    jax.block_until_ready((real, imag))

    ref_real, ref_imag = reference(feature, params)
    # bf16 matmul operands + (on v6e/v7x) bf16 epilogue, f32 accumulation.
    np.testing.assert_allclose(np.asarray(real), np.asarray(ref_real), rtol=3e-2, atol=3e-2)
    np.testing.assert_allclose(np.asarray(imag), np.asarray(ref_imag), rtol=3e-2, atol=3e-2)

    print("KERNEL_OK")
</pallas_src>

<mosaic_0001>
module attributes {stable_mosaic.version = 11 : i64} {
  func.func @kernel(%arg0: i32, %arg1: memref<8x256xbf16, #tpu.memory_space<vmem>>, %arg2: memref<256x2048xbf16, #tpu.memory_space<vmem>>, %arg3: memref<1x2048xbf16, #tpu.memory_space<vmem>>, %arg4: memref<2048x512xbf16, #tpu.memory_space<vmem>>, %arg5: memref<1x512xbf16, #tpu.memory_space<vmem>>, %arg6: memref<512x128xbf16, #tpu.memory_space<vmem>>, %arg7: memref<1x128xbf16, #tpu.memory_space<vmem>>, %arg8: memref<128x128xbf16, #tpu.memory_space<vmem>>, %arg9: memref<1x128xf32, #tpu.memory_space<vmem>>, %arg10: memref<8x128xf32, #tpu.memory_space<vmem>>) attributes {dimension_semantics = [#tpu.dimension_semantics<parallel>], iteration_bounds = array<i64: 1>, scalar_prefetch = 0 : i64, scratch_operands = 0 : i64, tpu.core_type = #tpu.core_type<tc>, window_params = [{transform_indices = @transform_0, window_bounds = array<i64: 8, 256>}, {pipeline_mode = #tpu.pipeline_mode<synchronous>, transform_indices = @transform_1, window_bounds = array<i64: 256, 2048>}, {pipeline_mode = #tpu.pipeline_mode<synchronous>, transform_indices = @transform_2, window_bounds = array<i64: 1, 2048>}, {pipeline_mode = #tpu.pipeline_mode<synchronous>, transform_indices = @transform_3, window_bounds = array<i64: 2048, 512>}, {pipeline_mode = #tpu.pipeline_mode<synchronous>, transform_indices = @transform_4, window_bounds = array<i64: 1, 512>}, {pipeline_mode = #tpu.pipeline_mode<synchronous>, transform_indices = @transform_5, window_bounds = array<i64: 512, 128>}, {pipeline_mode = #tpu.pipeline_mode<synchronous>, transform_indices = @transform_6, window_bounds = array<i64: 1, 128>}, {pipeline_mode = #tpu.pipeline_mode<synchronous>, transform_indices = @transform_7, window_bounds = array<i64: 128, 128>}, {pipeline_mode = #tpu.pipeline_mode<synchronous>, transform_indices = @transform_8, window_bounds = array<i64: 1, 128>}, {transform_indices = @transform_9, window_bounds = array<i64: 8, 128>}]} {
    %c0 = arith.constant 0 : index
    %c0_0 = arith.constant 0 : index
    %0 = vector.load %arg1[%c0, %c0_0] : memref<8x256xbf16, #tpu.memory_space<vmem>>, vector<8x256xbf16>
    %c0_1 = arith.constant 0 : index
    %c0_2 = arith.constant 0 : index
    %1 = vector.load %arg2[%c0_1, %c0_2] : memref<256x2048xbf16, #tpu.memory_space<vmem>>, vector<256x2048xbf16>
    %cst = arith.constant dense<0.000000e+00> : vector<8x2048xf32>
    %2 = tpu.matmul %0, %1, %cst {dimension_numbers = #tpu.dot_dimension_numbers<[1], [0], [0], [1], [0, 0, 1, 1], [], []>} : vector<8x256xbf16>, vector<256x2048xbf16>, vector<8x2048xf32> -> vector<8x2048xf32>
    %c0_3 = arith.constant 0 : index
    %c0_4 = arith.constant 0 : index
    %3 = vector.load %arg3[%c0_3, %c0_4] : memref<1x2048xbf16, #tpu.memory_space<vmem>>, vector<1x2048xbf16>
    %4 = arith.truncf %2 : vector<8x2048xf32> to vector<8x2048xbf16>
    %5 = vector.broadcast %3 : vector<1x2048xbf16> to vector<8x2048xbf16>
    %6 = arith.addf %4, %5 : vector<8x2048xbf16>
    %cst_5 = arith.constant 1.000980e-02 : bf16
    %7 = vector.broadcast %cst_5 : bf16 to vector<8x2048xbf16>
    %8 = arith.mulf %7, %6 : vector<8x2048xbf16>
    %9 = arith.maximumf %6, %8 : vector<8x2048xbf16>
    %c0_6 = arith.constant 0 : index
    %c0_7 = arith.constant 0 : index
    %10 = vector.load %arg4[%c0_6, %c0_7] : memref<2048x512xbf16, #tpu.memory_space<vmem>>, vector<2048x512xbf16>
    %cst_8 = arith.constant dense<0.000000e+00> : vector<8x512xf32>
    %11 = tpu.matmul %9, %10, %cst_8 {dimension_numbers = #tpu.dot_dimension_numbers<[1], [0], [0], [1], [0, 0, 1, 1], [], []>} : vector<8x2048xbf16>, vector<2048x512xbf16>, vector<8x512xf32> -> vector<8x512xf32>
    %c0_9 = arith.constant 0 : index
    %c0_10 = arith.constant 0 : index
    %12 = vector.load %arg5[%c0_9, %c0_10] : memref<1x512xbf16, #tpu.memory_space<vmem>>, vector<1x512xbf16>
    %13 = arith.truncf %11 : vector<8x512xf32> to vector<8x512xbf16>
    %14 = vector.broadcast %12 : vector<1x512xbf16> to vector<8x512xbf16>
    %15 = arith.addf %13, %14 : vector<8x512xbf16>
    %cst_11 = arith.constant 1.000980e-02 : bf16
    %16 = vector.broadcast %cst_11 : bf16 to vector<8x512xbf16>
    %17 = arith.mulf %16, %15 : vector<8x512xbf16>
    %18 = arith.maximumf %15, %17 : vector<8x512xbf16>
    %c0_12 = arith.constant 0 : index
    %c0_13 = arith.constant 0 : index
    %19 = vector.load %arg6[%c0_12, %c0_13] : memref<512x128xbf16, #tpu.memory_space<vmem>>, vector<512x128xbf16>
    %cst_14 = arith.constant dense<0.000000e+00> : vector<8x128xf32>
    %20 = tpu.matmul %18, %19, %cst_14 {dimension_numbers = #tpu.dot_dimension_numbers<[1], [0], [0], [1], [0, 0, 1, 1], [], []>} : vector<8x512xbf16>, vector<512x128xbf16>, vector<8x128xf32> -> vector<8x128xf32>
    %c0_15 = arith.constant 0 : index
    %c0_16 = arith.constant 0 : index
    %21 = vector.load %arg7[%c0_15, %c0_16] : memref<1x128xbf16, #tpu.memory_space<vmem>>, vector<1x128xbf16>
    %22 = arith.truncf %20 : vector<8x128xf32> to vector<8x128xbf16>
    %23 = vector.broadcast %21 : vector<1x128xbf16> to vector<8x128xbf16>
    %24 = arith.addf %22, %23 : vector<8x128xbf16>
    %cst_17 = arith.constant 1.000980e-02 : bf16
    %25 = vector.broadcast %cst_17 : bf16 to vector<8x128xbf16>
    %26 = arith.mulf %25, %24 : vector<8x128xbf16>
    %27 = arith.maximumf %24, %26 : vector<8x128xbf16>
    %c0_18 = arith.constant 0 : index
    %c0_19 = arith.constant 0 : index
    %28 = vector.load %arg8[%c0_18, %c0_19] : memref<128x128xbf16, #tpu.memory_space<vmem>>, vector<128x128xbf16>
    %cst_20 = arith.constant dense<0.000000e+00> : vector<8x128xf32>
    %29 = tpu.matmul %27, %28, %cst_20 {dimension_numbers = #tpu.dot_dimension_numbers<[1], [0], [0], [1], [0, 0, 1, 1], [], []>} : vector<8x128xbf16>, vector<128x128xbf16>, vector<8x128xf32> -> vector<8x128xf32>
    %c0_21 = arith.constant 0 : index
    %c0_22 = arith.constant 0 : index
    %30 = vector.load %arg9[%c0_21, %c0_22] : memref<1x128xf32, #tpu.memory_space<vmem>>, vector<1x128xf32>
    %31 = vector.broadcast %30 : vector<1x128xf32> to vector<8x128xf32>
    %32 = arith.addf %29, %31 : vector<8x128xf32>
    %c0_23 = arith.constant 0 : index
    %c0_24 = arith.constant 0 : index
    %33 = vector.load %arg10[%c0_23, %c0_24] : memref<8x128xf32, #tpu.memory_space<vmem>>, vector<8x128xf32>
    tpu.vector_store %arg10[%c0_23, %c0_24], %32 {strides = array<i32>} : memref<8x128xf32, #tpu.memory_space<vmem>>, vector<8x128xf32>,
    return
  }
  func.func @transform_0(%arg0: i32) -> (i32, i32) {
    %c0_i32 = arith.constant 0 : i32
    %c0_i32_0 = arith.constant 0 : i32
    return %arg0, %c0_i32 : i32, i32
  }
  func.func @transform_1(%arg0: i32) -> (i32, i32) {
    %c0_i32 = arith.constant 0 : i32
    %c0_i32_0 = arith.constant 0 : i32
    %c0_i32_1 = arith.constant 0 : i32
    return %c0_i32, %c0_i32_0 : i32, i32
  }
  func.func @transform_2(%arg0: i32) -> (i32, i32) {
    %c0_i32 = arith.constant 0 : i32
    %c0_i32_0 = arith.constant 0 : i32
    %c0_i32_1 = arith.constant 0 : i32
    return %c0_i32, %c0_i32_0 : i32, i32
  }
  func.func @transform_3(%arg0: i32) -> (i32, i32) {
    %c0_i32 = arith.constant 0 : i32
    %c0_i32_0 = arith.constant 0 : i32
    %c0_i32_1 = arith.constant 0 : i32
    return %c0_i32, %c0_i32_0 : i32, i32
  }
  func.func @transform_4(%arg0: i32) -> (i32, i32) {
    %c0_i32 = arith.constant 0 : i32
    %c0_i32_0 = arith.constant 0 : i32
    %c0_i32_1 = arith.constant 0 : i32
    return %c0_i32, %c0_i32_0 : i32, i32
  }
  func.func @transform_5(%arg0: i32) -> (i32, i32) {
    %c0_i32 = arith.constant 0 : i32
    %c0_i32_0 = arith.constant 0 : i32
    %c0_i32_1 = arith.constant 0 : i32
    return %c0_i32, %c0_i32_0 : i32, i32
  }
  func.func @transform_6(%arg0: i32) -> (i32, i32) {
    %c0_i32 = arith.constant 0 : i32
    %c0_i32_0 = arith.constant 0 : i32
    %c0_i32_1 = arith.constant 0 : i32
    return %c0_i32, %c0_i32_0 : i32, i32
  }
  func.func @transform_7(%arg0: i32) -> (i32, i32) {
    %c0_i32 = arith.constant 0 : i32
    %c0_i32_0 = arith.constant 0 : i32
    %c0_i32_1 = arith.constant 0 : i32
    return %c0_i32, %c0_i32_0 : i32, i32
  }
  func.func @transform_8(%arg0: i32) -> (i32, i32) {
    %c0_i32 = arith.constant 0 : i32
    %c0_i32_0 = arith.constant 0 : i32
    %c0_i32_1 = arith.constant 0 : i32
    return %c0_i32, %c0_i32_0 : i32, i32
  }
  func.func @transform_9(%arg0: i32) -> (i32, i32) {
    %c0_i32 = arith.constant 0 : i32
    %c0_i32_0 = arith.constant 0 : i32
    return %arg0, %c0_i32 : i32, i32
  }
}

</mosaic_0001>

<bundles_post_ra>
// kernel: tpu_custom_call.1
= control target key start
LH: loop header
LB: loop body
LE: loop exit
PB: predicated region body
PF: predicated region fallthrough
CT: control target
= control target key end

     0   :  { %14 = vsyncpa [#allocation3], 0  ;;  %s8853_s0 = inlined_call_operand.hbm [shape: bf16[8,256], index: 0, kind: input, shape index: {}]   ;;  %s8854_s1 = inlined_call_operand.hbm [shape: bf16[256,2048], index: 1, kind: input, shape index: {}]   ;;  %s8855_s2 = inlined_call_operand.hbm [shape: bf16[1,2048], index: 2, kind: input, shape index: {}]   ;;  %s8856_s3 = inlined_call_operand.hbm [shape: bf16[2048,512], index: 3, kind: input, shape index: {}]   ;;  %s8857_s4 = inlined_call_operand.hbm [shape: bf16[1,512], index: 4, kind: input, shape index: {}]   ;;  %s8858_s5 = inlined_call_operand.hbm [shape: bf16[512,128], index: 5, kind: input, shape index: {}]   ;;  %s8859_s6 = inlined_call_operand.hbm [shape: bf16[1,128], index: 6, kind: input, shape index: {}]   ;;  %s8860_s7 = inlined_call_operand.hbm [shape: bf16[128,128], index: 7, kind: input, shape index: {}]   ;;  %s8861_s8 = inlined_call_operand.hbm [shape: f32[1,128], index: 8, kind: input, shape index: {}]   ;;  %s8862_s9 = inlined_call_operand.hbm [shape: f32[8,128], index: 9, kind: output, shape index: {}]  }
   0x1   :  { %15 = vsyncpa [#allocation6], 0 }
   0x2   :  { %16 = vsyncpa [#allocation9], 0 }
   0x3   :  { %17 = vsyncpa [#allocation12], 0 }
   0x4   :  { %18 = vsyncpa [#allocation15], 0 }
   0x5   :  { %19 = vsyncpa [#allocation4], 0  ;;  %s8501_s30 = smov [#allocation5]  }
   0x6   :  { %s35_s10 = sshll.u32 %s8501_s30, 4  ;;  %s36_s10 = int_to_ptr.vmem [resolvable:$true] %s35_s10 }
   0x7   :  { %s8297_s11 = scalar_lea.vmem %s36_s10, 32768  ;;  %p8302_p1 = scmp.lt.s32.totalorder %s36_s10, %s36_s10 }
   0x8   :  { %p8298_p0 = scmp.ne.s32.totalorder %s36_s10, %s8297_s11  ;;  %p8303_p2 = scmp.lt.s32.totalorder %s8297_s11, %s8297_s11 }
   0xa   :  { %p8304_p3 = por %p8303_p2, %p8302_p1 }
   0xc   :  { %p8305_p4 = pnand %p8304_p3, %p8298_p0 }
   0xe   :  { %8308 = shalt.err (!%p8305_p4)
}
   0xf   :  { %s8502_s12 = smov 1024   ;;  %s8503_s13 = smov 64  }
  0x10   :  { %41 = dma.hbm_to_vmem [thread:$0]  %s8854_s1, 32768, %s36_s10, [#allocation6], %s8502_s12, %s8502_s12, %s8503_s13  }
  0x11   :  { %s8504_s16 = smov [#allocation8]  }
  0x12   :  { %s57_s17 = sshll.u32 %s8504_s16, 4  ;;  %s58_s17 = int_to_ptr.vmem [resolvable:$true] %s57_s17 }
  0x13   :  { %s8317_s18 = scalar_lea.vmem %s58_s17, 65536  ;;  %p8322_p6 = scmp.lt.s32.totalorder %s58_s17, %s58_s17 }
  0x14   :  { %p8318_p5 = scmp.ne.s32.totalorder %s58_s17, %s8317_s18  ;;  %p8323_p7 = scmp.lt.s32.totalorder %s8317_s18, %s8317_s18 }
  0x16   :  { %p8324_p8 = por %p8323_p7, %p8322_p6 }
  0x18   :  { %p8325_p9 = pnand %p8324_p8, %p8318_p5 }
  0x1a   :  { %8328 = shalt.err (!%p8325_p9)
}
  0x1b   :  { %s8505_s19 = smov 256   ;;  %s8506_s20 = smov 16  }
  0x1c   :  { %63 = dma.hbm_to_vmem [thread:$0]  %s8856_s3, 65536, %s58_s17, [#allocation9], %s8505_s19, %s8505_s19, %s8506_s20  }
  0x1d   :  { %s8507_s23 = smov [#allocation11]   ;;  %s8508_s1 = smov [#allocation14]  }
  0x1e   :  { %s79_s24 = sshll.u32 %s8507_s23, 4  ;;  %s101_s25 = sshll.u32 %s8508_s1, 4  ;;  %s80_s24 = int_to_ptr.vmem [resolvable:$true] %s79_s24  ;;  %s102_s25 = int_to_ptr.vmem [resolvable:$true] %s101_s25 }
  0x1f   :  { %s8337_s26 = scalar_lea.vmem %s80_s24, 4096  ;;  %p8342_p11 = scmp.lt.s32.totalorder %s80_s24, %s80_s24 }
  0x20   :  { %p8338_p10 = scmp.ne.s32.totalorder %s80_s24, %s8337_s26  ;;  %p8343_p12 = scmp.lt.s32.totalorder %s8337_s26, %s8337_s26 }
  0x22   :  { %p8344_p13 = por %p8343_p12, %p8342_p11 }
  0x24   :  { %p8345_p0 = pnand %p8344_p13, %p8338_p10 }
  0x26   :  { %8348 = shalt.err (!%p8345_p0)
}
  0x27   :  { %s8509_s27 = smov 4   ;;  %s8357_s3 = scalar_lea.vmem %s102_s25, 1024 }
  0x28   :  { %85 = dma.hbm_to_vmem [thread:$0]  %s8858_s5, 4096, %s80_s24, [#allocation12], %s8503_s13, %s8503_s13, %s8509_s27  }
  0x29   :  { %p8358_p1 = scmp.ne.s32.totalorder %s102_s25, %s8357_s3  ;;  %p8362_p2 = scmp.lt.s32.totalorder %s102_s25, %s102_s25 }
  0x2a   :  { %p8363_p3 = scmp.lt.s32.totalorder %s8357_s3, %s8357_s3 }
  0x2c   :  { %p8364_p4 = por %p8363_p3, %p8362_p2 }
  0x2e   :  { %p8365_p5 = pnand %p8364_p4, %p8358_p1 }
  0x30   :  { %8368 = shalt.err (!%p8365_p5)
}
  0x31   :  { %107 = dma.hbm_to_vmem [thread:$0]  %s8860_s7, 1024, %s102_s25, [#allocation15], %s8503_s13, %s8503_s13, %s8509_s27  }
  0x32   :  { %s8510_s11 = smov [#allocation2]   ;;  %s8511_s14 = smov [#allocation7]  }
  0x33   :  { %s26_s12 = sshll.u32 %s8510_s11, 4  ;;  %s48_s15 = sshll.u32 %s8511_s14, 4  ;;  %s27_s12 = int_to_ptr.vmem [resolvable:$true] %s26_s12  ;;  %s49_s15 = int_to_ptr.vmem [resolvable:$true] %s48_s15 }
  0x34   :  { %s8377_s5 = scalar_lea.vmem %s27_s12, 128  ;;  %p8382_p7 = scmp.lt.s32.totalorder %s27_s12, %s27_s12 }
  0x35   :  { %p8378_p6 = scmp.ne.s32.totalorder %s27_s12, %s8377_s5  ;;  %p8383_p8 = scmp.lt.s32.totalorder %s8377_s5, %s8377_s5 }
  0x37   :  { %p8384_p9 = por %p8383_p8, %p8382_p7 }
  0x39   :  { %p8385_p10 = pnand %p8384_p9, %p8378_p6 }
  0x3b   :  { %8388 = shalt.err (!%p8385_p10)
}
  0x3c   :  { %29 = dma.hbm_to_vmem [thread:$0]  %s8853_s0, 128, %s27_s12, [#allocation3]  }
  0x3d   :  { %s8397_s18 = scalar_lea.vmem %s49_s15, 256  ;;  %p8402_p12 = scmp.lt.s32.totalorder %s49_s15, %s49_s15 }
  0x3e   :  { %p8398_p11 = scmp.ne.s32.totalorder %s49_s15, %s8397_s18  ;;  %p8403_p13 = scmp.lt.s32.totalorder %s8397_s18, %s8397_s18 }
  0x40   :  { %p8404_p0 = por %p8403_p13, %p8402_p12 }
  0x42   :  { %p8405_p1 = pnand %p8404_p0, %p8398_p11 }
  0x44   :  { %8408 = shalt.err (!%p8405_p1)
}
  0x45   :  { %51 = dma.hbm_to_vmem [thread:$0]  %s8855_s2, 256, %s49_s15, [#allocation6]  }
  0x46   :  { %s8512_s19 = smov [#allocation10]   ;;  %s8513_s21 = smov [#allocation13]  }
  0x47   :  { %s70_s20 = sshll.u32 %s8512_s19, 4  ;;  %s92_s22 = sshll.u32 %s8513_s21, 4  ;;  %s71_s20 = int_to_ptr.vmem [resolvable:$true] %s70_s20  ;;  %s93_s22 = int_to_ptr.vmem [resolvable:$true] %s92_s22 }
  0x48   :  { %s8417_s23 = scalar_lea.vmem %s71_s20, 64  ;;  %p8422_p3 = scmp.lt.s32.totalorder %s71_s20, %s71_s20 }
  0x49   :  { %p8418_p2 = scmp.ne.s32.totalorder %s71_s20, %s8417_s23  ;;  %p8423_p4 = scmp.lt.s32.totalorder %s8417_s23, %s8417_s23 }
  0x4b   :  { %p8424_p5 = por %p8423_p4, %p8422_p3 }
  0x4d   :  { %p8425_p6 = pnand %p8424_p5, %p8418_p2 }
  0x4f   :  { %8428 = shalt.err (!%p8425_p6)
}
  0x50   :  { %73 = dma.hbm_to_vmem [thread:$0]  %s8857_s4, 64, %s71_s20, [#allocation9]  }
  0x51   :  { %s8437_s1 = scalar_lea.vmem %s93_s22, 16  ;;  %s8441_s2 = scalar_lea.vmem %s93_s22, 32 }
  0x52   :  { %p8438_p7 = scmp.ne.s32.totalorder %s93_s22, %s8437_s1  ;;  %p8442_p8 = scmp.lt.s32.totalorder %s93_s22, %s93_s22 }
  0x53   :  { %p8443_p9 = scmp.lt.s32.totalorder %s8441_s2, %s8437_s1 }
  0x55   :  { %p8444_p10 = por %p8443_p9, %p8442_p8 }
  0x57   :  { %p8445_p11 = pnand %p8444_p10, %p8438_p7 }
  0x59   :  { %8448 = shalt.err (!%p8445_p11)
}
  0x5a   :  { %95 = dma.hbm_to_vmem [thread:$0]  %s8859_s6, 16, %s93_s22, [#allocation12]  }
  0x5b   :  { %s8514_s27 = smov [#allocation16]  }
  0x5c   :  { %s114_s28 = sshll.u32 %s8514_s27, 4  ;;  %s115_s28 = int_to_ptr.vmem [resolvable:$true] %s114_s28 }
  0x5d   :  { %s8457_s29 = scalar_lea.vmem %s115_s28, 16  ;;  %s8461_s3 = scalar_lea.vmem %s115_s28, 32 }
  0x5e   :  { %p8458_p12 = scmp.ne.s32.totalorder %s115_s28, %s8457_s29  ;;  %p8462_p13 = scmp.lt.s32.totalorder %s115_s28, %s115_s28 }
  0x5f   :  { %p8463_p0 = scmp.lt.s32.totalorder %s8461_s3, %s8457_s29 }
  0x61   :  { %p8464_p1 = por %p8463_p0, %p8462_p13 }
  0x63   :  { %p8465_p2 = pnand %p8464_p1, %p8458_p12 }
  0x65   :  { %8468 = shalt.err (!%p8465_p2)
}
  0x66   :  { %117 = dma.hbm_to_vmem [thread:$0]  %s8861_s8, 16, %s115_s28, [#allocation15]  }
  0x67   :  { %8489 = dma.done.wait [#allocation3], 128  }
  0x68   :  { %8490 = vsyncadd [#allocation3], 4294967168 }
  0x69   :  { %8491 = dma.done.wait [#allocation6], 33024  }
  0x6a   :  { %8492 = vsyncadd [#allocation6], 4294934272 }
  0x6b   :  { %8493 = dma.done.wait [#allocation9], 65600  }
  0x6c   :  { %8494 = vsyncadd [#allocation9], 4294901696 }
  0x6d   :  { %8495 = dma.done.wait [#allocation12], 4112  }
  0x6e   :  { %8496 = vsyncadd [#allocation12], 4294963184 }
  0x6f   :  { %8497 = dma.done.wait [#allocation15], 1040  }
  0x70   :  { %8498 = vsyncadd [#allocation15], 4294966256  ;;  %v260_v0 = vld [vmem:[#allocation5 + $0x380] sm:$0xff]  ;;  %v261_v2 = vld [vmem:[#allocation5 + $0x388] sm:$0xff]  ;;  %vm8517_vm0 = vmmov 0   ;;  %s8518_s6 = smov [#allocation17]  }
  0x71   :  { %v268_v1 = vld [vmem:[#allocation5 + $0x3c0] sm:$0xff]  ;;  %v269_v4 = vld [vmem:[#allocation5 + $0x3c8] sm:$0xff]  ;;  %v8601_v53 = vld [vmem:[#allocation2] sm:$0xff]  ;;  %s6561_s8 = sshll.u32 %s8518_s6, 4  ;;  %s6562_s8 = int_to_ptr.vmem [resolvable:$true] %s6561_s8 }
  0x72   :  { %v6689_v3 = vcombine.high %v260_v0, %v268_v1  ;;  %v6688_v5 = vcombine.low %v260_v0, %v268_v1  ;;  %v244_v6 = vld [vmem:[#allocation5 + $0x300] sm:$0xff]  ;;  %v6691_v8 = vcombine.high %v261_v2, %v269_v4  ;;  %v6690_v9 = vcombine.low %v261_v2, %v269_v4  ;;  %v245_v11 = vld [vmem:[#allocation5 + $0x308] sm:$0xff]  ;;  %s8469_s10 = scalar_lea.vmem %s6562_s8, 128  ;;  %p8474_p4 = scmp.lt.s32.totalorder %s6562_s8, %s6562_s8 }
  0x73   :  { %v252_v7 = vld [vmem:[#allocation5 + $0x340] sm:$0xff]  ;;  %v253_v12 = vld [vmem:[#allocation5 + $0x348] sm:$0xff]  ;;  %v8605_v57 = vcombine.high %v8601_v53, %v8601_v53  ;;  %p8470_p3 = scmp.ne.s32.totalorder %s6562_s8, %s8469_s10  ;;  %p8475_p5 = scmp.lt.s32.totalorder %s8469_s10, %s8469_s10 }
  0x74   :  { %v6673_v10 = vcombine.high %v244_v6, %v252_v7  ;;  %v228_v13 = vld [vmem:[#allocation5 + $0x280] sm:$0xff]  ;;  %1691 = vmatprep.subr.bf16.mxu0 %v6689_v3  ;;  %v6675_v14 = vcombine.high %v245_v11, %v253_v12  ;;  %v229_v16 = vld [vmem:[#allocation5 + $0x288] sm:$0xff]  ;;  %1732 = vmatprep.subr.bf16.mxu1 %v6691_v8  ;;  %v6672_v18 = vcombine.low %v244_v6, %v252_v7 }
  0x75   :  { %v236_v15 = vld [vmem:[#allocation5 + $0x2c0] sm:$0xff]  ;;  %v237_v17 = vld [vmem:[#allocation5 + $0x2c8] sm:$0xff]  ;;  %1692 = vmatpush1.bf16.msra.mxu0 %v6688_v5  ;;  %1733 = vmatpush1.bf16.msra.mxu1 %v6690_v9  ;;  %v6674_v19 = vcombine.low %v245_v11, %v253_v12  ;;  %p8476_p6 = por %p8475_p5, %p8474_p4 }
  0x76   :  { %1693 = vmatprep.subr.bf16.mxu0 %v6673_v10  ;;  %v6657_v20 = vcombine.high %v228_v13, %v236_v15  ;;  %1734 = vmatprep.subr.bf16.mxu1 %v6675_v14  ;;  %v6659_v21 = vcombine.high %v229_v16, %v237_v17  ;;  %v212_v22 = vld [vmem:[#allocation5 + $0x200] sm:$0xff]  ;;  %v213_v24 = vld [vmem:[#allocation5 + $0x208] sm:$0xff]  ;;  %v6656_v26 = vcombine.low %v228_v13, %v236_v15 }
  0x77   :  { %v220_v23 = vld [vmem:[#allocation5 + $0x240] sm:$0xff]  ;;  %v221_v25 = vld [vmem:[#allocation5 + $0x248] sm:$0xff]  ;;  %v6658_v27 = vcombine.low %v229_v16, %v237_v17  ;;  %1723 = vmatprep.mubr.bf16.mxu0 %v8605_v57  ;;  %1764 = vmatprep.mubr.bf16.mxu1 %v8605_v57  ;;  %p8477_p7 = pnand %p8476_p6, %p8470_p3 }
  0x78   :  { %v6641_v28 = vcombine.high %v212_v22, %v220_v23  ;;  %v6643_v29 = vcombine.high %v213_v24, %v221_v25  ;;  %v196_v30 = vld [vmem:[#allocation5 + $0x180] sm:$0xff]  ;;  %v197_v32 = vld [vmem:[#allocation5 + $0x188] sm:$0xff]  ;;  %v6640_v34 = vcombine.low %v212_v22, %v220_v23  ;;  %v6642_v35 = vcombine.low %v213_v24, %v221_v25 }
  0x79   :  { %1694 = vmatpush1.bf16.msra.mxu0 %v6672_v18  ;;  %1735 = vmatpush1.bf16.msra.mxu1 %v6674_v19  ;;  %v204_v31 = vld [vmem:[#allocation5 + $0x1c0] sm:$0xff]  ;;  %v205_v33 = vld [vmem:[#allocation5 + $0x1c8] sm:$0xff] }
  0x7a   :  { %1695 = vmatprep.subr.bf16.mxu0 %v6657_v20  ;;  %1736 = vmatprep.subr.bf16.mxu1 %v6659_v21  ;;  %v6625_v36 = vcombine.high %v196_v30, %v204_v31  ;;  %v6627_v37 = vcombine.high %v197_v32, %v205_v33  ;;  %v180_v38 = vld [vmem:[#allocation5 + $0x100] sm:$0xff]  ;;  %v181_v40 = vld [vmem:[#allocation5 + $0x108] sm:$0xff]  ;;  %v6624_v42 = vcombine.low %v196_v30, %v204_v31 }
  0x7b   :  { %v188_v39 = vld [vmem:[#allocation5 + $0x140] sm:$0xff]  ;;  %v189_v41 = vld [vmem:[#allocation5 + $0x148] sm:$0xff]  ;;  %v6626_v43 = vcombine.low %v197_v32, %v205_v33 }
  0x7c   :  { %v6609_v44 = vcombine.high %v180_v38, %v188_v39  ;;  %v6611_v45 = vcombine.high %v181_v40, %v189_v41  ;;  %v164_v46 = vld [vmem:[#allocation5 + $0x80] sm:$0xff]  ;;  %v165_v48 = vld [vmem:[#allocation5 + $0x88] sm:$0xff]  ;;  %v6608_v50 = vcombine.low %v180_v38, %v188_v39  ;;  %v6610_v51 = vcombine.low %v181_v40, %v189_v41 }
  0x7d   :  { %1696 = vmatpush1.bf16.msra.mxu0 %v6656_v26  ;;  %1737 = vmatpush1.bf16.msra.mxu1 %v6658_v27  ;;  %v172_v47 = vld [vmem:[#allocation5 + $0xc0] sm:$0xff]  ;;  %v173_v49 = vld [vmem:[#allocation5 + $0xc8] sm:$0xff] }
  0x7e   :  { %1697 = vmatprep.subr.bf16.mxu0 %v6641_v28  ;;  %1738 = vmatprep.subr.bf16.mxu1 %v6643_v29  ;;  %v6593_v52 = vcombine.high %v164_v46, %v172_v47  ;;  %v6595_v54 = vcombine.high %v165_v48, %v173_v49  ;;  %v148_v55 = vld [vmem:[#allocation5] sm:$0xff]  ;;  %v149_v58 = vld [vmem:[#allocation5 + $0x8] sm:$0xff]  ;;  %v6592_v60 = vcombine.low %v164_v46, %v172_v47 }
  0x7f   :  { %v156_v56 = vld [vmem:[#allocation5 + $0x40] sm:$0xff]  ;;  %v157_v59 = vld [vmem:[#allocation5 + $0x48] sm:$0xff]  ;;  %v6594_v61 = vcombine.low %v165_v48, %v173_v49 }
  0x80   :  { %v6577_v62 = vcombine.high %v148_v55, %v156_v56  ;;  %v6579_v63 = vcombine.high %v149_v58, %v157_v59  ;;  %v388_v0 = vld [vmem:[#allocation5 + $0x780] sm:$0xff]  ;;  %v389_v2 = vld [vmem:[#allocation5 + $0x788] sm:$0xff]  ;;  %v6576_v4 = vcombine.low %v148_v55, %v156_v56  ;;  %v6578_v5 = vcombine.low %v149_v58, %v157_v59 }
  0x81   :  { %1698 = vmatpush1.bf16.msra.mxu0 %v6640_v34  ;;  %1739 = vmatpush1.bf16.msra.mxu1 %v6642_v35  ;;  %v396_v1 = vld [vmem:[#allocation5 + $0x7c0] sm:$0xff]  ;;  %v397_v3 = vld [vmem:[#allocation5 + $0x7c8] sm:$0xff] }
  0x82   :  { %1699 = vmatprep.subr.bf16.mxu0 %v6625_v36  ;;  %1740 = vmatprep.subr.bf16.mxu1 %v6627_v37  ;;  %v6817_v6 = vcombine.high %v388_v0, %v396_v1  ;;  %v6819_v7 = vcombine.high %v389_v2, %v397_v3  ;;  %v372_v8 = vld [vmem:[#allocation5 + $0x700] sm:$0xff]  ;;  %v373_v10 = vld [vmem:[#allocation5 + $0x708] sm:$0xff]  ;;  %v6816_v12 = vcombine.low %v388_v0, %v396_v1 }
  0x83   :  { %v380_v9 = vld [vmem:[#allocation5 + $0x740] sm:$0xff]  ;;  %v381_v11 = vld [vmem:[#allocation5 + $0x748] sm:$0xff]  ;;  %v6818_v13 = vcombine.low %v389_v2, %v397_v3  ;;  %v262_v2 = vld [vmem:[#allocation5 + $0x390] sm:$0xff] }
  0x84   :  { %v6801_v14 = vcombine.high %v372_v8, %v380_v9  ;;  %v6803_v15 = vcombine.high %v373_v10, %v381_v11  ;;  %v356_v16 = vld [vmem:[#allocation5 + $0x680] sm:$0xff]  ;;  %v357_v18 = vld [vmem:[#allocation5 + $0x688] sm:$0xff]  ;;  %v6800_v20 = vcombine.low %v372_v8, %v380_v9  ;;  %v6802_v21 = vcombine.low %v373_v10, %v381_v11  ;;  %v270_v3 = vld [vmem:[#allocation5 + $0x3d0] sm:$0xff] }
  0x85   :  { %1700 = vmatpush1.bf16.msra.mxu0 %v6624_v42  ;;  %1741 = vmatpush1.bf16.msra.mxu1 %v6626_v43  ;;  %v364_v17 = vld [vmem:[#allocation5 + $0x6c0] sm:$0xff]  ;;  %v365_v19 = vld [vmem:[#allocation5 + $0x6c8] sm:$0xff]  ;;  %v6693_v8 = vcombine.high %v262_v2, %v270_v3  ;;  %v246_v10 = vld [vmem:[#allocation5 + $0x310] sm:$0xff] }
  0x86   :  { %1701 = vmatprep.subr.bf16.mxu0 %v6609_v44  ;;  %1742 = vmatprep.subr.bf16.mxu1 %v6611_v45  ;;  %v6785_v22 = vcombine.high %v356_v16, %v364_v17  ;;  %v6787_v23 = vcombine.high %v357_v18, %v365_v19  ;;  %v340_v24 = vld [vmem:[#allocation5 + $0x600] sm:$0xff]  ;;  %v341_v26 = vld [vmem:[#allocation5 + $0x608] sm:$0xff]  ;;  %v6784_v28 = vcombine.low %v356_v16, %v364_v17  ;;  %v254_v11 = vld [vmem:[#allocation5 + $0x350] sm:$0xff] }
  0x87   :  { %v348_v25 = vld [vmem:[#allocation5 + $0x640] sm:$0xff]  ;;  %v349_v27 = vld [vmem:[#allocation5 + $0x648] sm:$0xff]  ;;  %v6786_v29 = vcombine.low %v357_v18, %v365_v19  ;;  %v6677_v17 = vcombine.high %v246_v10, %v254_v11  ;;  %v230_v18 = vld [vmem:[#allocation5 + $0x290] sm:$0xff] }
  0x88   :  { %v6769_v30 = vcombine.high %v340_v24, %v348_v25  ;;  %v6771_v31 = vcombine.high %v341_v26, %v349_v27  ;;  %v324_v32 = vld [vmem:[#allocation5 + $0x580] sm:$0xff]  ;;  %v325_v34 = vld [vmem:[#allocation5 + $0x588] sm:$0xff]  ;;  %v6768_v36 = vcombine.low %v340_v24, %v348_v25  ;;  %v6770_v37 = vcombine.low %v341_v26, %v349_v27  ;;  %v238_v19 = vld [vmem:[#allocation5 + $0x2d0] sm:$0xff] }
  0x89   :  { %1702 = vmatpush1.bf16.msra.mxu0 %v6608_v50  ;;  %1743 = vmatpush1.bf16.msra.mxu1 %v6610_v51  ;;  %v332_v33 = vld [vmem:[#allocation5 + $0x5c0] sm:$0xff]  ;;  %v333_v35 = vld [vmem:[#allocation5 + $0x5c8] sm:$0xff]  ;;  %v6661_v24 = vcombine.high %v230_v18, %v238_v19  ;;  %v214_v25 = vld [vmem:[#allocation5 + $0x210] sm:$0xff] }
  0x8a   :  { %1703 = vmatprep.subr.bf16.mxu0 %v6593_v52  ;;  %1744 = vmatprep.subr.bf16.mxu1 %v6595_v54  ;;  %v6753_v38 = vcombine.high %v324_v32, %v332_v33  ;;  %v6755_v39 = vcombine.high %v325_v34, %v333_v35  ;;  %v308_v40 = vld [vmem:[#allocation5 + $0x500] sm:$0xff]  ;;  %v309_v42 = vld [vmem:[#allocation5 + $0x508] sm:$0xff]  ;;  %v6752_v44 = vcombine.low %v324_v32, %v332_v33  ;;  %v222_v26 = vld [vmem:[#allocation5 + $0x250] sm:$0xff] }
  0x8b   :  { %v316_v41 = vld [vmem:[#allocation5 + $0x540] sm:$0xff]  ;;  %v317_v43 = vld [vmem:[#allocation5 + $0x548] sm:$0xff]  ;;  %v6754_v45 = vcombine.low %v325_v34, %v333_v35  ;;  %v215_v27 = vld [vmem:[#allocation5 + $0x218] sm:$0xff]  ;;  %v6645_v32 = vcombine.high %v214_v25, %v222_v26 }
  0x8c   :  { %v6737_v46 = vcombine.high %v308_v40, %v316_v41  ;;  %v6739_v47 = vcombine.high %v309_v42, %v317_v43  ;;  %v292_v48 = vld [vmem:[#allocation5 + $0x480] sm:$0xff]  ;;  %v293_v50 = vld [vmem:[#allocation5 + $0x488] sm:$0xff]  ;;  %v6736_v52 = vcombine.low %v308_v40, %v316_v41  ;;  %v6738_v54 = vcombine.low %v309_v42, %v317_v43  ;;  %v198_v33 = vld [vmem:[#allocation5 + $0x190] sm:$0xff] }
  0x8d   :  { %1704 = vmatpush1.bf16.msra.mxu0 %v6592_v60  ;;  %1745 = vmatpush1.bf16.msra.mxu1 %v6594_v61  ;;  %v300_v49 = vld [vmem:[#allocation5 + $0x4c0] sm:$0xff]  ;;  %v301_v51 = vld [vmem:[#allocation5 + $0x4c8] sm:$0xff]  ;;  %v206_v34 = vld [vmem:[#allocation5 + $0x1d0] sm:$0xff] }
  0x8e   :  { %1705 = vmatprep.subr.bf16.mxu0 %v6577_v62  ;;  %1746 = vmatprep.subr.bf16.mxu1 %v6579_v63  ;;  %v6721_v55 = vcombine.high %v292_v48, %v300_v49  ;;  %v6723_v56 = vcombine.high %v293_v50, %v301_v51  ;;  %v276_v58 = vld [vmem:[#allocation5 + $0x400] sm:$0xff]  ;;  %v277_v60 = vld [vmem:[#allocation5 + $0x408] sm:$0xff]  ;;  %v6720_v62 = vcombine.low %v292_v48, %v300_v49  ;;  %v199_v35 = vld [vmem:[#allocation5 + $0x198] sm:$0xff] }
  0x8f   :  { %v284_v59 = vld [vmem:[#allocation5 + $0x440] sm:$0xff]  ;;  %v285_v61 = vld [vmem:[#allocation5 + $0x448] sm:$0xff]  ;;  %v6722_v63 = vcombine.low %v293_v50, %v301_v51  ;;  %v6629_v40 = vcombine.high %v198_v33, %v206_v34  ;;  %v182_v41 = vld [vmem:[#allocation5 + $0x110] sm:$0xff] }
  0x90   :  { %v6705_v0 = vcombine.high %v276_v58, %v284_v59  ;;  %v6707_v1 = vcombine.high %v277_v60, %v285_v61  ;;  %v190_v42 = vld [vmem:[#allocation5 + $0x150] sm:$0xff]  ;;  %v183_v43 = vld [vmem:[#allocation5 + $0x118] sm:$0xff] }
  0x91   :  { %1706 = vmatpush1.bf16.msra.mxu0 %v6576_v4  ;;  %1747 = vmatpush1.bf16.msra.mxu1 %v6578_v5  ;;  %v263_v4 = vld [vmem:[#allocation5 + $0x398] sm:$0xff]  ;;  %v6613_v48 = vcombine.high %v182_v41, %v190_v42  ;;  %v166_v49 = vld [vmem:[#allocation5 + $0x90] sm:$0xff] }
  0x92   :  { %1707 = vmatprep.subr.bf16.mxu0 %v6817_v6  ;;  %1748 = vmatprep.subr.bf16.mxu1 %v6819_v7  ;;  %v271_v5 = vld [vmem:[#allocation5 + $0x3d8] sm:$0xff]  ;;  %v6704_v6 = vcombine.low %v276_v58, %v284_v59  ;;  %v6706_v7 = vcombine.low %v277_v60, %v285_v61  ;;  %v174_v50 = vld [vmem:[#allocation5 + $0xd0] sm:$0xff] }
  0x93   :  { %v6695_v9 = vcombine.high %v263_v4, %v271_v5  ;;  %v6694_v16 = vcombine.low %v263_v4, %v271_v5  ;;  %v167_v51 = vld [vmem:[#allocation5 + $0x98] sm:$0xff]  ;;  %v6597_v58 = vcombine.high %v166_v49, %v174_v50  ;;  %v150_v59 = vld [vmem:[#allocation5 + $0x10] sm:$0xff] }
  0x94   :  { %v158_v60 = vld [vmem:[#allocation5 + $0x50] sm:$0xff]  ;;  %v151_v61 = vld [vmem:[#allocation5 + $0x18] sm:$0xff] }
  0x95   :  { %1708 = vmatpush2.bf16.msra.mxu0 %v6816_v12  ;;  %1749 = vmatpush2.bf16.msra.mxu1 %v6818_v13  ;;  %v8611_v12 = vcombine.low %v8601_v53, %v8601_v53  ;;  %v247_v13 = vld [vmem:[#allocation5 + $0x318] sm:$0xff]  ;;  %v6676_v53 = vcombine.low %v246_v10, %v254_v11  ;;  %v398_v4 = vld [vmem:[#allocation5 + $0x7d0] sm:$0xff] }
  0x96   :  { %1709 = vmatprep.subr.bf16.mxu0 %v6801_v14  ;;  %1750 = vmatprep.subr.bf16.mxu1 %v6803_v15  ;;  %v255_v14 = vld [vmem:[#allocation5 + $0x358] sm:$0xff]  ;;  %v6692_v15 = vcombine.low %v262_v2, %v270_v3  ;;  %v6581_v2 = vcombine.high %v150_v59, %v158_v60  ;;  %v390_v3 = vld [vmem:[#allocation5 + $0x790] sm:$0xff] }
  0x97   :  { %v391_v5 = vld [vmem:[#allocation5 + $0x798] sm:$0xff]  ;;  %v6821_v10 = vcombine.high %v390_v3, %v398_v4  ;;  %v374_v11 = vld [vmem:[#allocation5 + $0x710] sm:$0xff] }
  0x99   :  { %1710 = vmatpush2.bf16.msra.mxu0 %v6800_v20  ;;  %1751 = vmatpush2.bf16.msra.mxu1 %v6802_v21  ;;  %v231_v20 = vld [vmem:[#allocation5 + $0x298] sm:$0xff]  ;;  %v6679_v21 = vcombine.high %v247_v13, %v255_v14 }
  0x9a   :  { %1711 = vmatprep.subr.bf16.mxu0 %v6785_v22  ;;  %1752 = vmatprep.subr.bf16.mxu1 %v6787_v23  ;;  %v239_v22 = vld [vmem:[#allocation5 + $0x2d8] sm:$0xff]  ;;  %v6678_v23 = vcombine.low %v247_v13, %v255_v14  ;;  %v382_v13 = vld [vmem:[#allocation5 + $0x750] sm:$0xff] }
  0x9b   :  { %v375_v14 = vld [vmem:[#allocation5 + $0x718] sm:$0xff] }
  0x9d   :  { %1712 = vmatpush2.bf16.msra.mxu0 %v6784_v28  ;;  %1753 = vmatpush2.bf16.msra.mxu1 %v6786_v29  ;;  %v6663_v28 = vcombine.high %v231_v20, %v239_v22  ;;  %v223_v29 = vld [vmem:[#allocation5 + $0x258] sm:$0xff] }
  0x9e   :  { %1713 = vmatprep.subr.bf16.mxu0 %v6769_v30  ;;  %1754 = vmatprep.subr.bf16.mxu1 %v6771_v31  ;;  %v6660_v30 = vcombine.low %v230_v18, %v238_v19  ;;  %v6662_v31 = vcombine.low %v231_v20, %v239_v22  ;;  %v6805_v19 = vcombine.high %v374_v11, %v382_v13  ;;  %v358_v20 = vld [vmem:[#allocation5 + $0x690] sm:$0xff]  ;;  %v359_v22 = vld [vmem:[#allocation5 + $0x698] sm:$0xff] }
  0xa1   :  { %1714 = vmatpush2.bf16.msra.mxu0 %v6768_v36  ;;  %1755 = vmatpush2.bf16.msra.mxu1 %v6770_v37  ;;  %v6647_v36 = vcombine.high %v215_v27, %v223_v29  ;;  %v207_v37 = vld [vmem:[#allocation5 + $0x1d8] sm:$0xff] }
  0xa2   :  { %1715 = vmatprep.subr.bf16.mxu0 %v6753_v38  ;;  %1756 = vmatprep.subr.bf16.mxu1 %v6755_v39  ;;  %v6644_v38 = vcombine.low %v214_v25, %v222_v26  ;;  %v6646_v39 = vcombine.low %v215_v27, %v223_v29  ;;  %v342_v27 = vld [vmem:[#allocation5 + $0x610] sm:$0xff]  ;;  %v343_v29 = vld [vmem:[#allocation5 + $0x618] sm:$0xff] }
  0xa5   :  { %1716 = vmatpush2.bf16.msra.mxu0 %v6752_v44  ;;  %1757 = vmatpush2.bf16.msra.mxu1 %v6754_v45  ;;  %v6631_v44 = vcombine.high %v199_v35, %v207_v37  ;;  %v191_v45 = vld [vmem:[#allocation5 + $0x158] sm:$0xff] }
  0xa6   :  { %1717 = vmatprep.subr.bf16.mxu0 %v6737_v46  ;;  %1758 = vmatprep.subr.bf16.mxu1 %v6739_v47  ;;  %v6628_v46 = vcombine.low %v198_v33, %v206_v34  ;;  %v6630_v47 = vcombine.low %v199_v35, %v207_v37  ;;  %v326_v35 = vld [vmem:[#allocation5 + $0x590] sm:$0xff]  ;;  %v327_v37 = vld [vmem:[#allocation5 + $0x598] sm:$0xff] }
  0xa9   :  { %1718 = vmatpush2.bf16.msra.mxu0 %v6736_v52  ;;  %1759 = vmatpush2.bf16.msra.mxu1 %v6738_v54  ;;  %v6615_v52 = vcombine.high %v183_v43, %v191_v45  ;;  %v175_v54 = vld [vmem:[#allocation5 + $0xd8] sm:$0xff] }
  0xaa   :  { %1719 = vmatprep.subr.bf16.mxu0 %v6721_v55  ;;  %1760 = vmatprep.subr.bf16.mxu1 %v6723_v56  ;;  %v6612_v55 = vcombine.low %v182_v41, %v190_v42  ;;  %v6614_v56 = vcombine.low %v183_v43, %v191_v45  ;;  %v310_v43 = vld [vmem:[#allocation5 + $0x510] sm:$0xff]  ;;  %v311_v45 = vld [vmem:[#allocation5 + $0x518] sm:$0xff] }
  0xad   :  { %1720 = vmatpush2.bf16.msra.mxu0 %v6720_v62  ;;  %1761 = vmatpush2.bf16.msra.mxu1 %v6722_v63  ;;  %v6599_v62 = vcombine.high %v167_v51, %v175_v54  ;;  %v159_v63 = vld [vmem:[#allocation5 + $0x58] sm:$0xff] }
  0xae   :  { %1721 = vmatprep.subr.bf16.mxu0 %v6705_v0  ;;  %1762 = vmatprep.subr.bf16.mxu1 %v6707_v1  ;;  %v6596_v0 = vcombine.low %v166_v49, %v174_v50  ;;  %v6598_v1 = vcombine.low %v167_v51, %v175_v54  ;;  %v294_v51 = vld [vmem:[#allocation5 + $0x490] sm:$0xff]  ;;  %v295_v54 = vld [vmem:[#allocation5 + $0x498] sm:$0xff] }
  0xb1   :  { %1722 = vmatpush2.bf16.msra.mxu0 %v6704_v6  ;;  %1763 = vmatpush2.bf16.msra.mxu1 %v6706_v7  ;;  %v6583_v6 = vcombine.high %v151_v61, %v159_v63  ;;  %v399_v7 = vld [vmem:[#allocation5 + $0x7d8] sm:$0xff] }
  0xb2   :  { %1773 = vmatprep.subr.bf16.mxu0 %v6693_v8  ;;  %1814 = vmatprep.subr.bf16.mxu1 %v6695_v9  ;;  %v6580_v8 = vcombine.low %v150_v59, %v158_v60  ;;  %v6582_v9 = vcombine.low %v151_v61, %v159_v63  ;;  %v6822_v18 = vcombine.low %v391_v5, %v399_v7  ;;  %v278_v61 = vld [vmem:[#allocation5 + $0x410] sm:$0xff]  ;;  %v279_v63 = vld [vmem:[#allocation5 + $0x418] sm:$0xff] }
  0xb4   :  { %1724 = vmatmul.mubr.bf16.vlgmr.msra.gmra.mxu0 %v8611_v12  ;;  %1765 = vmatmul.mubr.bf16.vlgmr.msra.gmra.mxu1 %v8611_v12 }
  0xb5   :  { %1774 = vmatpush1.bf16.msra.mxu0 %v6692_v15  ;;  %1815 = vmatpush1.bf16.msra.mxu1 %v6694_v16  ;;  %v6823_v15 = vcombine.high %v391_v5, %v399_v7  ;;  %v383_v16 = vld [vmem:[#allocation5 + $0x758] sm:$0xff]  ;;  %v264_v5 = vld [vmem:[#allocation5 + $0x3a0] sm:$0xff]  ;;  %v265_v7 = vld [vmem:[#allocation5 + $0x3a8] sm:$0xff] }
  0xb6   :  { %1775 = vmatprep.subr.bf16.mxu0 %v6677_v17  ;;  %1816 = vmatprep.subr.bf16.mxu1 %v6679_v21  ;;  %v6820_v17 = vcombine.low %v390_v3, %v398_v4  ;;  %v366_v21 = vld [vmem:[#allocation5 + $0x6d0] sm:$0xff]  ;;  %v6806_v25 = vcombine.low %v375_v14, %v383_v16 }
  0xb7   :  { %1805 = vmatprep.mubr.bf16.mxu0 %v8605_v57  ;;  %1846 = vmatprep.mubr.bf16.mxu1 %v8605_v57  ;;  %v6789_v26 = vcombine.high %v358_v20, %v366_v21 }
  0xb9   :  { %1776 = vmatpush1.bf16.msra.mxu0 %v6676_v53  ;;  %1817 = vmatpush1.bf16.msra.mxu1 %v6678_v23  ;;  %v6807_v53 = vcombine.high %v375_v14, %v383_v16  ;;  %v367_v23 = vld [vmem:[#allocation5 + $0x6d8] sm:$0xff]  ;;  %v248_v14 = vld [vmem:[#allocation5 + $0x320] sm:$0xff]  ;;  %v249_v16 = vld [vmem:[#allocation5 + $0x328] sm:$0xff] }
  0xba   :  { %1777 = vmatprep.subr.bf16.mxu0 %v6661_v24  ;;  %1818 = vmatprep.subr.bf16.mxu1 %v6663_v28  ;;  %v6804_v24 = vcombine.low %v374_v11, %v382_v13  ;;  %v350_v28 = vld [vmem:[#allocation5 + $0x650] sm:$0xff]  ;;  %v6790_v33 = vcombine.low %v359_v22, %v367_v23 }
  0xbb   :  { %v6773_v34 = vcombine.high %v342_v27, %v350_v28 }
  0xbd   :  { %1778 = vmatpush1.bf16.msra.mxu0 %v6660_v30  ;;  %1819 = vmatpush1.bf16.msra.mxu1 %v6662_v31  ;;  %v6791_v30 = vcombine.high %v359_v22, %v367_v23  ;;  %v351_v31 = vld [vmem:[#allocation5 + $0x658] sm:$0xff]  ;;  %v240_v23 = vld [vmem:[#allocation5 + $0x2e0] sm:$0xff] }
  0xbe   :  { %1779 = vmatprep.subr.bf16.mxu0 %v6645_v32  ;;  %1820 = vmatprep.subr.bf16.mxu1 %v6647_v36  ;;  %v6788_v32 = vcombine.low %v358_v20, %v366_v21  ;;  %v334_v36 = vld [vmem:[#allocation5 + $0x5d0] sm:$0xff]  ;;  %v6774_v41 = vcombine.low %v343_v29, %v351_v31 }
  0xbf   :  { %v6757_v42 = vcombine.high %v326_v35, %v334_v36 }
  0xc1   :  { %1780 = vmatpush1.bf16.msra.mxu0 %v6644_v38  ;;  %1821 = vmatpush1.bf16.msra.mxu1 %v6646_v39  ;;  %v6775_v38 = vcombine.high %v343_v29, %v351_v31  ;;  %v335_v39 = vld [vmem:[#allocation5 + $0x5d8] sm:$0xff]  ;;  %v224_v31 = vld [vmem:[#allocation5 + $0x260] sm:$0xff] }
  0xc2   :  { %1781 = vmatprep.subr.bf16.mxu0 %v6629_v40  ;;  %1822 = vmatprep.subr.bf16.mxu1 %v6631_v44  ;;  %v6772_v40 = vcombine.low %v342_v27, %v350_v28  ;;  %v318_v44 = vld [vmem:[#allocation5 + $0x550] sm:$0xff]  ;;  %v6758_v49 = vcombine.low %v327_v37, %v335_v39 }
  0xc3   :  { %v6741_v50 = vcombine.high %v310_v43, %v318_v44 }
  0xc5   :  { %1782 = vmatpush1.bf16.msra.mxu0 %v6628_v46  ;;  %1823 = vmatpush1.bf16.msra.mxu1 %v6630_v47  ;;  %v6759_v46 = vcombine.high %v327_v37, %v335_v39  ;;  %v319_v47 = vld [vmem:[#allocation5 + $0x558] sm:$0xff]  ;;  %v208_v39 = vld [vmem:[#allocation5 + $0x1e0] sm:$0xff] }
  0xc6   :  { %1783 = vmatprep.subr.bf16.mxu0 %v6613_v48  ;;  %1824 = vmatprep.subr.bf16.mxu1 %v6615_v52  ;;  %v6756_v48 = vcombine.low %v326_v35, %v334_v36  ;;  %v302_v52 = vld [vmem:[#allocation5 + $0x4d0] sm:$0xff]  ;;  %v6742_v59 = vcombine.low %v311_v45, %v319_v47 }
  0xc7   :  { %v6725_v60 = vcombine.high %v294_v51, %v302_v52 }
  0xc9   :  { %1784 = vmatpush1.bf16.msra.mxu0 %v6612_v55  ;;  %1825 = vmatpush1.bf16.msra.mxu1 %v6614_v56  ;;  %v6743_v55 = vcombine.high %v311_v45, %v319_v47  ;;  %v303_v56 = vld [vmem:[#allocation5 + $0x4d8] sm:$0xff]  ;;  %v192_v47 = vld [vmem:[#allocation5 + $0x160] sm:$0xff] }
  0xca   :  { %1785 = vmatprep.subr.bf16.mxu0 %v6597_v58  ;;  %1826 = vmatprep.subr.bf16.mxu1 %v6599_v62  ;;  %v6740_v58 = vcombine.low %v310_v43, %v318_v44  ;;  %v286_v62 = vld [vmem:[#allocation5 + $0x450] sm:$0xff]  ;;  %v6726_v3 = vcombine.low %v295_v54, %v303_v56 }
  0xcb   :  { %v6709_v4 = vcombine.high %v278_v61, %v286_v62 }
  0xcd   :  { %1786 = vmatpush1.bf16.msra.mxu0 %v6596_v0  ;;  %1827 = vmatpush1.bf16.msra.mxu1 %v6598_v1  ;;  %v6727_v0 = vcombine.high %v295_v54, %v303_v56  ;;  %v287_v1 = vld [vmem:[#allocation5 + $0x458] sm:$0xff]  ;;  %v168_v54 = vld [vmem:[#allocation5 + $0xa0] sm:$0xff]  ;;  %v169_v56 = vld [vmem:[#allocation5 + $0xa8] sm:$0xff] }
  0xce   :  { %1787 = vmatprep.subr.bf16.mxu0 %v6581_v2  ;;  %1828 = vmatprep.subr.bf16.mxu1 %v6583_v6  ;;  %v6724_v2 = vcombine.low %v294_v51, %v302_v52  ;;  %v272_v6 = vld [vmem:[#allocation5 + $0x3e0] sm:$0xff]  ;;  %v6710_v11 = vcombine.low %v279_v63, %v287_v1 }
  0xcf   :  { %v6697_v13 = vcombine.high %v264_v5, %v272_v6 }
  0xd1   :  { %1788 = vmatpush1.bf16.msra.mxu0 %v6580_v8  ;;  %1829 = vmatpush1.bf16.msra.mxu1 %v6582_v9  ;;  %v6711_v8 = vcombine.high %v279_v63, %v287_v1  ;;  %v273_v9 = vld [vmem:[#allocation5 + $0x3e8] sm:$0xff]  ;;  %v152_v63 = vld [vmem:[#allocation5 + $0x20] sm:$0xff] }
  0xd2   :  { %1789 = vmatprep.subr.bf16.mxu0 %v6821_v10  ;;  %1830 = vmatprep.subr.bf16.mxu1 %v6823_v15  ;;  %v6708_v10 = vcombine.low %v278_v61, %v286_v62  ;;  %v256_v15 = vld [vmem:[#allocation5 + $0x360] sm:$0xff]  ;;  %v6698_v20 = vcombine.low %v265_v7, %v273_v9  ;;  %v153_v1 = vld [vmem:[#allocation5 + $0x28] sm:$0xff] }
  0xd3   :  { %v6681_v21 = vcombine.high %v248_v14, %v256_v15 }
  0xd5   :  { %1790 = vmatpush2.bf16.msra.mxu0 %v6820_v17  ;;  %1831 = vmatpush2.bf16.msra.mxu1 %v6822_v18  ;;  %v6699_v17 = vcombine.high %v265_v7, %v273_v9  ;;  %v257_v18 = vld [vmem:[#allocation5 + $0x368] sm:$0xff]  ;;  %v392_v7 = vld [vmem:[#allocation5 + $0x7a0] sm:$0xff] }
  0xd6   :  { %1791 = vmatprep.subr.bf16.mxu0 %v6805_v19  ;;  %1832 = vmatprep.subr.bf16.mxu1 %v6807_v53  ;;  %v6696_v19 = vcombine.low %v264_v5, %v272_v6  ;;  %v6683_v22 = vcombine.high %v249_v16, %v257_v18  ;;  %v232_v53 = vld [vmem:[#allocation5 + $0x2a0] sm:$0xff]  ;;  %v6682_v27 = vcombine.low %v249_v16, %v257_v18  ;;  %v393_v9 = vld [vmem:[#allocation5 + $0x7a8] sm:$0xff] }
  0xd7   :  { %v6665_v28 = vcombine.high %v232_v53, %v240_v23  ;;  %v376_v16 = vld [vmem:[#allocation5 + $0x720] sm:$0xff]  ;;  %v377_v18 = vld [vmem:[#allocation5 + $0x728] sm:$0xff] }
  0xd9   :  { %1792 = vmatpush2.bf16.msra.mxu0 %v6804_v24  ;;  %1833 = vmatpush2.bf16.msra.mxu1 %v6806_v25  ;;  %v233_v24 = vld [vmem:[#allocation5 + $0x2a8] sm:$0xff] }
  0xda   :  { %1793 = vmatprep.subr.bf16.mxu0 %v6789_v26  ;;  %1834 = vmatprep.subr.bf16.mxu1 %v6791_v30  ;;  %v241_v25 = vld [vmem:[#allocation5 + $0x2e8] sm:$0xff]  ;;  %v6680_v26 = vcombine.low %v248_v14, %v256_v15  ;;  %v216_v30 = vld [vmem:[#allocation5 + $0x220] sm:$0xff] }
  0xdb   :  { %v6667_v29 = vcombine.high %v233_v24, %v241_v25  ;;  %v6666_v35 = vcombine.low %v233_v24, %v241_v25  ;;  %v6649_v36 = vcombine.high %v216_v30, %v224_v31  ;;  %v368_v24 = vld [vmem:[#allocation5 + $0x6e0] sm:$0xff]  ;;  %v361_v25 = vld [vmem:[#allocation5 + $0x6a8] sm:$0xff] }
  0xdd   :  { %1794 = vmatpush2.bf16.msra.mxu0 %v6788_v32  ;;  %1835 = vmatpush2.bf16.msra.mxu1 %v6790_v33  ;;  %v217_v32 = vld [vmem:[#allocation5 + $0x228] sm:$0xff] }
  0xde   :  { %1795 = vmatprep.subr.bf16.mxu0 %v6773_v34  ;;  %1836 = vmatprep.subr.bf16.mxu1 %v6775_v38  ;;  %v225_v33 = vld [vmem:[#allocation5 + $0x268] sm:$0xff]  ;;  %v6664_v34 = vcombine.low %v232_v53, %v240_v23  ;;  %v200_v38 = vld [vmem:[#allocation5 + $0x1a0] sm:$0xff] }
  0xdf   :  { %v6651_v37 = vcombine.high %v217_v32, %v225_v33  ;;  %v6650_v43 = vcombine.low %v217_v32, %v225_v33  ;;  %v6633_v44 = vcombine.high %v200_v38, %v208_v39  ;;  %v360_v23 = vld [vmem:[#allocation5 + $0x6a0] sm:$0xff]  ;;  %v345_v33 = vld [vmem:[#allocation5 + $0x628] sm:$0xff] }
  0xe0   :  { %v352_v32 = vld [vmem:[#allocation5 + $0x660] sm:$0xff] }
  0xe1   :  { %1796 = vmatpush2.bf16.msra.mxu0 %v6772_v40  ;;  %1837 = vmatpush2.bf16.msra.mxu1 %v6774_v41  ;;  %v201_v40 = vld [vmem:[#allocation5 + $0x1a8] sm:$0xff] }
  0xe2   :  { %1797 = vmatprep.subr.bf16.mxu0 %v6757_v42  ;;  %1838 = vmatprep.subr.bf16.mxu1 %v6759_v46  ;;  %v209_v41 = vld [vmem:[#allocation5 + $0x1e8] sm:$0xff]  ;;  %v6648_v42 = vcombine.low %v216_v30, %v224_v31  ;;  %v184_v46 = vld [vmem:[#allocation5 + $0x120] sm:$0xff]  ;;  %v6793_v30 = vcombine.high %v360_v23, %v368_v24 }
  0xe3   :  { %v6635_v45 = vcombine.high %v201_v40, %v209_v41  ;;  %v6634_v51 = vcombine.low %v201_v40, %v209_v41  ;;  %v6617_v52 = vcombine.high %v184_v46, %v192_v47  ;;  %v344_v31 = vld [vmem:[#allocation5 + $0x620] sm:$0xff]  ;;  %v329_v41 = vld [vmem:[#allocation5 + $0x5a8] sm:$0xff] }
  0xe4   :  { %v336_v40 = vld [vmem:[#allocation5 + $0x5e0] sm:$0xff] }
  0xe5   :  { %1798 = vmatpush2.bf16.msra.mxu0 %v6756_v48  ;;  %1839 = vmatpush2.bf16.msra.mxu1 %v6758_v49  ;;  %v185_v48 = vld [vmem:[#allocation5 + $0x128] sm:$0xff] }
  0xe6   :  { %1799 = vmatprep.subr.bf16.mxu0 %v6741_v50  ;;  %1840 = vmatprep.subr.bf16.mxu1 %v6743_v55  ;;  %v193_v49 = vld [vmem:[#allocation5 + $0x168] sm:$0xff]  ;;  %v6632_v50 = vcombine.low %v200_v38, %v208_v39  ;;  %v176_v55 = vld [vmem:[#allocation5 + $0xe0] sm:$0xff]  ;;  %v6777_v38 = vcombine.high %v344_v31, %v352_v32 }
  0xe7   :  { %v6618_v61 = vcombine.low %v185_v48, %v193_v49  ;;  %v6601_v62 = vcombine.high %v168_v54, %v176_v55  ;;  %v328_v39 = vld [vmem:[#allocation5 + $0x5a0] sm:$0xff] }
  0xe9   :  { %1800 = vmatpush2.bf16.msra.mxu0 %v6740_v58  ;;  %1841 = vmatpush2.bf16.msra.mxu1 %v6742_v59  ;;  %v6619_v58 = vcombine.high %v185_v48, %v193_v49  ;;  %v177_v59 = vld [vmem:[#allocation5 + $0xe8] sm:$0xff]  ;;  %v320_v48 = vld [vmem:[#allocation5 + $0x560] sm:$0xff] }
  0xea   :  { %1801 = vmatprep.subr.bf16.mxu0 %v6725_v60  ;;  %1842 = vmatprep.subr.bf16.mxu1 %v6727_v0  ;;  %v6616_v60 = vcombine.low %v184_v46, %v192_v47  ;;  %v160_v0 = vld [vmem:[#allocation5 + $0x60] sm:$0xff]  ;;  %v6602_v5 = vcombine.low %v169_v56, %v177_v59  ;;  %v6761_v46 = vcombine.high %v328_v39, %v336_v40  ;;  %v313_v49 = vld [vmem:[#allocation5 + $0x528] sm:$0xff] }
  0xeb   :  { %v6585_v6 = vcombine.high %v152_v63, %v160_v0  ;;  %v312_v47 = vld [vmem:[#allocation5 + $0x520] sm:$0xff] }
  0xed   :  { %1802 = vmatpush2.bf16.msra.mxu0 %v6724_v2  ;;  %1843 = vmatpush2.bf16.msra.mxu1 %v6726_v3  ;;  %v6603_v2 = vcombine.high %v169_v56, %v177_v59  ;;  %v161_v3 = vld [vmem:[#allocation5 + $0x68] sm:$0xff]  ;;  %v296_v56 = vld [vmem:[#allocation5 + $0x4a0] sm:$0xff] }
  0xee   :  { %1803 = vmatprep.subr.bf16.mxu0 %v6709_v4  ;;  %1844 = vmatprep.subr.bf16.mxu1 %v6711_v8  ;;  %v6600_v4 = vcombine.low %v168_v54, %v176_v55  ;;  %v400_v8 = vld [vmem:[#allocation5 + $0x7e0] sm:$0xff]  ;;  %v6586_v14 = vcombine.low %v153_v1, %v161_v3  ;;  %v6745_v55 = vcombine.high %v312_v47, %v320_v48  ;;  %v297_v59 = vld [vmem:[#allocation5 + $0x4a8] sm:$0xff] }
  0xef   :  { %v6825_v15 = vcombine.high %v392_v7, %v400_v8 }
  0xf1   :  { %1804 = vmatpush2.bf16.msra.mxu0 %v6708_v10  ;;  %1845 = vmatpush2.bf16.msra.mxu1 %v6710_v11  ;;  %v6587_v10 = vcombine.high %v153_v1, %v161_v3  ;;  %v401_v11 = vld [vmem:[#allocation5 + $0x7e8] sm:$0xff]  ;;  %v280_v1 = vld [vmem:[#allocation5 + $0x420] sm:$0xff] }
  0xf2   :  { %1855 = vmatprep.subr.bf16.mxu0 %v6697_v13  ;;  %1896 = vmatprep.subr.bf16.mxu1 %v6699_v17  ;;  %v6584_v13 = vcombine.low %v152_v63, %v160_v0  ;;  %v384_v17 = vld [vmem:[#allocation5 + $0x760] sm:$0xff]  ;;  %v281_v3 = vld [vmem:[#allocation5 + $0x428] sm:$0xff] }
  0xf3   :  { %v6809_v53 = vcombine.high %v376_v16, %v384_v17 }
  0xf4   :  { %1806 = vmatmul.mubr.bf16.vlgmr.msra.gmra.mxu0 %v8611_v12  ;;  %1847 = vmatmul.mubr.bf16.vlgmr.msra.gmra.mxu1 %v8611_v12 }
  0xf5   :  { %1856 = vmatpush1.bf16.msra.mxu0 %v6696_v19  ;;  %1897 = vmatpush1.bf16.msra.mxu1 %v6698_v20  ;;  %v6827_v19 = vcombine.high %v393_v9, %v401_v11  ;;  %v385_v20 = vld [vmem:[#allocation5 + $0x768] sm:$0xff] }
  0xf6   :  { %1857 = vmatprep.subr.bf16.mxu0 %v6681_v21  ;;  %1898 = vmatprep.subr.bf16.mxu1 %v6683_v22  ;;  %v6824_v21 = vcombine.low %v392_v7, %v400_v8  ;;  %v6826_v22 = vcombine.low %v393_v9, %v401_v11  ;;  %v266_v9 = vld [vmem:[#allocation5 + $0x3b0] sm:$0xff]  ;;  %v267_v11 = vld [vmem:[#allocation5 + $0x3b8] sm:$0xff] }
  0xf7   :  { %1887 = vmatprep.mubr.bf16.mxu0 %v8605_v57  ;;  %1928 = vmatprep.mubr.bf16.mxu1 %v8605_v57 }
  0xf9   :  { %1858 = vmatpush1.bf16.msra.mxu0 %v6680_v26  ;;  %1899 = vmatpush1.bf16.msra.mxu1 %v6682_v27  ;;  %v6811_v26 = vcombine.high %v377_v18, %v385_v20  ;;  %v369_v27 = vld [vmem:[#allocation5 + $0x6e8] sm:$0xff] }
  0xfa   :  { %1859 = vmatprep.subr.bf16.mxu0 %v6665_v28  ;;  %1900 = vmatprep.subr.bf16.mxu1 %v6667_v29  ;;  %v6808_v28 = vcombine.low %v376_v16, %v384_v17  ;;  %v6810_v29 = vcombine.low %v377_v18, %v385_v20  ;;  %v250_v18 = vld [vmem:[#allocation5 + $0x330] sm:$0xff]  ;;  %v251_v20 = vld [vmem:[#allocation5 + $0x338] sm:$0xff] }
  0xfd   :  { %1860 = vmatpush1.bf16.msra.mxu0 %v6664_v34  ;;  %1901 = vmatpush1.bf16.msra.mxu1 %v6666_v35  ;;  %v6795_v34 = vcombine.high %v361_v25, %v369_v27  ;;  %v353_v35 = vld [vmem:[#allocation5 + $0x668] sm:$0xff] }
  0xfe   :  { %1861 = vmatprep.subr.bf16.mxu0 %v6649_v36  ;;  %1902 = vmatprep.subr.bf16.mxu1 %v6651_v37  ;;  %v6792_v36 = vcombine.low %v360_v23, %v368_v24  ;;  %v6794_v37 = vcombine.low %v361_v25, %v369_v27  ;;  %v242_v27 = vld [vmem:[#allocation5 + $0x2f0] sm:$0xff] }
 0x101   :  { %1862 = vmatpush1.bf16.msra.mxu0 %v6648_v42  ;;  %1903 = vmatpush1.bf16.msra.mxu1 %v6650_v43  ;;  %v6779_v42 = vcombine.high %v345_v33, %v353_v35  ;;  %v337_v43 = vld [vmem:[#allocation5 + $0x5e8] sm:$0xff] }
 0x102   :  { %1863 = vmatprep.subr.bf16.mxu0 %v6633_v44  ;;  %1904 = vmatprep.subr.bf16.mxu1 %v6635_v45  ;;  %v6776_v44 = vcombine.low %v344_v31, %v352_v32  ;;  %v6778_v45 = vcombine.low %v345_v33, %v353_v35  ;;  %v6762_v54 = vcombine.low %v329_v41, %v337_v43  ;;  %v226_v35 = vld [vmem:[#allocation5 + $0x270] sm:$0xff] }
 0x105   :  { %1864 = vmatpush1.bf16.msra.mxu0 %v6632_v50  ;;  %1905 = vmatpush1.bf16.msra.mxu1 %v6634_v51  ;;  %v6763_v50 = vcombine.high %v329_v41, %v337_v43  ;;  %v321_v51 = vld [vmem:[#allocation5 + $0x568] sm:$0xff]  ;;  %v210_v43 = vld [vmem:[#allocation5 + $0x1f0] sm:$0xff] }
 0x106   :  { %1865 = vmatprep.subr.bf16.mxu0 %v6617_v52  ;;  %1906 = vmatprep.subr.bf16.mxu1 %v6619_v58  ;;  %v6760_v52 = vcombine.low %v328_v39, %v336_v40  ;;  %v304_v58 = vld [vmem:[#allocation5 + $0x4e0] sm:$0xff]  ;;  %v6746_v63 = vcombine.low %v313_v49, %v321_v51 }
 0x107   :  { %v6729_v0 = vcombine.high %v296_v56, %v304_v58 }
 0x109   :  { %1866 = vmatpush1.bf16.msra.mxu0 %v6616_v60  ;;  %1907 = vmatpush1.bf16.msra.mxu1 %v6618_v61  ;;  %v6747_v60 = vcombine.high %v313_v49, %v321_v51  ;;  %v305_v61 = vld [vmem:[#allocation5 + $0x4e8] sm:$0xff]  ;;  %v186_v49 = vld [vmem:[#allocation5 + $0x130] sm:$0xff]  ;;  %v187_v51 = vld [vmem:[#allocation5 + $0x138] sm:$0xff] }
 0x10a   :  { %1867 = vmatprep.subr.bf16.mxu0 %v6601_v62  ;;  %1908 = vmatprep.subr.bf16.mxu1 %v6603_v2  ;;  %v6744_v62 = vcombine.low %v312_v47, %v320_v48  ;;  %v288_v2 = vld [vmem:[#allocation5 + $0x460] sm:$0xff]  ;;  %v6730_v7 = vcombine.low %v297_v59, %v305_v61 }
 0x10b   :  { %v6713_v8 = vcombine.high %v280_v1, %v288_v2 }
 0x10d   :  { %1868 = vmatpush1.bf16.msra.mxu0 %v6600_v4  ;;  %1909 = vmatpush1.bf16.msra.mxu1 %v6602_v5  ;;  %v6731_v4 = vcombine.high %v297_v59, %v305_v61  ;;  %v289_v5 = vld [vmem:[#allocation5 + $0x468] sm:$0xff]  ;;  %v178_v59 = vld [vmem:[#allocation5 + $0xf0] sm:$0xff] }
 0x10e   :  { %1869 = vmatprep.subr.bf16.mxu0 %v6585_v6  ;;  %1910 = vmatprep.subr.bf16.mxu1 %v6587_v10  ;;  %v6728_v6 = vcombine.low %v296_v56, %v304_v58  ;;  %v274_v10 = vld [vmem:[#allocation5 + $0x3f0] sm:$0xff]  ;;  %v6714_v16 = vcombine.low %v281_v3, %v289_v5 }
 0x10f   :  { %v6701_v17 = vcombine.high %v266_v9, %v274_v10  ;;  %v170_v58 = vld [vmem:[#allocation5 + $0xb0] sm:$0xff] }
 0x111   :  { %1870 = vmatpush1.bf16.msra.mxu0 %v6584_v13  ;;  %1911 = vmatpush1.bf16.msra.mxu1 %v6586_v14  ;;  %v6715_v13 = vcombine.high %v281_v3, %v289_v5  ;;  %v275_v14 = vld [vmem:[#allocation5 + $0x3f8] sm:$0xff]  ;;  %v162_v3 = vld [vmem:[#allocation5 + $0x70] sm:$0xff] }
 0x112   :  { %1871 = vmatprep.subr.bf16.mxu0 %v6825_v15  ;;  %1912 = vmatprep.subr.bf16.mxu1 %v6827_v19  ;;  %v6712_v15 = vcombine.low %v280_v1, %v288_v2  ;;  %v258_v19 = vld [vmem:[#allocation5 + $0x370] sm:$0xff]  ;;  %v6702_v23 = vcombine.low %v267_v11, %v275_v14  ;;  %v6605_v1 = vcombine.high %v170_v58, %v178_v59 }
 0x113   :  { %v6685_v24 = vcombine.high %v250_v18, %v258_v19  ;;  %v154_v2 = vld [vmem:[#allocation5 + $0x30] sm:$0xff] }
 0x115   :  { %1872 = vmatpush2.bf16.msra.mxu0 %v6824_v21  ;;  %1913 = vmatpush2.bf16.msra.mxu1 %v6826_v22  ;;  %v6703_v21 = vcombine.high %v267_v11, %v275_v14  ;;  %v259_v22 = vld [vmem:[#allocation5 + $0x378] sm:$0xff]  ;;  %v402_v11 = vld [vmem:[#allocation5 + $0x7f0] sm:$0xff] }
 0x116   :  { %1873 = vmatprep.subr.bf16.mxu0 %v6809_v53  ;;  %1914 = vmatprep.subr.bf16.mxu1 %v6811_v26  ;;  %v6700_v53 = vcombine.low %v266_v9, %v274_v10  ;;  %v6687_v25 = vcombine.high %v251_v20, %v259_v22  ;;  %v234_v26 = vld [vmem:[#allocation5 + $0x2b0] sm:$0xff]  ;;  %v6686_v31 = vcombine.low %v251_v20, %v259_v22 }
 0x117   :  { %v6669_v32 = vcombine.high %v234_v26, %v242_v27  ;;  %v6589_v9 = vcombine.high %v154_v2, %v162_v3  ;;  %v394_v10 = vld [vmem:[#allocation5 + $0x7b0] sm:$0xff] }
 0x118   :  { %v386_v20 = vld [vmem:[#allocation5 + $0x770] sm:$0xff] }
 0x119   :  { %1874 = vmatpush2.bf16.msra.mxu0 %v6808_v28  ;;  %1915 = vmatpush2.bf16.msra.mxu1 %v6810_v29  ;;  %v235_v28 = vld [vmem:[#allocation5 + $0x2b8] sm:$0xff] }
 0x11a   :  { %1875 = vmatprep.subr.bf16.mxu0 %v6793_v30  ;;  %1916 = vmatprep.subr.bf16.mxu1 %v6795_v34  ;;  %v243_v29 = vld [vmem:[#allocation5 + $0x2f8] sm:$0xff]  ;;  %v6684_v30 = vcombine.low %v250_v18, %v258_v19  ;;  %v218_v34 = vld [vmem:[#allocation5 + $0x230] sm:$0xff]  ;;  %v6829_v18 = vcombine.high %v394_v10, %v402_v11 }
 0x11b   :  { %v6671_v33 = vcombine.high %v235_v28, %v243_v29  ;;  %v6670_v39 = vcombine.low %v235_v28, %v243_v29  ;;  %v6653_v40 = vcombine.high %v218_v34, %v226_v35  ;;  %v378_v19 = vld [vmem:[#allocation5 + $0x730] sm:$0xff]  ;;  %v363_v28 = vld [vmem:[#allocation5 + $0x6b8] sm:$0xff] }
 0x11d   :  { %1876 = vmatpush2.bf16.msra.mxu0 %v6792_v36  ;;  %1917 = vmatpush2.bf16.msra.mxu1 %v6794_v37  ;;  %v219_v36 = vld [vmem:[#allocation5 + $0x238] sm:$0xff] }
 0x11e   :  { %1877 = vmatprep.subr.bf16.mxu0 %v6777_v38  ;;  %1918 = vmatprep.subr.bf16.mxu1 %v6779_v42  ;;  %v227_v37 = vld [vmem:[#allocation5 + $0x278] sm:$0xff]  ;;  %v6668_v38 = vcombine.low %v234_v26, %v242_v27  ;;  %v202_v42 = vld [vmem:[#allocation5 + $0x1b0] sm:$0xff] }
 0x11f   :  { %v6655_v41 = vcombine.high %v219_v36, %v227_v37  ;;  %v6654_v47 = vcombine.low %v219_v36, %v227_v37  ;;  %v6637_v48 = vcombine.high %v202_v42, %v210_v43  ;;  %v362_v26 = vld [vmem:[#allocation5 + $0x6b0] sm:$0xff]  ;;  %v347_v36 = vld [vmem:[#allocation5 + $0x638] sm:$0xff]  ;;  %v8515_v37 = vmov 1966171168  }
 0x120   :  { %v370_v27 = vld [vmem:[#allocation5 + $0x6f0] sm:$0xff] }
 0x121   :  { %1878 = vmatpush2.bf16.msra.mxu0 %v6776_v44  ;;  %1919 = vmatpush2.bf16.msra.mxu1 %v6778_v45  ;;  %v203_v44 = vld [vmem:[#allocation5 + $0x1b8] sm:$0xff] }
 0x122   :  { %1879 = vmatprep.subr.bf16.mxu0 %v6761_v46  ;;  %1920 = vmatprep.subr.bf16.mxu1 %v6763_v50  ;;  %v211_v45 = vld [vmem:[#allocation5 + $0x1f8] sm:$0xff]  ;;  %v6652_v46 = vcombine.low %v218_v34, %v226_v35  ;;  %v194_v50 = vld [vmem:[#allocation5 + $0x170] sm:$0xff] }
 0x123   :  { %v6621_v56 = vcombine.high %v186_v49, %v194_v50  ;;  %v346_v34 = vld [vmem:[#allocation5 + $0x630] sm:$0xff] }
 0x124   :  { %v354_v35 = vld [vmem:[#allocation5 + $0x670] sm:$0xff] }
 0x125   :  { %1880 = vmatpush2.bf16.msra.mxu0 %v6760_v52  ;;  %1921 = vmatpush2.bf16.msra.mxu1 %v6762_v54  ;;  %v195_v52 = vld [vmem:[#allocation5 + $0x178] sm:$0xff]  ;;  %v6636_v54 = vcombine.low %v202_v42, %v210_v43  ;;  %v6796_v42 = vcombine.low %v362_v26, %v370_v27 }
 0x126   :  { %1881 = vmatprep.subr.bf16.mxu0 %v6745_v55  ;;  %1922 = vmatprep.subr.bf16.mxu1 %v6747_v60  ;;  %v6638_v55 = vcombine.low %v203_v44, %v211_v45  ;;  %v171_v60 = vld [vmem:[#allocation5 + $0xb8] sm:$0xff]  ;;  %v6623_v61 = vcombine.high %v187_v51, %v195_v52 }
 0x129   :  { %1882 = vmatpush2.bf16.msra.mxu0 %v6744_v62  ;;  %1923 = vmatpush2.bf16.msra.mxu1 %v6746_v63  ;;  %v179_v62 = vld [vmem:[#allocation5 + $0xf8] sm:$0xff]  ;;  %v6620_v63 = vcombine.low %v186_v49, %v194_v50 }
 0x12a   :  { %1883 = vmatprep.subr.bf16.mxu0 %v6729_v0  ;;  %1924 = vmatprep.subr.bf16.mxu1 %v6731_v4  ;;  %v6622_v0 = vcombine.low %v187_v51, %v195_v52  ;;  %v155_v4 = vld [vmem:[#allocation5 + $0x38] sm:$0xff]  ;;  %v6607_v5 = vcombine.high %v171_v60, %v179_v62  ;;  %v6780_v51 = vcombine.low %v346_v34, %v354_v35  ;;  %v314_v52 = vld [vmem:[#allocation5 + $0x530] sm:$0xff] }
 0x12b   :  { %v339_v50 = vld [vmem:[#allocation5 + $0x5f8] sm:$0xff] }
 0x12d   :  { %1884 = vmatpush2.bf16.msra.mxu0 %v6728_v6  ;;  %1925 = vmatpush2.bf16.msra.mxu1 %v6730_v7  ;;  %v163_v6 = vld [vmem:[#allocation5 + $0x78] sm:$0xff]  ;;  %v6604_v7 = vcombine.low %v170_v58, %v178_v59 }
 0x12e   :  { %1885 = vmatprep.subr.bf16.mxu0 %v6713_v8  ;;  %1926 = vmatprep.subr.bf16.mxu1 %v6715_v13  ;;  %v6606_v8 = vcombine.low %v171_v60, %v179_v62  ;;  %v395_v13 = vld [vmem:[#allocation5 + $0x7b8] sm:$0xff]  ;;  %v6591_v14 = vcombine.high %v155_v4, %v163_v6  ;;  %v8630_v62 = vld [vmem:[#allocation7] sm:$0xff] }
 0x12f   :  { %v315_v58 = vld [vmem:[#allocation5 + $0x538] sm:$0xff] }
 0x130   :  { %v323_v59 = vld [vmem:[#allocation5 + $0x578] sm:$0xff] }
 0x131   :  { %1886 = vmatpush2.bf16.msra.mxu0 %v6712_v15  ;;  %1927 = vmatpush2.bf16.msra.mxu1 %v6714_v16  ;;  %v403_v15 = vld [vmem:[#allocation5 + $0x7f8] sm:$0xff]  ;;  %v6588_v16 = vcombine.low %v154_v2, %v162_v3  ;;  %v298_v2 = vld [vmem:[#allocation5 + $0x4b0] sm:$0xff] }
 0x132   :  { %1937 = vmatprep.subr.bf16.mxu0 %v6701_v17  ;;  %1978 = vmatprep.subr.bf16.mxu1 %v6703_v21  ;;  %v6590_v17 = vcombine.low %v155_v4, %v163_v6  ;;  %v379_v21 = vld [vmem:[#allocation5 + $0x738] sm:$0xff]  ;;  %v6831_v22 = vcombine.high %v395_v13, %v403_v15  ;;  %v306_v3 = vld [vmem:[#allocation5 + $0x4f0] sm:$0xff]  ;;  %v6751_v6 = vcombine.high %v315_v58, %v323_v59 }
 0x133   :  { %v299_v4 = vld [vmem:[#allocation5 + $0x4b8] sm:$0xff] }
 0x134   :  { %1888 = vmatmul.mubr.bf16.vlgmr.msra.gmra.mxu0 %v8611_v12  ;;  %1929 = vmatmul.mubr.bf16.vlgmr.msra.gmra.mxu1 %v8611_v12 }
 0x135   :  { %1938 = vmatpush1.bf16.msra.mxu0 %v6700_v53  ;;  %1979 = vmatpush1.bf16.msra.mxu1 %v6702_v23  ;;  %v387_v53 = vld [vmem:[#allocation5 + $0x778] sm:$0xff]  ;;  %v6828_v23 = vcombine.low %v394_v10, %v402_v11  ;;  %v6733_v10 = vcombine.high %v298_v2, %v306_v3  ;;  %v282_v11 = vld [vmem:[#allocation5 + $0x430] sm:$0xff] }
 0x136   :  { %1939 = vmatprep.subr.bf16.mxu0 %v6685_v24  ;;  %1980 = vmatprep.subr.bf16.mxu1 %v6687_v25  ;;  %v6830_v24 = vcombine.low %v395_v13, %v403_v15  ;;  %v6813_v25 = vcombine.high %v378_v19, %v386_v20  ;;  %v6815_v29 = vcombine.high %v379_v21, %v387_v53  ;;  %v290_v13 = vld [vmem:[#allocation5 + $0x470] sm:$0xff] }
 0x137   :  { %1969 = vmatprep.mubr.bf16.mxu0 %v8605_v57  ;;  %2010 = vmatprep.mubr.bf16.mxu1 %v8605_v57  ;;  %v6639_v57 = vcombine.high %v203_v44, %v211_v45  ;;  %v6781_v44 = vcombine.high %v346_v34, %v354_v35  ;;  %v330_v45 = vld [vmem:[#allocation5 + $0x5b0] sm:$0xff] }
 0x138   :  { %v7490_v34 = vld [vmem:[#allocation8 + $0x2c4] ss:$16 sps:$4 sm:$0xff]  }
 0x139   :  { %1940 = vmatpush1.bf16.msra.mxu0 %v6684_v30  ;;  %1981 = vmatpush1.bf16.msra.mxu1 %v6686_v31  ;;  %v371_v30 = vld [vmem:[#allocation5 + $0x6f8] sm:$0xff]  ;;  %v6812_v31 = vcombine.low %v378_v19, %v386_v20  ;;  %v6717_v20 = vcombine.high %v282_v11, %v290_v13 }
 0x13a   :  { %1941 = vmatprep.subr.bf16.mxu0 %v6669_v32  ;;  %1982 = vmatprep.subr.bf16.mxu1 %v6671_v33  ;;  %v6814_v32 = vcombine.low %v379_v21, %v387_v53  ;;  %v6797_v33 = vcombine.high %v362_v26, %v370_v27  ;;  %v6798_v43 = vcombine.low %v363_v28, %v371_v30  ;;  %v7479_v27 = vld [vmem:[#allocation8 + $0xe0] ss:$16 sps:$4 sm:$0xff]  }
 0x13b   :  { %v6716_v53 = vcombine.low %v282_v11, %v290_v13  ;;  %v7520_v11 = vld [vmem:[#allocation8 + $0x224] ss:$16 sps:$4 sm:$0xff]   ;;  %v7518_v13 = vld [vmem:[#allocation8 + $0x220] ss:$16 sps:$4 sm:$0xff]  }
 0x13d   :  { %1942 = vmatpush1.bf16.msra.mxu0 %v6668_v38  ;;  %1983 = vmatpush1.bf16.msra.mxu1 %v6670_v39  ;;  %v2041_v38 = vunpack.c.l.s4 %v8515_v37  ;;  %v2043_v39 = vlaneseq  ;;  %v7493_v37 = vld [vmem:[#allocation8 + $0xa4] ss:$16 sps:$4 sm:$0xff]  }
 0x13e   :  { %1943 = vmatprep.subr.bf16.mxu0 %v6653_v40  ;;  %1984 = vmatprep.subr.bf16.mxu1 %v6655_v41  ;;  %v6799_v40 = vcombine.high %v363_v28, %v371_v30  ;;  %v355_v41 = vld [vmem:[#allocation5 + $0x678] sm:$0xff]  ;;  %v7482_v28 = vld [vmem:[#allocation8 + $0x2e0] ss:$16 sps:$4 sm:$0xff]  }
 0x13f   :  { %v6783_v49 = vcombine.high %v347_v36, %v355_v41 }
 0x141   :  { %1944 = vmatpush1.bf16.msra.mxu0 %v6652_v46  ;;  %1985 = vmatpush1.bf16.msra.mxu1 %v6654_v47  ;;  %v338_v46 = vld [vmem:[#allocation5 + $0x5f0] sm:$0xff]  ;;  %v331_v47 = vld [vmem:[#allocation5 + $0x5b8] sm:$0xff] }
 0x142   :  { %1945 = vmatprep.subr.bf16.mxu0 %v6637_v48  ;;  %1986 = vmatprep.subr.bf16.mxu1 %v6639_v57  ;;  %v2042_v48 = vunpack.c.0.s8 %v2041_v38  ;;  %v8625_v57 = vshrl.u32 %v2043_v39, 7 }
 0x144   :  { %v8628_v60 = vsub.s32 %v2042_v48, %v8625_v57  ;;  %v7494_v48 = vld [vmem:[#allocation8 + $0x2a0] ss:$16 sps:$4 sm:$0xff]  }
 0x145   :  { %1946 = vmatpush1.bf16.msra.mxu0 %v6636_v54  ;;  %1987 = vmatpush1.bf16.msra.mxu1 %v6638_v55  ;;  %v6782_v54 = vcombine.low %v347_v36, %v355_v41  ;;  %v6765_v55 = vcombine.high %v330_v45, %v338_v46  ;;  %v7488_v36 = vld [vmem:[#allocation8 + $0x2c0] ss:$16 sps:$4 sm:$0xff]  }
 0x146   :  { %1947 = vmatprep.subr.bf16.mxu0 %v6621_v56  ;;  %1988 = vmatprep.subr.bf16.mxu1 %v6623_v61  ;;  %v322_v56 = vld [vmem:[#allocation5 + $0x570] sm:$0xff]  ;;  %v6767_v61 = vcombine.high %v331_v47, %v339_v50 }
 0x149   :  { %1948 = vmatpush1.bf16.msra.mxu0 %v6620_v63  ;;  %1989 = vmatpush1.bf16.msra.mxu1 %v6622_v0  ;;  %v6764_v63 = vcombine.low %v330_v45, %v338_v46  ;;  %v6766_v0 = vcombine.low %v331_v47, %v339_v50  ;;  %v7496_v45 = vld [vmem:[#allocation8 + $0x2a4] ss:$16 sps:$4 sm:$0xff]  }
 0x14a   :  { %1949 = vmatprep.subr.bf16.mxu0 %v6605_v1  ;;  %1990 = vmatprep.subr.bf16.mxu1 %v6607_v5  ;;  %v6749_v1 = vcombine.high %v314_v52, %v322_v56  ;;  %v8634_v5 = vrot.slane %v8630_v62, %v8628_v60 }
 0x14c   :  { %v2054_v15 = vcombine.high %v8634_v5, %v8634_v5 }
 0x14d   :  { %1950 = vmatpush1.bf16.msra.mxu0 %v6604_v7  ;;  %1991 = vmatpush1.bf16.msra.mxu1 %v6606_v8  ;;  %v307_v7 = vld [vmem:[#allocation5 + $0x4f8] sm:$0xff]  ;;  %v6748_v8 = vcombine.low %v314_v52, %v322_v56  ;;  %v7502_v56 = vld [vmem:[#allocation8 + $0x284] ss:$16 sps:$4 sm:$0xff]  }
 0x14e   :  { %1951 = vmatprep.subr.bf16.mxu0 %v6589_v9  ;;  %1992 = vmatprep.subr.bf16.mxu1 %v6591_v14  ;;  %v6750_v9 = vcombine.low %v315_v58, %v323_v59  ;;  %v283_v14 = vld [vmem:[#allocation5 + $0x438] sm:$0xff]  ;;  %v6734_v19 = vcombine.low %v299_v4, %v307_v7  ;;  %v2076_v21 = vrot.slane %v2054_v15, %v8628_v60  ;;  %v7500_v59 = vld [vmem:[#allocation8 + $0x280] ss:$16 sps:$4 sm:$0xff]  }
 0x14f   :  { %v7521_v15 = vld [vmem:[#allocation8] ss:$16 sps:$4 sm:$0xff]  }
 0x150   :  { %v2086_v26 = vcombine.high %v2076_v21, %v2076_v21  ;;  %v2145_v30 = vpack.i.b16 %v2076_v21, %v2076_v21  ;;  %v7530_v21 = vld [vmem:[#allocation8 + $0x3e0] ss:$16 sps:$4 sm:$0xff]  }
 0x151   :  { %1952 = vmatpush1.bf16.msra.mxu0 %v6588_v16  ;;  %1993 = vmatpush1.bf16.msra.mxu1 %v6590_v17  ;;  %v6735_v16 = vcombine.high %v299_v4, %v307_v7  ;;  %v291_v17 = vld [vmem:[#allocation5 + $0x478] sm:$0xff]  ;;  %v7511_v4 = vld [vmem:[#allocation8 + $0x44] ss:$16 sps:$4 sm:$0xff]  }
 0x152   :  { %1953 = vmatprep.subr.bf16.mxu0 %v6829_v18  ;;  %1994 = vmatprep.subr.bf16.mxu1 %v6831_v22  ;;  %v6732_v18 = vcombine.low %v298_v2, %v306_v3  ;;  %v6719_v22 = vcombine.high %v283_v14, %v291_v17  ;;  %v7503_v2 = vld [vmem:[#allocation8 + $0x60] ss:$16 sps:$4 sm:$0xff]   ;;  %v7514_v7 = vld [vmem:[#allocation8 + $0x244] ss:$16 sps:$4 sm:$0xff]  }
 0x153   :  { %v7506_v3 = vld [vmem:[#allocation8 + $0x260] ss:$16 sps:$4 sm:$0xff]  }
 0x155   :  { %1954 = vmatpush2.bf16.msra.mxu0 %v6828_v23  ;;  %1995 = vmatpush2.bf16.msra.mxu1 %v6830_v24  ;;  %v6718_v23 = vcombine.low %v283_v14, %v291_v17  ;;  %v7481_v24 = vld [vmem:[#allocation8 + $0xe4] ss:$16 sps:$4 sm:$0xff]   ;;  %v7524_v17 = vld [vmem:[#allocation8 + $0x200] ss:$16 sps:$4 sm:$0xff]  }
 0x156   :  { %1955 = vmatprep.subr.bf16.mxu0 %v6813_v25  ;;  %1996 = vmatprep.subr.bf16.mxu1 %v6815_v29  ;;  %v7484_v25 = vld [vmem:[#allocation8 + $0x2e4] ss:$16 sps:$4 sm:$0xff]  }
 0x157   :  { %v7487_v29 = vld [vmem:[#allocation8 + $0xc4] ss:$16 sps:$4 sm:$0xff]  }
 0x158   :  { %v7523_v14 = vld [vmem:[#allocation8 + $0x4] ss:$16 sps:$4 sm:$0xff]  }
 0x159   :  { %1956 = vmatpush2.bf16.msra.mxu0 %v6812_v31  ;;  %1997 = vmatpush2.bf16.msra.mxu1 %v6814_v32  ;;  %v2159_v31 = vpack.i.b16 %v2086_v26, %v2086_v26  ;;  %v8640_v32 = vsub.s32 0, %v8625_v57  ;;  %v7499_v57 = vld [vmem:[#allocation8 + $0x84] ss:$16 sps:$4 sm:$0xff]   ;;  %v7539_v26 = vld [vmem:[#allocation8 + $0x1a0] ss:$16 sps:$4 sm:$0xff]  }
 0x15a   :  { %1957 = vmatprep.subr.bf16.mxu0 %v6797_v33  ;;  %1998 = vmatprep.subr.bf16.mxu1 %v6799_v40  ;;  %v7485_v33 = vld [vmem:[#allocation8 + $0xc0] ss:$16 sps:$4 sm:$0xff]  }
 0x15b   :  { %v2150_v39 = vrot.slane %v2145_v30, %v8640_v32  ;;  %v2164_v41 = vrot.slane %v2159_v31, %v8640_v32  ;;  %v2062_v30 = vrot.slane %v8634_v5, %v8628_v60  ;;  %v7545_v31 = vld [vmem:[#allocation8 + $0x180] ss:$16 sps:$4 sm:$0xff]  }
 0x15c   :  { %v7554_v5 = vld [vmem:[#allocation8 + $0x360] ss:$16 sps:$4 sm:$0xff]  }
 0x15d   :  { %1958 = vmatpush2.bf16.msra.mxu0 %v6796_v42  ;;  %1999 = vmatpush2.bf16.msra.mxu1 %v6798_v43 }
 0x15e   :  { %1959 = vmatprep.subr.bf16.mxu0 %v6781_v44  ;;  %2000 = vmatprep.subr.bf16.mxu1 %v6783_v49  ;;  %v7491_v44 = vld [vmem:[#allocation8 + $0xa0] ss:$16 sps:$4 sm:$0xff]  }
 0x161   :  { %1960 = vmatpush2.bf16.msra.mxu0 %v6780_v51  ;;  %2001 = vmatpush2.bf16.msra.mxu1 %v6782_v54 }
 0x162   :  { %1961 = vmatprep.subr.bf16.mxu0 %v6765_v55  ;;  %2002 = vmatprep.subr.bf16.mxu1 %v6767_v61  ;;  %v7497_v55 = vld [vmem:[#allocation8 + $0x80] ss:$16 sps:$4 sm:$0xff]   ;;  %v7505_v61 = vld [vmem:[#allocation8 + $0x64] ss:$16 sps:$4 sm:$0xff]  }
 0x165   :  { %1962 = vmatpush2.bf16.msra.mxu0 %v6764_v63  ;;  %2003 = vmatpush2.bf16.msra.mxu1 %v6766_v0 }
 0x166   :  { %1963 = vmatprep.subr.bf16.mxu0 %v6749_v1  ;;  %2004 = vmatprep.subr.bf16.mxu1 %v6751_v6  ;;  %v7508_v1 = vld [vmem:[#allocation8 + $0x264] ss:$16 sps:$4 sm:$0xff]   ;;  %v7509_v6 = vld [vmem:[#allocation8 + $0x40] ss:$16 sps:$4 sm:$0xff]  }
 0x169   :  { %1964 = vmatpush2.bf16.msra.mxu0 %v6748_v8  ;;  %2005 = vmatpush2.bf16.msra.mxu1 %v6750_v9  ;;  %v7512_v8 = vld [vmem:[#allocation8 + $0x240] ss:$16 sps:$4 sm:$0xff]   ;;  %v7517_v9 = vld [vmem:[#allocation8 + $0x24] ss:$16 sps:$4 sm:$0xff]  }
 0x16a   :  { %1965 = vmatprep.subr.bf16.mxu0 %v6733_v10  ;;  %2006 = vmatprep.subr.bf16.mxu1 %v6735_v16  ;;  %v7515_v10 = vld [vmem:[#allocation8 + $0x20] ss:$16 sps:$4 sm:$0xff]   ;;  %v7526_v16 = vld [vmem:[#allocation8 + $0x204] ss:$16 sps:$4 sm:$0xff]  }
 0x16d   :  { %1966 = vmatpush2.bf16.msra.mxu0 %v6732_v18  ;;  %2007 = vmatpush2.bf16.msra.mxu1 %v6734_v19  ;;  %v7529_v18 = vld [vmem:[#allocation8 + $0x1e4] ss:$16 sps:$4 sm:$0xff]   ;;  %v7527_v19 = vld [vmem:[#allocation8 + $0x1e0] ss:$16 sps:$4 sm:$0xff]  }
 0x16e   :  { %1967 = vmatprep.subr.bf16.mxu0 %v6717_v20  ;;  %2008 = vmatprep.subr.bf16.mxu1 %v6719_v22  ;;  %v7532_v20 = vld [vmem:[#allocation8 + $0x3e4] ss:$16 sps:$4 sm:$0xff]  }
 0x16f   :  { %v7535_v22 = vld [vmem:[#allocation8 + $0x1c4] ss:$16 sps:$4 sm:$0xff]  }
 0x171   :  { %1968 = vmatpush2.bf16.msra.mxu0 %v6716_v53  ;;  %2009 = vmatpush2.bf16.msra.mxu1 %v6718_v23  ;;  %v7533_v53 = vld [vmem:[#allocation8 + $0x1c0] ss:$16 sps:$4 sm:$0xff]   ;;  %v7538_v23 = vld [vmem:[#allocation8 + $0x3c4] ss:$16 sps:$4 sm:$0xff]  }
 0x172   :  { %5369 = vmatprep.subr.bf16.mxu0 %v7481_v24  ;;  %5410 = vmatprep.subr.bf16.mxu1 %v7484_v25  ;;  %v7536_v24 = vld [vmem:[#allocation8 + $0x3c0] ss:$16 sps:$4 sm:$0xff]   ;;  %v7541_v25 = vld [vmem:[#allocation8 + $0x1a4] ss:$16 sps:$4 sm:$0xff]  }
 0x174   :  { %v8642_v35 = vpop.f32.mrf.mxu0  ;;  %1970 = vmatmul.mubr.bf16.vlgmr.msra.gmra.mxu0 %v8611_v12  ;;  %v8645_v38 = vpop.f32.mrf.mxu1  ;;  %2011 = vmatmul.mubr.bf16.vlgmr.msra.gmra.mxu1 %v8611_v12 }
 0x175   :  { %5370 = vmatpush1.bf16.msra.mxu0 %v7479_v27  ;;  %5411 = vmatpush1.bf16.msra.mxu1 %v7482_v28  ;;  %v7544_v27 = vld [vmem:[#allocation8 + $0x3a4] ss:$16 sps:$4 sm:$0xff]   ;;  %v7542_v28 = vld [vmem:[#allocation8 + $0x3a0] ss:$16 sps:$4 sm:$0xff]  }
 0x176   :  { %v1727_v40 = vpop.f32.mrf.mxu0  ;;  %5371 = vmatprep.subr.bf16.mxu0 %v7487_v29  ;;  %v1768_v43 = vpop.f32.mrf.mxu1  ;;  %5412 = vmatprep.subr.bf16.mxu1 %v7490_v34  ;;  %v7547_v29 = vld [vmem:[#allocation8 + $0x184] ss:$16 sps:$4 sm:$0xff]   ;;  %v7548_v34 = vld [vmem:[#allocation8 + $0x380] ss:$16 sps:$4 sm:$0xff]  }
 0x177   :  { %v2022_v42 = vpack.c.bf16 %v1727_v40, %v1727_v40  ;;  %v2024_v46 = vpack.c.bf16 %v1768_v43, %v1768_v43  ;;  %v7551_v40 = vld [vmem:[#allocation8 + $0x160] ss:$16 sps:$4 sm:$0xff]   ;;  %v7559_v43 = vld [vmem:[#allocation8 + $0x144] ss:$16 sps:$4 sm:$0xff]  }
 0x178   :  { %v1729_v47 = vpop.f32.mrf.mxu0  ;;  %v1770_v50 = vpop.f32.mrf.mxu1 }
 0x179   :  { %v2250_v49 = vadd.bf16 %v2150_v39, %v2022_v42  ;;  %5372 = vmatpush1.bf16.msra.mxu0 %v7485_v33  ;;  %v2252_v12 = vadd.bf16 %v2164_v41, %v2024_v46  ;;  %5413 = vmatpush1.bf16.msra.mxu1 %v7488_v36  ;;  %v7550_v33 = vld [vmem:[#allocation8 + $0x384] ss:$16 sps:$4 sm:$0xff]   ;;  %v2084_v39 = vcombine.high %v2062_v30, %v2062_v30  ;;  %v7557_v46 = vld [vmem:[#allocation8 + $0x140] ss:$16 sps:$4 sm:$0xff]  }
 0x17a   :  { %v1730_v51 = vpop.f32.mrf.mxu0  ;;  %5373 = vmatprep.subr.bf16.mxu0 %v7493_v37  ;;  %v1771_v54 = vpop.f32.mrf.mxu1  ;;  %5414 = vmatprep.subr.bf16.mxu1 %v7496_v45  ;;  %v7553_v36 = vld [vmem:[#allocation8 + $0x164] ss:$16 sps:$4 sm:$0xff]   ;;  %v2039_v37 = vcombine.high %v8630_v62, %v8630_v62  ;;  %v2138_v42 = vpack.i.b16 %v2062_v30, %v2062_v30  ;;  %v2021_v62 = vpack.c.bf16 %v8642_v35, %v8642_v35  ;;  %v7566_v35 = vld [vmem:[#allocation8 + $0x320] ss:$16 sps:$4 sm:$0xff]  }
 0x17b   :  { %v2266_v52 = vmul.bf16 1009007652, %v2250_v49  ;;  %v2268_v58 = vmul.bf16 1009007652, %v2252_v12  ;;  %v7556_v41 = vld [vmem:[#allocation8 + $0x364] ss:$16 sps:$4 sm:$0xff]   ;;  %v2152_v45 = vpack.i.b16 %v2084_v39, %v2084_v39 }
 0x17c   :  { %v7562_v47 = vld [vmem:[#allocation8 + $0x344] ss:$16 sps:$4 sm:$0xff]  }
 0x17d   :  { %5374 = vmatpush1.bf16.msra.mxu0 %v7491_v44  ;;  %v8650_v63 = vmax.bf16 %v2266_v52, %v2250_v49  ;;  %5415 = vmatpush1.bf16.msra.mxu1 %v7494_v48  ;;  %v8652_v0 = vmax.bf16 %v2268_v58, %v2252_v12  ;;  %v8661_v44 = vrot.slane %v2039_v37, %v8628_v60  ;;  %v7565_v49 = vld [vmem:[#allocation8 + $0x124] ss:$16 sps:$4 sm:$0xff]   ;;  %v7563_v52 = vld [vmem:[#allocation8 + $0x120] ss:$16 sps:$4 sm:$0xff]  }
 0x17e   :  { %5375 = vmatprep.subr.bf16.mxu0 %v7499_v57  ;;  %5416 = vmatprep.subr.bf16.mxu1 %v7502_v56  ;;  %v2143_v48 = vrot.slane %v2138_v42, %v8640_v32  ;;  %v7560_v57 = vld [vmem:[#allocation8 + $0x340] ss:$16 sps:$4 sm:$0xff]   ;;  %v2023_v12 = vpack.c.bf16 %v8645_v38, %v8645_v38  ;;  %v2157_v51 = vrot.slane %v2152_v45, %v8640_v32  ;;  %v7568_v54 = vld [vmem:[#allocation8 + $0x324] ss:$16 sps:$4 sm:$0xff]  }
 0x17f   :  { %5401 = vmatprep.mubr.bf16.mxu0 %v8650_v63  ;;  %5442 = vmatprep.mubr.bf16.mxu1 %v8652_v0  ;;  %v2055_v50 = vcombine.high %v8661_v44, %v8661_v44  ;;  %v7571_v56 = vld [vmem:[#allocation8 + $0x104] ss:$16 sps:$4 sm:$0xff]  }
 0x180   :  { %v7596_v37 = vld [vmem:[#allocation8 + $0x484] ss:$16 sps:$4 sm:$0xff]  }
 0x181   :  { %5376 = vmatpush1.bf16.msra.mxu0 %v7497_v55  ;;  %5417 = vmatpush1.bf16.msra.mxu1 %v7500_v59  ;;  %v2249_v55 = vadd.bf16 %v2143_v48, %v2021_v62  ;;  %v2083_v58 = vrot.slane %v2055_v50, %v8628_v60  ;;  %v2251_v59 = vadd.bf16 %v2157_v51, %v2023_v12  ;;  %v7599_v42 = vld [vmem:[#allocation8 + $0x684] ss:$16 sps:$4 sm:$0xff]   ;;  %v7600_v48 = vld [vmem:[#allocation8 + $0x460] ss:$16 sps:$4 sm:$0xff]  }
 0x182   :  { %5377 = vmatprep.subr.bf16.mxu0 %v7505_v61  ;;  %5418 = vmatprep.subr.bf16.mxu1 %v7508_v1  ;;  %v7569_v61 = vld [vmem:[#allocation8 + $0x100] ss:$16 sps:$4 sm:$0xff]   ;;  %v7574_v1 = vld [vmem:[#allocation8 + $0x304] ss:$16 sps:$4 sm:$0xff]  }
 0x183   :  { %v2265_v38 = vmul.bf16 1009007652, %v2249_v55  ;;  %v7602_v45 = vld [vmem:[#allocation8 + $0x464] ss:$16 sps:$4 sm:$0xff]   ;;  %v7606_v50 = vld [vmem:[#allocation8 + $0x440] ss:$16 sps:$4 sm:$0xff]  }
 0x184   :  { %v7605_v62 = vld [vmem:[#allocation8 + $0x664] ss:$16 sps:$4 sm:$0xff]   ;;  %v7609_v51 = vld [vmem:[#allocation8 + $0x640] ss:$16 sps:$4 sm:$0xff]  }
 0x185   :  { %5378 = vmatpush1.bf16.msra.mxu0 %v7503_v2  ;;  %5419 = vmatpush1.bf16.msra.mxu1 %v7506_v3  ;;  %v7572_v2 = vld [vmem:[#allocation8 + $0x300] ss:$16 sps:$4 sm:$0xff]   ;;  %v7578_v3 = vld [vmem:[#allocation8 + $0x4e4] ss:$16 sps:$4 sm:$0xff]  }
 0x186   :  { %5379 = vmatprep.subr.bf16.mxu0 %v7511_v4  ;;  %5420 = vmatprep.subr.bf16.mxu1 %v7514_v7  ;;  %v7581_v4 = vld [vmem:[#allocation8 + $0x6e4] ss:$16 sps:$4 sm:$0xff]   ;;  %v2267_v7 = vmul.bf16 1009007652, %v2251_v59 }
 0x187   :  { %v7611_v12 = vld [vmem:[#allocation8 + $0x644] ss:$16 sps:$4 sm:$0xff]  }
 0x189   :  { %5380 = vmatpush1.bf16.msra.mxu0 %v7509_v6  ;;  %5421 = vmatpush1.bf16.msra.mxu1 %v7512_v8  ;;  %v2087_v6 = vcombine.high %v2083_v58, %v2083_v58  ;;  %v7576_v8 = vld [vmem:[#allocation8 + $0x4e0] ss:$16 sps:$4 sm:$0xff]  }
 0x18a   :  { %5381 = vmatprep.subr.bf16.mxu0 %v7517_v9  ;;  %5422 = vmatprep.subr.bf16.mxu1 %v7520_v11  ;;  %v7579_v9 = vld [vmem:[#allocation8 + $0x6e0] ss:$16 sps:$4 sm:$0xff]   ;;  %v2173_v11 = vpack.i.b16 %v2083_v58, %v2083_v58 }
 0x18b   :  { %v7618_v58 = vld [vmem:[#allocation8 + $0x400] ss:$16 sps:$4 sm:$0xff]  }
 0x18d   :  { %5382 = vmatpush1.bf16.msra.mxu0 %v7515_v10  ;;  %5423 = vmatpush1.bf16.msra.mxu1 %v7518_v13  ;;  %v7584_v10 = vld [vmem:[#allocation8 + $0x4c4] ss:$16 sps:$4 sm:$0xff]   ;;  %v8672_v13 = vmax.bf16 %v2265_v38, %v2249_v55 }
 0x18e   :  { %5383 = vmatprep.subr.bf16.mxu0 %v7523_v14  ;;  %5424 = vmatprep.subr.bf16.mxu1 %v7526_v16  ;;  %v2187_v14 = vpack.i.b16 %v2087_v6, %v2087_v6  ;;  %v7582_v16 = vld [vmem:[#allocation8 + $0x4c0] ss:$16 sps:$4 sm:$0xff]   ;;  %v7617_v55 = vld [vmem:[#allocation8 + $0x624] ss:$16 sps:$4 sm:$0xff]  }
 0x18f   :  { %v7629_v38 = vld [vmem:[#allocation8 + $0x7e4] ss:$16 sps:$4 sm:$0xff]   ;;  %v7630_v6 = vld [vmem:[#allocation8 + $0x5c0] ss:$16 sps:$4 sm:$0xff]  }
 0x191   :  { %5384 = vmatpush1.bf16.msra.mxu0 %v7521_v15  ;;  %5425 = vmatpush1.bf16.msra.mxu1 %v7524_v17  ;;  %v8674_v15 = vmax.bf16 %v2267_v7, %v2251_v59  ;;  %v7587_v17 = vld [vmem:[#allocation8 + $0x6c4] ss:$16 sps:$4 sm:$0xff]  }
 0x192   :  { %5385 = vmatprep.subr.bf16.mxu0 %v7529_v18  ;;  %5426 = vmatprep.subr.bf16.mxu1 %v7532_v20  ;;  %v7590_v20 = vld [vmem:[#allocation8 + $0x4a4] ss:$16 sps:$4 sm:$0xff]  }
 0x193   :  { %v7623_v59 = vld [vmem:[#allocation8 + $0x604] ss:$16 sps:$4 sm:$0xff]  }
 0x194   :  { %v7635_v7 = vld [vmem:[#allocation8 + $0x7c4] ss:$16 sps:$4 sm:$0xff]  }
 0x195   :  { %5386 = vmatpush2.bf16.msra.mxu0 %v7527_v19  ;;  %5427 = vmatpush2.bf16.msra.mxu1 %v7530_v21  ;;  %v7585_v19 = vld [vmem:[#allocation8 + $0x6c0] ss:$16 sps:$4 sm:$0xff]  }
 0x196   :  { %5387 = vmatprep.subr.bf16.mxu0 %v7535_v22  ;;  %5428 = vmatprep.subr.bf16.mxu1 %v7538_v23  ;;  %v2178_v22 = vrot.slane %v2173_v11, %v8640_v32  ;;  %v2192_v23 = vrot.slane %v2187_v14, %v8640_v32  ;;  %v7641_v11 = vld [vmem:[#allocation8 + $0x7a4] ss:$16 sps:$4 sm:$0xff]   ;;  %v7639_v14 = vld [vmem:[#allocation8 + $0x7a0] ss:$16 sps:$4 sm:$0xff]  }
 0x199   :  { %5388 = vmatpush2.bf16.msra.mxu0 %v7533_v53  ;;  %5429 = vmatpush2.bf16.msra.mxu1 %v7536_v24 }
 0x19a   :  { %5389 = vmatprep.subr.bf16.mxu0 %v7541_v25  ;;  %5430 = vmatprep.subr.bf16.mxu1 %v7544_v27 }
 0x19d   :  { %5390 = vmatpush2.bf16.msra.mxu0 %v7539_v26  ;;  %5431 = vmatpush2.bf16.msra.mxu1 %v7542_v28  ;;  %v7593_v26 = vld [vmem:[#allocation8 + $0x6a4] ss:$16 sps:$4 sm:$0xff]  }
 0x19e   :  { %5391 = vmatprep.subr.bf16.mxu0 %v7547_v29  ;;  %5432 = vmatprep.subr.bf16.mxu1 %v7550_v33  ;;  %v7588_v29 = vld [vmem:[#allocation8 + $0x4a0] ss:$16 sps:$4 sm:$0xff]  }
 0x19f   :  { %v7591_v33 = vld [vmem:[#allocation8 + $0x6a0] ss:$16 sps:$4 sm:$0xff]  }
 0x1a1   :  { %5392 = vmatpush2.bf16.msra.mxu0 %v7545_v31  ;;  %5433 = vmatpush2.bf16.msra.mxu1 %v7548_v34 }
 0x1a2   :  { %5393 = vmatprep.subr.bf16.mxu0 %v7553_v36  ;;  %5434 = vmatprep.subr.bf16.mxu1 %v7556_v41  ;;  %v7594_v41 = vld [vmem:[#allocation8 + $0x480] ss:$16 sps:$4 sm:$0xff]  }
 0x1a5   :  { %5394 = vmatpush2.bf16.msra.mxu0 %v7551_v40  ;;  %5435 = vmatpush2.bf16.msra.mxu1 %v7554_v5 }
 0x1a6   :  { %5395 = vmatprep.subr.bf16.mxu0 %v7559_v43  ;;  %5436 = vmatprep.subr.bf16.mxu1 %v7562_v47  ;;  %v7597_v43 = vld [vmem:[#allocation8 + $0x680] ss:$16 sps:$4 sm:$0xff]  }
 0x1a9   :  { %5396 = vmatpush2.bf16.msra.mxu0 %v7557_v46  ;;  %5437 = vmatpush2.bf16.msra.mxu1 %v7560_v57  ;;  %v7603_v57 = vld [vmem:[#allocation8 + $0x660] ss:$16 sps:$4 sm:$0xff]  }
 0x1aa   :  { %5397 = vmatprep.subr.bf16.mxu0 %v7565_v49  ;;  %5438 = vmatprep.subr.bf16.mxu1 %v7568_v54  ;;  %v7608_v49 = vld [vmem:[#allocation8 + $0x444] ss:$16 sps:$4 sm:$0xff]   ;;  %v7612_v54 = vld [vmem:[#allocation8 + $0x420] ss:$16 sps:$4 sm:$0xff]  }
 0x1ad   :  { %5398 = vmatpush2.bf16.msra.mxu0 %v7563_v52  ;;  %5439 = vmatpush2.bf16.msra.mxu1 %v7566_v35  ;;  %v7614_v52 = vld [vmem:[#allocation8 + $0x424] ss:$16 sps:$4 sm:$0xff]   ;;  %v7615_v35 = vld [vmem:[#allocation8 + $0x620] ss:$16 sps:$4 sm:$0xff]  }
 0x1ae   :  { %5399 = vmatprep.subr.bf16.mxu0 %v7571_v56  ;;  %5440 = vmatprep.subr.bf16.mxu1 %v7574_v1  ;;  %v7620_v56 = vld [vmem:[#allocation8 + $0x404] ss:$16 sps:$4 sm:$0xff]  }
 0x1af   :  { %v7626_v1 = vld [vmem:[#allocation8 + $0x5e4] ss:$16 sps:$4 sm:$0xff]  }
 0x1b1   :  { %5400 = vmatpush2.bf16.msra.mxu0 %v7569_v61  ;;  %5441 = vmatpush2.bf16.msra.mxu1 %v7572_v2  ;;  %v7621_v61 = vld [vmem:[#allocation8 + $0x600] ss:$16 sps:$4 sm:$0xff]  }
 0x1b2   :  { %5451 = vmatprep.subr.bf16.mxu0 %v7578_v3  ;;  %5492 = vmatprep.subr.bf16.mxu1 %v7581_v4  ;;  %v7624_v2 = vld [vmem:[#allocation8 + $0x5e0] ss:$16 sps:$4 sm:$0xff]   ;;  %v7632_v4 = vld [vmem:[#allocation8 + $0x5c4] ss:$16 sps:$4 sm:$0xff]  }
 0x1b3   :  { %v7627_v3 = vld [vmem:[#allocation8 + $0x7e0] ss:$16 sps:$4 sm:$0xff]  }
 0x1b4   :  { %v8676_v18 = vpop.f32.mrf.mxu0  ;;  %5402 = vmatmul.mubr.bf16.vlgmr.msra.gmra.mxu0 %v8672_v13  ;;  %v8679_v21 = vpop.f32.mrf.mxu1  ;;  %5443 = vmatmul.mubr.bf16.vlgmr.msra.gmra.mxu1 %v8674_v15 }
 0x1b5   :  { %5452 = vmatpush1.bf16.msra.mxu0 %v7576_v8  ;;  %5493 = vmatpush1.bf16.msra.mxu1 %v7579_v9  ;;  %v7633_v8 = vld [vmem:[#allocation8 + $0x7c0] ss:$16 sps:$4 sm:$0xff]   ;;  %v7638_v9 = vld [vmem:[#allocation8 + $0x5a4] ss:$16 sps:$4 sm:$0xff]  }
 0x1b6   :  { %v1809_v53 = vpop.f32.mrf.mxu0  ;;  %5453 = vmatprep.subr.bf16.mxu0 %v7584_v10  ;;  %v1850_v25 = vpop.f32.mrf.mxu1  ;;  %5494 = vmatprep.subr.bf16.mxu1 %v7587_v17  ;;  %v7636_v10 = vld [vmem:[#allocation8 + $0x5a0] ss:$16 sps:$4 sm:$0xff]   ;;  %v2069_v17 = vrot.slane %v8661_v44, %v8628_v60  ;;  %v7656_v44 = vld [vmem:[#allocation8 + $0x544] ss:$16 sps:$4 sm:$0xff]  }
 0x1b7   :  { %v2026_v24 = vpack.c.bf16 %v1809_v53, %v1809_v53  ;;  %v2028_v27 = vpack.c.bf16 %v1850_v25, %v1850_v25  ;;  %v7650_v53 = vld [vmem:[#allocation8 + $0x564] ss:$16 sps:$4 sm:$0xff]   ;;  %v8692_v25 = vld [vmem:[#allocation7 + $0x8] sm:$0xff] }
 0x1b8   :  { %v1811_v28 = vpop.f32.mrf.mxu0  ;;  %v1852_v31 = vpop.f32.mrf.mxu1 }
 0x1b9   :  { %v2254_v30 = vadd.bf16 %v2178_v22, %v2026_v24  ;;  %5454 = vmatpush1.bf16.msra.mxu0 %v7582_v16  ;;  %v2256_v34 = vadd.bf16 %v2192_v23, %v2028_v27  ;;  %5495 = vmatpush1.bf16.msra.mxu1 %v7585_v19  ;;  %v7644_v16 = vld [vmem:[#allocation8 + $0x584] ss:$16 sps:$4 sm:$0xff]   ;;  %v7645_v22 = vld [vmem:[#allocation8 + $0x780] ss:$16 sps:$4 sm:$0xff]   ;;  %v2085_v23 = vcombine.high %v2069_v17, %v2069_v17 }
 0x1ba   :  { %v1812_v36 = vpop.f32.mrf.mxu0  ;;  %5455 = vmatprep.subr.bf16.mxu0 %v7590_v20  ;;  %v1853_v40 = vpop.f32.mrf.mxu1  ;;  %5496 = vmatprep.subr.bf16.mxu1 %v7593_v26  ;;  %v7647_v19 = vld [vmem:[#allocation8 + $0x784] ss:$16 sps:$4 sm:$0xff]   ;;  %v7642_v20 = vld [vmem:[#allocation8 + $0x580] ss:$16 sps:$4 sm:$0xff]   ;;  %v2166_v27 = vpack.i.b16 %v2069_v17, %v2069_v17 }
 0x1bb   :  { %v2270_v39 = vmul.bf16 1009007652, %v2254_v30  ;;  %v2272_v5 = vmul.bf16 1009007652, %v2256_v34  ;;  %v7653_v24 = vld [vmem:[#allocation8 + $0x764] ss:$16 sps:$4 sm:$0xff]  }
 0x1bc   :  { %v7648_v26 = vld [vmem:[#allocation8 + $0x560] ss:$16 sps:$4 sm:$0xff]   ;;  %v7659_v31 = vld [vmem:[#allocation8 + $0x744] ss:$16 sps:$4 sm:$0xff]   ;;  %v2171_v36 = vrot.slane %v2166_v27, %v8640_v32 }
 0x1bd   :  { %5456 = vmatpush1.bf16.msra.mxu0 %v7588_v29  ;;  %v8684_v46 = vmax.bf16 %v2270_v39, %v2254_v30  ;;  %5497 = vmatpush1.bf16.msra.mxu1 %v7591_v33  ;;  %v8686_v47 = vmax.bf16 %v2272_v5, %v2256_v34  ;;  %v7651_v28 = vld [vmem:[#allocation8 + $0x760] ss:$16 sps:$4 sm:$0xff]   ;;  %v8696_v29 = vrot.slane %v8692_v25, %v8628_v60  ;;  %v7662_v39 = vld [vmem:[#allocation8 + $0x524] ss:$16 sps:$4 sm:$0xff]  }
 0x1be   :  { %5457 = vmatprep.subr.bf16.mxu0 %v7596_v37  ;;  %5498 = vmatprep.subr.bf16.mxu1 %v7599_v42  ;;  %v2180_v30 = vpack.i.b16 %v2085_v23, %v2085_v23  ;;  %v7654_v33 = vld [vmem:[#allocation8 + $0x540] ss:$16 sps:$4 sm:$0xff]   ;;  %v2025_v34 = vpack.c.bf16 %v8676_v18, %v8676_v18  ;;  %v7665_v5 = vld [vmem:[#allocation8 + $0x724] ss:$16 sps:$4 sm:$0xff]  }
 0x1bf   :  { %5483 = vmatprep.mubr.bf16.mxu0 %v8684_v46  ;;  %5524 = vmatprep.mubr.bf16.mxu1 %v8686_v47  ;;  %v7657_v37 = vld [vmem:[#allocation8 + $0x740] ss:$16 sps:$4 sm:$0xff]   ;;  %v2103_v40 = vcombine.high %v8696_v29, %v8696_v29  ;;  %v7689_v17 = vld [vmem:[#allocation8 + $0xaa4] ss:$16 sps:$4 sm:$0xff]  }
 0x1c0   :  { %v2185_v42 = vrot.slane %v2180_v30, %v8640_v32  ;;  %v7663_v18 = vld [vmem:[#allocation8 + $0x720] ss:$16 sps:$4 sm:$0xff]  }
 0x1c1   :  { %5458 = vmatpush1.bf16.msra.mxu0 %v7594_v41  ;;  %5499 = vmatpush1.bf16.msra.mxu1 %v7597_v43  ;;  %v2027_v41 = vpack.c.bf16 %v8679_v21, %v8679_v21  ;;  %v7660_v43 = vld [vmem:[#allocation8 + $0x520] ss:$16 sps:$4 sm:$0xff]  }
 0x1c2   :  { %5459 = vmatprep.subr.bf16.mxu0 %v7602_v45  ;;  %5500 = vmatprep.subr.bf16.mxu1 %v7605_v62  ;;  %v2253_v45 = vadd.bf16 %v2171_v36, %v2025_v34  ;;  %v7668_v62 = vld [vmem:[#allocation8 + $0x504] ss:$16 sps:$4 sm:$0xff]   ;;  %v7669_v21 = vld [vmem:[#allocation8 + $0x700] ss:$16 sps:$4 sm:$0xff]  }
 0x1c3   :  { %v7684_v23 = vld [vmem:[#allocation8 + $0x8a0] ss:$16 sps:$4 sm:$0xff]  }
 0x1c4   :  { %v7687_v27 = vld [vmem:[#allocation8 + $0xaa0] ss:$16 sps:$4 sm:$0xff]  }
 0x1c5   :  { %5460 = vmatpush1.bf16.msra.mxu0 %v7600_v48  ;;  %5501 = vmatpush1.bf16.msra.mxu1 %v7603_v57  ;;  %v2125_v48 = vrot.slane %v2103_v40, %v8628_v60  ;;  %v2255_v57 = vadd.bf16 %v2185_v42, %v2027_v41  ;;  %v7690_v36 = vld [vmem:[#allocation8 + $0x880] ss:$16 sps:$4 sm:$0xff]   ;;  %v7698_v40 = vld [vmem:[#allocation8 + $0x864] ss:$16 sps:$4 sm:$0xff]  }
 0x1c6   :  { %5461 = vmatprep.subr.bf16.mxu0 %v7608_v49  ;;  %5502 = vmatprep.subr.bf16.mxu1 %v7611_v12  ;;  %v7671_v49 = vld [vmem:[#allocation8 + $0x704] ss:$16 sps:$4 sm:$0xff]   ;;  %v2269_v12 = vmul.bf16 1009007652, %v2253_v45  ;;  %v7696_v42 = vld [vmem:[#allocation8 + $0x860] ss:$16 sps:$4 sm:$0xff]  }
 0x1c7   :  { %v7701_v41 = vld [vmem:[#allocation8 + $0xa64] ss:$16 sps:$4 sm:$0xff]  }
 0x1c9   :  { %5462 = vmatpush1.bf16.msra.mxu0 %v7606_v50  ;;  %5503 = vmatpush1.bf16.msra.mxu1 %v7609_v51  ;;  %v7666_v50 = vld [vmem:[#allocation8 + $0x500] ss:$16 sps:$4 sm:$0xff]   ;;  %v7674_v51 = vld [vmem:[#allocation8 + $0x8e4] ss:$16 sps:$4 sm:$0xff]  }
 0x1ca   :  { %5463 = vmatprep.subr.bf16.mxu0 %v7614_v52  ;;  %5504 = vmatprep.subr.bf16.mxu1 %v7617_v55  ;;  %v2135_v52 = vcombine.high %v2125_v48, %v2125_v48  ;;  %v7677_v55 = vld [vmem:[#allocation8 + $0xae4] ss:$16 sps:$4 sm:$0xff]  }
 0x1cd   :  { %5464 = vmatpush1.bf16.msra.mxu0 %v7612_v54  ;;  %5505 = vmatpush1.bf16.msra.mxu1 %v7615_v35  ;;  %v2271_v54 = vmul.bf16 1009007652, %v2255_v57  ;;  %v7672_v35 = vld [vmem:[#allocation8 + $0x8e0] ss:$16 sps:$4 sm:$0xff]  }
 0x1ce   :  { %5465 = vmatprep.subr.bf16.mxu0 %v7620_v56  ;;  %5506 = vmatprep.subr.bf16.mxu1 %v7623_v59  ;;  %v2201_v56 = vpack.i.b16 %v2125_v48, %v2125_v48  ;;  %v7675_v59 = vld [vmem:[#allocation8 + $0xae0] ss:$16 sps:$4 sm:$0xff]   ;;  %v7710_v48 = vld [vmem:[#allocation8 + $0x824] ss:$16 sps:$4 sm:$0xff]  }
 0x1d1   :  { %5466 = vmatpush1.bf16.msra.mxu0 %v7618_v58  ;;  %5507 = vmatpush1.bf16.msra.mxu1 %v7621_v61  ;;  %v8707_v58 = vmax.bf16 %v2269_v12, %v2253_v45  ;;  %v2215_v61 = vpack.i.b16 %v2135_v52, %v2135_v52  ;;  %v7707_v45 = vld [vmem:[#allocation8 + $0xa44] ss:$16 sps:$4 sm:$0xff]   ;;  %v7717_v52 = vld [vmem:[#allocation8 + $0xa00] ss:$16 sps:$4 sm:$0xff]  }
 0x1d2   :  { %5467 = vmatprep.subr.bf16.mxu0 %v7626_v1  ;;  %5508 = vmatprep.subr.bf16.mxu1 %v7629_v38  ;;  %v7680_v1 = vld [vmem:[#allocation8 + $0x8c4] ss:$16 sps:$4 sm:$0xff]  }
 0x1d3   :  { %v7683_v38 = vld [vmem:[#allocation8 + $0xac4] ss:$16 sps:$4 sm:$0xff]  }
 0x1d4   :  { %v7716_v12 = vld [vmem:[#allocation8 + $0x804] ss:$16 sps:$4 sm:$0xff]  }
 0x1d5   :  { %5468 = vmatpush2.bf16.msra.mxu0 %v7624_v2  ;;  %5509 = vmatpush2.bf16.msra.mxu1 %v7627_v3  ;;  %v8709_v2 = vmax.bf16 %v2271_v54, %v2255_v57  ;;  %v7713_v57 = vld [vmem:[#allocation8 + $0xa24] ss:$16 sps:$4 sm:$0xff]  }
 0x1d6   :  { %5469 = vmatprep.subr.bf16.mxu0 %v7632_v4  ;;  %5510 = vmatprep.subr.bf16.mxu1 %v7635_v7  ;;  %v7678_v7 = vld [vmem:[#allocation8 + $0x8c0] ss:$16 sps:$4 sm:$0xff]   ;;  %v7722_v54 = vld [vmem:[#allocation8 + $0x9e4] ss:$16 sps:$4 sm:$0xff]  }
 0x1d9   :  { %5470 = vmatpush2.bf16.msra.mxu0 %v7630_v6  ;;  %5511 = vmatpush2.bf16.msra.mxu1 %v7633_v8  ;;  %v2206_v6 = vrot.slane %v2201_v56, %v8640_v32  ;;  %v7723_v56 = vld [vmem:[#allocation8 + $0xbe0] ss:$16 sps:$4 sm:$0xff]  }
 0x1da   :  { %5471 = vmatprep.subr.bf16.mxu0 %v7638_v9  ;;  %5512 = vmatprep.subr.bf16.mxu1 %v7641_v11  ;;  %v2220_v9 = vrot.slane %v2215_v61, %v8640_v32  ;;  %v7686_v11 = vld [vmem:[#allocation8 + $0x8a4] ss:$16 sps:$4 sm:$0xff]  }
 0x1db   :  { %v7731_v61 = vld [vmem:[#allocation8 + $0xbc4] ss:$16 sps:$4 sm:$0xff]  }
 0x1dd   :  { %5472 = vmatpush2.bf16.msra.mxu0 %v7636_v10  ;;  %5513 = vmatpush2.bf16.msra.mxu1 %v7639_v14  ;;  %v7681_v10 = vld [vmem:[#allocation8 + $0xac0] ss:$16 sps:$4 sm:$0xff]  }
 0x1de   :  { %5473 = vmatprep.subr.bf16.mxu0 %v7644_v16  ;;  %5514 = vmatprep.subr.bf16.mxu1 %v7647_v19 }
 0x1e1   :  { %5474 = vmatpush2.bf16.msra.mxu0 %v7642_v20  ;;  %5515 = vmatpush2.bf16.msra.mxu1 %v7645_v22 }
 0x1e2   :  { %5475 = vmatprep.subr.bf16.mxu0 %v7650_v53  ;;  %5516 = vmatprep.subr.bf16.mxu1 %v7653_v24 }
 0x1e5   :  { %5476 = vmatpush2.bf16.msra.mxu0 %v7648_v26  ;;  %5517 = vmatpush2.bf16.msra.mxu1 %v7651_v28  ;;  %v7692_v28 = vld [vmem:[#allocation8 + $0x884] ss:$16 sps:$4 sm:$0xff]  }
 0x1e6   :  { %5477 = vmatprep.subr.bf16.mxu0 %v7656_v44  ;;  %5518 = vmatprep.subr.bf16.mxu1 %v7659_v31  ;;  %v7695_v31 = vld [vmem:[#allocation8 + $0xa84] ss:$16 sps:$4 sm:$0xff]  }
 0x1e9   :  { %5478 = vmatpush2.bf16.msra.mxu0 %v7654_v33  ;;  %5519 = vmatpush2.bf16.msra.mxu1 %v7657_v37 }
 0x1ea   :  { %5479 = vmatprep.subr.bf16.mxu0 %v7662_v39  ;;  %5520 = vmatprep.subr.bf16.mxu1 %v7665_v5  ;;  %v7693_v39 = vld [vmem:[#allocation8 + $0xa80] ss:$16 sps:$4 sm:$0xff]  }
 0x1eb   :  { %v7699_v5 = vld [vmem:[#allocation8 + $0xa60] ss:$16 sps:$4 sm:$0xff]  }
 0x1ed   :  { %5480 = vmatpush2.bf16.msra.mxu0 %v7660_v43  ;;  %5521 = vmatpush2.bf16.msra.mxu1 %v7663_v18  ;;  %v7704_v43 = vld [vmem:[#allocation8 + $0x844] ss:$16 sps:$4 sm:$0xff]   ;;  %v7702_v18 = vld [vmem:[#allocation8 + $0x840] ss:$16 sps:$4 sm:$0xff]  }
 0x1ee   :  { %5481 = vmatprep.subr.bf16.mxu0 %v7668_v62  ;;  %5522 = vmatprep.subr.bf16.mxu1 %v7671_v49  ;;  %v7705_v62 = vld [vmem:[#allocation8 + $0xa40] ss:$16 sps:$4 sm:$0xff]  }
 0x1ef   :  { %v7708_v49 = vld [vmem:[#allocation8 + $0x820] ss:$16 sps:$4 sm:$0xff]  }
 0x1f1   :  { %5482 = vmatpush2.bf16.msra.mxu0 %v7666_v50  ;;  %5523 = vmatpush2.bf16.msra.mxu1 %v7669_v21  ;;  %v7711_v50 = vld [vmem:[#allocation8 + $0xa20] ss:$16 sps:$4 sm:$0xff]   ;;  %v7719_v21 = vld [vmem:[#allocation8 + $0xa04] ss:$16 sps:$4 sm:$0xff]  }
 0x1f2   :  { %5533 = vmatprep.subr.bf16.mxu0 %v7674_v51  ;;  %5574 = vmatprep.subr.bf16.mxu1 %v7677_v55  ;;  %v7714_v51 = vld [vmem:[#allocation8 + $0x800] ss:$16 sps:$4 sm:$0xff]   ;;  %v7725_v55 = vld [vmem:[#allocation8 + $0xbe4] ss:$16 sps:$4 sm:$0xff]  }
 0x1f4   :  { %v8711_v3 = vpop.f32.mrf.mxu0  ;;  %5484 = vmatmul.mubr.bf16.vlgmr.msra.gmra.mxu0 %v8707_v58  ;;  %v8714_v4 = vpop.f32.mrf.mxu1  ;;  %5525 = vmatmul.mubr.bf16.vlgmr.msra.gmra.mxu1 %v8709_v2 }
 0x1f5   :  { %5534 = vmatpush1.bf16.msra.mxu0 %v7672_v35  ;;  %5575 = vmatpush1.bf16.msra.mxu1 %v7675_v59  ;;  %v7720_v35 = vld [vmem:[#allocation8 + $0x9e0] ss:$16 sps:$4 sm:$0xff]   ;;  %v7728_v59 = vld [vmem:[#allocation8 + $0x9c4] ss:$16 sps:$4 sm:$0xff]  }
 0x1f6   :  { %v1891_v8 = vpop.f32.mrf.mxu0  ;;  %5535 = vmatprep.subr.bf16.mxu0 %v7680_v1  ;;  %v1932_v16 = vpop.f32.mrf.mxu1  ;;  %5576 = vmatprep.subr.bf16.mxu1 %v7683_v38  ;;  %v7726_v1 = vld [vmem:[#allocation8 + $0x9c0] ss:$16 sps:$4 sm:$0xff]  }
 0x1f7   :  { %v2030_v14 = vpack.c.bf16 %v1891_v8, %v1891_v8  ;;  %v2032_v19 = vpack.c.bf16 %v1932_v16, %v1932_v16  ;;  %v7729_v38 = vld [vmem:[#allocation8 + $0xbc0] ss:$16 sps:$4 sm:$0xff]  }
 0x1f8   :  { %v1893_v20 = vpop.f32.mrf.mxu0  ;;  %v1934_v53 = vpop.f32.mrf.mxu1  ;;  %v7732_v8 = vld [vmem:[#allocation8 + $0x9a0] ss:$16 sps:$4 sm:$0xff]  }
 0x1f9   :  { %v2258_v22 = vadd.bf16 %v2206_v6, %v2030_v14  ;;  %5536 = vmatpush1.bf16.msra.mxu0 %v7678_v7  ;;  %v2260_v24 = vadd.bf16 %v2220_v9, %v2032_v19  ;;  %5577 = vmatpush1.bf16.msra.mxu1 %v7681_v10  ;;  %v7734_v6 = vld [vmem:[#allocation8 + $0x9a4] ss:$16 sps:$4 sm:$0xff]   ;;  %v7735_v9 = vld [vmem:[#allocation8 + $0xba0] ss:$16 sps:$4 sm:$0xff]   ;;  %v2088_v20 = vcombine.high %v8692_v25, %v8692_v25 }
 0x1fa   :  { %v1894_v26 = vpop.f32.mrf.mxu0  ;;  %5537 = vmatprep.subr.bf16.mxu0 %v7686_v11  ;;  %v1935_v30 = vpop.f32.mrf.mxu1  ;;  %5578 = vmatprep.subr.bf16.mxu1 %v7689_v17  ;;  %v7737_v7 = vld [vmem:[#allocation8 + $0xba4] ss:$16 sps:$4 sm:$0xff]   ;;  %v2111_v11 = vrot.slane %v8696_v29, %v8628_v60  ;;  %v7738_v16 = vld [vmem:[#allocation8 + $0x980] ss:$16 sps:$4 sm:$0xff]   ;;  %v2029_v25 = vpack.c.bf16 %v8711_v3, %v8711_v3 }
 0x1fb   :  { %v2274_v44 = vmul.bf16 1009007652, %v2258_v22  ;;  %v2276_v33 = vmul.bf16 1009007652, %v2260_v24  ;;  %v7740_v10 = vld [vmem:[#allocation8 + $0x984] ss:$16 sps:$4 sm:$0xff]  }
 0x1fc   :  { %v7743_v14 = vld [vmem:[#allocation8 + $0xb84] ss:$16 sps:$4 sm:$0xff]   ;;  %v7741_v17 = vld [vmem:[#allocation8 + $0xb80] ss:$16 sps:$4 sm:$0xff]  }
 0x1fd   :  { %5538 = vmatpush1.bf16.msra.mxu0 %v7684_v23  ;;  %v8719_v34 = vmax.bf16 %v2274_v44, %v2258_v22  ;;  %5579 = vmatpush1.bf16.msra.mxu1 %v7687_v27  ;;  %v8721_v37 = vmax.bf16 %v2276_v33, %v2260_v24  ;;  %v7746_v19 = vld [vmem:[#allocation8 + $0x964] ss:$16 sps:$4 sm:$0xff]   ;;  %v2133_v22 = vcombine.high %v2111_v11, %v2111_v11  ;;  %v7744_v23 = vld [vmem:[#allocation8 + $0x960] ss:$16 sps:$4 sm:$0xff]  }
 0x1fe   :  { %5539 = vmatprep.subr.bf16.mxu0 %v7692_v28  ;;  %5580 = vmatprep.subr.bf16.mxu1 %v7695_v31  ;;  %v7749_v53 = vld [vmem:[#allocation8 + $0xb64] ss:$16 sps:$4 sm:$0xff]   ;;  %v2194_v24 = vpack.i.b16 %v2111_v11, %v2111_v11  ;;  %v7747_v29 = vld [vmem:[#allocation8 + $0xb60] ss:$16 sps:$4 sm:$0xff]   ;;  %v8730_v27 = vrot.slane %v2088_v20, %v8628_v60 }
 0x1ff   :  { %5565 = vmatprep.mubr.bf16.mxu0 %v8719_v34  ;;  %5606 = vmatprep.mubr.bf16.mxu1 %v8721_v37  ;;  %v7752_v26 = vld [vmem:[#allocation8 + $0x944] ss:$16 sps:$4 sm:$0xff]   ;;  %v2208_v28 = vpack.i.b16 %v2133_v22, %v2133_v22  ;;  %v7750_v30 = vld [vmem:[#allocation8 + $0x940] ss:$16 sps:$4 sm:$0xff]  }
 0x200   :  { %v7755_v44 = vld [vmem:[#allocation8 + $0xb44] ss:$16 sps:$4 sm:$0xff]   ;;  %v2199_v31 = vrot.slane %v2194_v24, %v8640_v32  ;;  %v7753_v33 = vld [vmem:[#allocation8 + $0xb40] ss:$16 sps:$4 sm:$0xff]  }
 0x201   :  { %5540 = vmatpush1.bf16.msra.mxu0 %v7690_v36  ;;  %5581 = vmatpush1.bf16.msra.mxu1 %v7693_v39  ;;  %v7758_v36 = vld [vmem:[#allocation8 + $0x924] ss:$16 sps:$4 sm:$0xff]   ;;  %v2104_v39 = vcombine.high %v8730_v27, %v8730_v27  ;;  %v7759_v3 = vld [vmem:[#allocation8 + $0xb20] ss:$16 sps:$4 sm:$0xff]  }
 0x202   :  { %5541 = vmatprep.subr.bf16.mxu0 %v7698_v40  ;;  %5582 = vmatprep.subr.bf16.mxu1 %v7701_v41  ;;  %v2031_v40 = vpack.c.bf16 %v8714_v4, %v8714_v4  ;;  %v2213_v41 = vrot.slane %v2208_v28, %v8640_v32  ;;  %v7765_v4 = vld [vmem:[#allocation8 + $0xb00] ss:$16 sps:$4 sm:$0xff]  }
 0x203   :  { %v7778_v11 = vld [vmem:[#allocation8 + $0xec0] ss:$16 sps:$4 sm:$0xff]  }
 0x204   :  { %v7781_v24 = vld [vmem:[#allocation8 + $0xca0] ss:$16 sps:$4 sm:$0xff]  }
 0x205   :  { %5542 = vmatpush1.bf16.msra.mxu0 %v7696_v42  ;;  %5583 = vmatpush1.bf16.msra.mxu1 %v7699_v5  ;;  %v7761_v42 = vld [vmem:[#allocation8 + $0xb24] ss:$16 sps:$4 sm:$0xff]   ;;  %v7756_v5 = vld [vmem:[#allocation8 + $0x920] ss:$16 sps:$4 sm:$0xff]  }
 0x206   :  { %5543 = vmatprep.subr.bf16.mxu0 %v7704_v43  ;;  %5584 = vmatprep.subr.bf16.mxu1 %v7707_v45  ;;  %v2257_v43 = vadd.bf16 %v2199_v31, %v2029_v25  ;;  %v7764_v45 = vld [vmem:[#allocation8 + $0x904] ss:$16 sps:$4 sm:$0xff]   ;;  %v7784_v28 = vld [vmem:[#allocation8 + $0xea0] ss:$16 sps:$4 sm:$0xff]  }
 0x207   :  { %v7792_v31 = vld [vmem:[#allocation8 + $0xe84] ss:$16 sps:$4 sm:$0xff]  }
 0x209   :  { %5544 = vmatpush1.bf16.msra.mxu0 %v7702_v18  ;;  %5585 = vmatpush1.bf16.msra.mxu1 %v7705_v62  ;;  %v2132_v18 = vrot.slane %v2104_v39, %v8628_v60  ;;  %v2259_v62 = vadd.bf16 %v2213_v41, %v2031_v40  ;;  %v7787_v39 = vld [vmem:[#allocation8 + $0xc80] ss:$16 sps:$4 sm:$0xff]  }
 0x20a   :  { %5545 = vmatprep.subr.bf16.mxu0 %v7710_v48  ;;  %5586 = vmatprep.subr.bf16.mxu1 %v7713_v57  ;;  %v7767_v48 = vld [vmem:[#allocation8 + $0xb04] ss:$16 sps:$4 sm:$0xff]   ;;  %v7762_v57 = vld [vmem:[#allocation8 + $0x900] ss:$16 sps:$4 sm:$0xff]  }
 0x20b   :  { %v7790_v41 = vld [vmem:[#allocation8 + $0xe80] ss:$16 sps:$4 sm:$0xff]  }
 0x20d   :  { %5546 = vmatpush1.bf16.msra.mxu0 %v7708_v49  ;;  %5587 = vmatpush1.bf16.msra.mxu1 %v7711_v50  ;;  %v2273_v49 = vmul.bf16 1009007652, %v2257_v43  ;;  %v7771_v50 = vld [vmem:[#allocation8 + $0xce4] ss:$16 sps:$4 sm:$0xff]  }
 0x20e   :  { %5547 = vmatprep.subr.bf16.mxu0 %v7716_v12  ;;  %5588 = vmatprep.subr.bf16.mxu1 %v7719_v21  ;;  %v2136_v12 = vcombine.high %v2132_v18, %v2132_v18  ;;  %v2275_v21 = vmul.bf16 1009007652, %v2259_v62 }
 0x211   :  { %5548 = vmatpush1.bf16.msra.mxu0 %v7714_v51  ;;  %5589 = vmatpush1.bf16.msra.mxu1 %v7717_v52  ;;  %v7774_v51 = vld [vmem:[#allocation8 + $0xee4] ss:$16 sps:$4 sm:$0xff]   ;;  %v7769_v52 = vld [vmem:[#allocation8 + $0xce0] ss:$16 sps:$4 sm:$0xff]  }
 0x212   :  { %5549 = vmatprep.subr.bf16.mxu0 %v7722_v54  ;;  %5590 = vmatprep.subr.bf16.mxu1 %v7725_v55  ;;  %v2229_v54 = vpack.i.b16 %v2132_v18, %v2132_v18  ;;  %v8741_v55 = vmax.bf16 %v2273_v49, %v2257_v43  ;;  %v7793_v43 = vld [vmem:[#allocation8 + $0xc60] ss:$16 sps:$4 sm:$0xff]   ;;  %v7804_v18 = vld [vmem:[#allocation8 + $0xe44] ss:$16 sps:$4 sm:$0xff]  }
 0x213   :  { %v7810_v49 = vld [vmem:[#allocation8 + $0xe24] ss:$16 sps:$4 sm:$0xff]  }
 0x215   :  { %5550 = vmatpush2.bf16.msra.mxu0 %v7720_v35  ;;  %5591 = vmatpush2.bf16.msra.mxu1 %v7723_v56  ;;  %v7772_v35 = vld [vmem:[#allocation8 + $0xee0] ss:$16 sps:$4 sm:$0xff]   ;;  %v2243_v56 = vpack.i.b16 %v2136_v12, %v2136_v12  ;;  %v7813_v12 = vld [vmem:[#allocation8 + $0xc04] ss:$16 sps:$4 sm:$0xff]  }
 0x216   :  { %5551 = vmatprep.subr.bf16.mxu0 %v7728_v59  ;;  %5592 = vmatprep.subr.bf16.mxu1 %v7731_v61  ;;  %v7777_v59 = vld [vmem:[#allocation8 + $0xcc4] ss:$16 sps:$4 sm:$0xff]   ;;  %v8743_v61 = vmax.bf16 %v2275_v21, %v2259_v62  ;;  %v7799_v62 = vld [vmem:[#allocation8 + $0xc40] ss:$16 sps:$4 sm:$0xff]  }
 0x217   :  { %v7816_v21 = vld [vmem:[#allocation8 + $0xe04] ss:$16 sps:$4 sm:$0xff]  }
 0x219   :  { %5552 = vmatpush2.bf16.msra.mxu0 %v7726_v1  ;;  %5593 = vmatpush2.bf16.msra.mxu1 %v7729_v38  ;;  %v7780_v1 = vld [vmem:[#allocation8 + $0xec4] ss:$16 sps:$4 sm:$0xff]  }
 0x21a   :  { %5553 = vmatprep.subr.bf16.mxu0 %v7734_v6  ;;  %5594 = vmatprep.subr.bf16.mxu1 %v7737_v7  ;;  %v2234_v7 = vrot.slane %v2229_v54, %v8640_v32  ;;  %v7819_v54 = vld [vmem:[#allocation8 + $0xde4] ss:$16 sps:$4 sm:$0xff]  }
 0x21d   :  { %5554 = vmatpush2.bf16.msra.mxu0 %v7732_v8  ;;  %5595 = vmatpush2.bf16.msra.mxu1 %v7735_v9  ;;  %v7775_v8 = vld [vmem:[#allocation8 + $0xcc0] ss:$16 sps:$4 sm:$0xff]  }
 0x21e   :  { %5555 = vmatprep.subr.bf16.mxu0 %v7740_v10  ;;  %5596 = vmatprep.subr.bf16.mxu1 %v7743_v14  ;;  %v2248_v10 = vrot.slane %v2243_v56, %v8640_v32  ;;  %v7783_v14 = vld [vmem:[#allocation8 + $0xca4] ss:$16 sps:$4 sm:$0xff]   ;;  %v7817_v56 = vld [vmem:[#allocation8 + $0xde0] ss:$16 sps:$4 sm:$0xff]  }
 0x221   :  { %5556 = vmatpush2.bf16.msra.mxu0 %v7738_v16  ;;  %5597 = vmatpush2.bf16.msra.mxu1 %v7741_v17 }
 0x222   :  { %5557 = vmatprep.subr.bf16.mxu0 %v7746_v19  ;;  %5598 = vmatprep.subr.bf16.mxu1 %v7749_v53  ;;  %v7786_v19 = vld [vmem:[#allocation8 + $0xea4] ss:$16 sps:$4 sm:$0xff]  }
 0x225   :  { %5558 = vmatpush2.bf16.msra.mxu0 %v7744_v23  ;;  %5599 = vmatpush2.bf16.msra.mxu1 %v7747_v29 }
 0x226   :  { %5559 = vmatprep.subr.bf16.mxu0 %v7752_v26  ;;  %5600 = vmatprep.subr.bf16.mxu1 %v7755_v44  ;;  %v7789_v44 = vld [vmem:[#allocation8 + $0xc84] ss:$16 sps:$4 sm:$0xff]  }
 0x229   :  { %5560 = vmatpush2.bf16.msra.mxu0 %v7750_v30  ;;  %5601 = vmatpush2.bf16.msra.mxu1 %v7753_v33 }
 0x22a   :  { %5561 = vmatprep.subr.bf16.mxu0 %v7758_v36  ;;  %5602 = vmatprep.subr.bf16.mxu1 %v7761_v42  ;;  %v7795_v42 = vld [vmem:[#allocation8 + $0xc64] ss:$16 sps:$4 sm:$0xff]  }
 0x22d   :  { %5562 = vmatpush2.bf16.msra.mxu0 %v7756_v5  ;;  %5603 = vmatpush2.bf16.msra.mxu1 %v7759_v3  ;;  %v7798_v5 = vld [vmem:[#allocation8 + $0xe64] ss:$16 sps:$4 sm:$0xff]   ;;  %v7796_v3 = vld [vmem:[#allocation8 + $0xe60] ss:$16 sps:$4 sm:$0xff]  }
 0x22e   :  { %5563 = vmatprep.subr.bf16.mxu0 %v7764_v45  ;;  %5604 = vmatprep.subr.bf16.mxu1 %v7767_v48  ;;  %v7801_v45 = vld [vmem:[#allocation8 + $0xc44] ss:$16 sps:$4 sm:$0xff]   ;;  %v7802_v48 = vld [vmem:[#allocation8 + $0xe40] ss:$16 sps:$4 sm:$0xff]  }
 0x231   :  { %5564 = vmatpush2.bf16.msra.mxu0 %v7762_v57  ;;  %5605 = vmatpush2.bf16.msra.mxu1 %v7765_v4  ;;  %v7807_v57 = vld [vmem:[#allocation8 + $0xc24] ss:$16 sps:$4 sm:$0xff]   ;;  %v7805_v4 = vld [vmem:[#allocation8 + $0xc20] ss:$16 sps:$4 sm:$0xff]  }
 0x232   :  { %5615 = vmatprep.subr.bf16.mxu0 %v7771_v50  ;;  %5656 = vmatprep.subr.bf16.mxu1 %v7774_v51  ;;  %v7808_v50 = vld [vmem:[#allocation8 + $0xe20] ss:$16 sps:$4 sm:$0xff]  }
 0x233   :  { %v7811_v51 = vld [vmem:[#allocation8 + $0xc00] ss:$16 sps:$4 sm:$0xff]  }
 0x234   :  { %v8745_v38 = vpop.f32.mrf.mxu0  ;;  %5566 = vmatmul.mubr.bf16.vlgmr.msra.gmra.mxu0 %v8741_v55  ;;  %v8748_v6 = vpop.f32.mrf.mxu1  ;;  %5607 = vmatmul.mubr.bf16.vlgmr.msra.gmra.mxu1 %v8743_v61 }
 0x235   :  { %5616 = vmatpush1.bf16.msra.mxu0 %v7769_v52  ;;  %5657 = vmatpush1.bf16.msra.mxu1 %v7772_v35  ;;  %v7814_v52 = vld [vmem:[#allocation8 + $0xe00] ss:$16 sps:$4 sm:$0xff]   ;;  %v7822_v35 = vld [vmem:[#allocation8 + $0xfe4] ss:$16 sps:$4 sm:$0xff]  }
 0x236   :  { %v1973_v9 = vpop.f32.mrf.mxu0  ;;  %5617 = vmatprep.subr.bf16.mxu0 %v7777_v59  ;;  %v2014_v17 = vpop.f32.mrf.mxu1  ;;  %5658 = vmatprep.subr.bf16.mxu1 %v7780_v1  ;;  %v7820_v59 = vld [vmem:[#allocation8 + $0xfe0] ss:$16 sps:$4 sm:$0xff]   ;;  %v7825_v1 = vld [vmem:[#allocation8 + $0xdc4] ss:$16 sps:$4 sm:$0xff]  }
 0x237   :  { %v2034_v16 = vpack.c.bf16 %v1973_v9, %v1973_v9  ;;  %v2036_v20 = vpack.c.bf16 %v2014_v17, %v2014_v17  ;;  %v7826_v9 = vld [vmem:[#allocation8 + $0xfc0] ss:$16 sps:$4 sm:$0xff]   ;;  %v7837_v17 = vld [vmem:[#allocation8 + $0xd84] ss:$16 sps:$4 sm:$0xff]  }
 0x238   :  { %v1975_v22 = vpop.f32.mrf.mxu0  ;;  %v2016_v23 = vpop.f32.mrf.mxu1 }
 0x239   :  { %v2262_v53 = vadd.bf16 %v2234_v7, %v2034_v16  ;;  %5618 = vmatpush1.bf16.msra.mxu0 %v7775_v8  ;;  %v2264_v29 = vadd.bf16 %v2248_v10, %v2036_v20  ;;  %5659 = vmatpush1.bf16.msra.mxu1 %v7778_v11  ;;  %v7828_v7 = vld [vmem:[#allocation8 + $0xfc4] ss:$16 sps:$4 sm:$0xff]   ;;  %v7823_v8 = vld [vmem:[#allocation8 + $0xdc0] ss:$16 sps:$4 sm:$0xff]  }
 0x23a   :  { %v1976_v26 = vpop.f32.mrf.mxu0  ;;  %5619 = vmatprep.subr.bf16.mxu0 %v7783_v14  ;;  %v2017_v25 = vpop.f32.mrf.mxu1  ;;  %5660 = vmatprep.subr.bf16.mxu1 %v7786_v19  ;;  %v7831_v10 = vld [vmem:[#allocation8 + $0xda4] ss:$16 sps:$4 sm:$0xff]   ;;  %v7829_v14 = vld [vmem:[#allocation8 + $0xda0] ss:$16 sps:$4 sm:$0xff]   ;;  %v2118_v19 = vrot.slane %v8730_v27, %v8628_v60 }
 0x23b   :  { %v2278_v30 = vmul.bf16 1009007652, %v2262_v53  ;;  %v2280_v33 = vmul.bf16 1009007652, %v2264_v29  ;;  %v7834_v11 = vld [vmem:[#allocation8 + $0xfa4] ss:$16 sps:$4 sm:$0xff]  }
 0x23c   :  { %v7832_v16 = vld [vmem:[#allocation8 + $0xfa0] ss:$16 sps:$4 sm:$0xff]   ;;  %v7840_v20 = vld [vmem:[#allocation8 + $0xf84] ss:$16 sps:$4 sm:$0xff]  }
 0x23d   :  { %5620 = vmatpush1.bf16.msra.mxu0 %v7781_v24  ;;  %v8753_v36 = vmax.bf16 %v2278_v30, %v2262_v53  ;;  %5661 = vmatpush1.bf16.msra.mxu1 %v7784_v28  ;;  %v8755_v40 = vmax.bf16 %v2280_v33, %v2264_v29  ;;  %v7835_v22 = vld [vmem:[#allocation8 + $0xd80] ss:$16 sps:$4 sm:$0xff]   ;;  %v7843_v23 = vld [vmem:[#allocation8 + $0xd64] ss:$16 sps:$4 sm:$0xff]   ;;  %v2134_v24 = vcombine.high %v2118_v19, %v2118_v19 }
 0x23e   :  { %5621 = vmatprep.subr.bf16.mxu0 %v7789_v44  ;;  %5662 = vmatprep.subr.bf16.mxu1 %v7792_v31  ;;  %v7838_v53 = vld [vmem:[#allocation8 + $0xf80] ss:$16 sps:$4 sm:$0xff]   ;;  %v7846_v29 = vld [vmem:[#allocation8 + $0xf64] ss:$16 sps:$4 sm:$0xff]   ;;  %v2222_v28 = vpack.i.b16 %v2118_v19, %v2118_v19  ;;  %v2033_v33 = vpack.c.bf16 %v8745_v38, %v8745_v38 }
 0x23f   :  { %5647 = vmatprep.mubr.bf16.mxu0 %v8753_v36  ;;  %5688 = vmatprep.mubr.bf16.mxu1 %v8755_v40  ;;  %v7841_v26 = vld [vmem:[#allocation8 + $0xd60] ss:$16 sps:$4 sm:$0xff]   ;;  %v7849_v30 = vld [vmem:[#allocation8 + $0xd44] ss:$16 sps:$4 sm:$0xff]   ;;  %v2236_v25 = vpack.i.b16 %v2134_v24, %v2134_v24  ;;  %v7885_v24 = vld [vmem:[#allocation8 + $0x8c] ss:$16 sps:$4 sm:$0xff]  }
 0x240   :  { %v7844_v44 = vld [vmem:[#allocation8 + $0xf60] ss:$16 sps:$4 sm:$0xff]   ;;  %v7852_v27 = vld [vmem:[#allocation8 + $0xf44] ss:$16 sps:$4 sm:$0xff]  }
 0x241   :  { %5622 = vmatpush1.bf16.msra.mxu0 %v7787_v39  ;;  %5663 = vmatpush1.bf16.msra.mxu1 %v7790_v41  ;;  %v7847_v31 = vld [vmem:[#allocation8 + $0xd40] ss:$16 sps:$4 sm:$0xff]   ;;  %v2227_v39 = vrot.slane %v2222_v28, %v8640_v32  ;;  %v7861_v38 = vld [vmem:[#allocation8 + $0xd04] ss:$16 sps:$4 sm:$0xff]   ;;  %v7886_v28 = vld [vmem:[#allocation8 + $0x288] ss:$16 sps:$4 sm:$0xff]  }
 0x242   :  { %5623 = vmatprep.subr.bf16.mxu0 %v7795_v42  ;;  %5664 = vmatprep.subr.bf16.mxu1 %v7798_v5  ;;  %v7850_v41 = vld [vmem:[#allocation8 + $0xf40] ss:$16 sps:$4 sm:$0xff]   ;;  %v7855_v42 = vld [vmem:[#allocation8 + $0xd24] ss:$16 sps:$4 sm:$0xff]   ;;  %v2035_v5 = vpack.c.bf16 %v8748_v6, %v8748_v6 }
 0x243   :  { %v7862_v6 = vld [vmem:[#allocation8 + $0xf00] ss:$16 sps:$4 sm:$0xff]  }
 0x245   :  { %5624 = vmatpush1.bf16.msra.mxu0 %v7793_v43  ;;  %5665 = vmatpush1.bf16.msra.mxu1 %v7796_v3  ;;  %v2241_v43 = vrot.slane %v2236_v25, %v8640_v32  ;;  %v7858_v3 = vld [vmem:[#allocation8 + $0xf24] ss:$16 sps:$4 sm:$0xff]   ;;  %v7889_v25 = vld [vmem:[#allocation8 + $0x68] ss:$16 sps:$4 sm:$0xff]  }
 0x246   :  { %5625 = vmatprep.subr.bf16.mxu0 %v7801_v45  ;;  %5666 = vmatprep.subr.bf16.mxu1 %v7804_v18  ;;  %v7853_v45 = vld [vmem:[#allocation8 + $0xd20] ss:$16 sps:$4 sm:$0xff]   ;;  %v2261_v18 = vadd.bf16 %v2227_v39, %v2033_v33  ;;  %v7900_v33 = vld [vmem:[#allocation8 + $0x24c] ss:$16 sps:$4 sm:$0xff]   ;;  %v7895_v39 = vld [vmem:[#allocation8 + $0x48] ss:$16 sps:$4 sm:$0xff]  }
 0x249   :  { %5626 = vmatpush1.bf16.msra.mxu0 %v7799_v62  ;;  %5667 = vmatpush1.bf16.msra.mxu1 %v7802_v48  ;;  %v7856_v62 = vld [vmem:[#allocation8 + $0xf20] ss:$16 sps:$4 sm:$0xff]   ;;  %v2263_v48 = vadd.bf16 %v2241_v43, %v2035_v5  ;;  %v7906_v5 = vld [vmem:[#allocation8 + $0x22c] ss:$16 sps:$4 sm:$0xff]   ;;  %v7901_v43 = vld [vmem:[#allocation8 + $0x28] ss:$16 sps:$4 sm:$0xff]  }
 0x24a   :  { %5627 = vmatprep.subr.bf16.mxu0 %v7807_v57  ;;  %5668 = vmatprep.subr.bf16.mxu1 %v7810_v49  ;;  %v7864_v57 = vld [vmem:[#allocation8 + $0xf04] ss:$16 sps:$4 sm:$0xff]   ;;  %v7859_v49 = vld [vmem:[#allocation8 + $0xd00] ss:$16 sps:$4 sm:$0xff]  }
 0x24d   :  { %5628 = vmatpush1.bf16.msra.mxu0 %v7805_v4  ;;  %5669 = vmatpush1.bf16.msra.mxu1 %v7808_v50  ;;  %v2277_v4 = vmul.bf16 1009007652, %v2261_v18  ;;  %v7867_v50 = vld [vmem:[#allocation8 + $0xec] ss:$16 sps:$4 sm:$0xff]  }
 0x24e   :  { %5629 = vmatprep.subr.bf16.mxu0 %v7813_v12  ;;  %5670 = vmatprep.subr.bf16.mxu1 %v7816_v21  ;;  %v2279_v12 = vmul.bf16 1009007652, %v2263_v48  ;;  %v7870_v21 = vld [vmem:[#allocation8 + $0x2ec] ss:$16 sps:$4 sm:$0xff]  }
 0x251   :  { %5630 = vmatpush1.bf16.msra.mxu0 %v7811_v51  ;;  %5671 = vmatpush1.bf16.msra.mxu1 %v7814_v52  ;;  %v7865_v51 = vld [vmem:[#allocation8 + $0xe8] ss:$16 sps:$4 sm:$0xff]   ;;  %v8767_v52 = vmax.bf16 %v2277_v4, %v2261_v18  ;;  %v7912_v18 = vld [vmem:[#allocation8 + $0x20c] ss:$16 sps:$4 sm:$0xff]  }
 0x252   :  { %5631 = vmatprep.subr.bf16.mxu0 %v7819_v54  ;;  %5672 = vmatprep.subr.bf16.mxu1 %v7822_v35  ;;  %v7868_v54 = vld [vmem:[#allocation8 + $0x2e8] ss:$16 sps:$4 sm:$0xff]   ;;  %v8769_v35 = vmax.bf16 %v2279_v12, %v2263_v48  ;;  %v7915_v48 = vld [vmem:[#allocation8 + $0x1ec] ss:$16 sps:$4 sm:$0xff]  }
 0x253   :  { %v7916_v4 = vld [vmem:[#allocation8 + $0x3e8] ss:$16 sps:$4 sm:$0xff]  }
 0x254   :  { %v7919_v12 = vld [vmem:[#allocation8 + $0x1c8] ss:$16 sps:$4 sm:$0xff]  }
 0x255   :  { %5632 = vmatpush2.bf16.msra.mxu0 %v7817_v56  ;;  %5673 = vmatpush2.bf16.msra.mxu1 %v7820_v59  ;;  %v7873_v56 = vld [vmem:[#allocation8 + $0xcc] ss:$16 sps:$4 sm:$0xff]  }
 0x256   :  { %5633 = vmatprep.subr.bf16.mxu0 %v7825_v1  ;;  %5674 = vmatprep.subr.bf16.mxu1 %v7828_v7  ;;  %v7876_v1 = vld [vmem:[#allocation8 + $0x2cc] ss:$16 sps:$4 sm:$0xff]  }
 0x259   :  { %5634 = vmatpush2.bf16.msra.mxu0 %v7823_v8  ;;  %5675 = vmatpush2.bf16.msra.mxu1 %v7826_v9  ;;  %v7871_v8 = vld [vmem:[#allocation8 + $0xc8] ss:$16 sps:$4 sm:$0xff]  }
 0x25a   :  { %5635 = vmatprep.subr.bf16.mxu0 %v7831_v10  ;;  %5676 = vmatprep.subr.bf16.mxu1 %v7834_v11  ;;  %v7874_v11 = vld [vmem:[#allocation8 + $0x2c8] ss:$16 sps:$4 sm:$0xff]  }
 0x25d   :  { %5636 = vmatpush2.bf16.msra.mxu0 %v7829_v14  ;;  %5677 = vmatpush2.bf16.msra.mxu1 %v7832_v16  ;;  %v7879_v14 = vld [vmem:[#allocation8 + $0xac] ss:$16 sps:$4 sm:$0xff]  }
 0x25e   :  { %5637 = vmatprep.subr.bf16.mxu0 %v7837_v17  ;;  %5678 = vmatprep.subr.bf16.mxu1 %v7840_v20  ;;  %v7882_v17 = vld [vmem:[#allocation8 + $0x2ac] ss:$16 sps:$4 sm:$0xff]  }
 0x261   :  { %5638 = vmatpush2.bf16.msra.mxu0 %v7835_v22  ;;  %5679 = vmatpush2.bf16.msra.mxu1 %v7838_v53  ;;  %v7877_v53 = vld [vmem:[#allocation8 + $0xa8] ss:$16 sps:$4 sm:$0xff]  }
 0x262   :  { %5639 = vmatprep.subr.bf16.mxu0 %v7843_v23  ;;  %5680 = vmatprep.subr.bf16.mxu1 %v7846_v29 }
 0x265   :  { %5640 = vmatpush2.bf16.msra.mxu0 %v7841_v26  ;;  %5681 = vmatpush2.bf16.msra.mxu1 %v7844_v44  ;;  %v7888_v26 = vld [vmem:[#allocation8 + $0x28c] ss:$16 sps:$4 sm:$0xff]  }
 0x266   :  { %5641 = vmatprep.subr.bf16.mxu0 %v7849_v30  ;;  %5682 = vmatprep.subr.bf16.mxu1 %v7852_v27  ;;  %v7891_v44 = vld [vmem:[#allocation8 + $0x6c] ss:$16 sps:$4 sm:$0xff]   ;;  %v7892_v27 = vld [vmem:[#allocation8 + $0x268] ss:$16 sps:$4 sm:$0xff]  }
 0x267   :  { %v7894_v30 = vld [vmem:[#allocation8 + $0x26c] ss:$16 sps:$4 sm:$0xff]  }
 0x269   :  { %5642 = vmatpush2.bf16.msra.mxu0 %v7847_v31  ;;  %5683 = vmatpush2.bf16.msra.mxu1 %v7850_v41  ;;  %v7897_v31 = vld [vmem:[#allocation8 + $0x4c] ss:$16 sps:$4 sm:$0xff]   ;;  %v7898_v41 = vld [vmem:[#allocation8 + $0x248] ss:$16 sps:$4 sm:$0xff]  }
 0x26a   :  { %5643 = vmatprep.subr.bf16.mxu0 %v7855_v42  ;;  %5684 = vmatprep.subr.bf16.mxu1 %v7858_v3  ;;  %v7903_v42 = vld [vmem:[#allocation8 + $0x2c] ss:$16 sps:$4 sm:$0xff]   ;;  %v7904_v3 = vld [vmem:[#allocation8 + $0x228] ss:$16 sps:$4 sm:$0xff]  }
 0x26d   :  { %5644 = vmatpush2.bf16.msra.mxu0 %v7853_v45  ;;  %5685 = vmatpush2.bf16.msra.mxu1 %v7856_v62  ;;  %v7909_v45 = vld [vmem:[#allocation8 + $0xc] ss:$16 sps:$4 sm:$0xff]   ;;  %v7907_v62 = vld [vmem:[#allocation8 + $0x8] ss:$16 sps:$4 sm:$0xff]  }
 0x26e   :  { %5645 = vmatprep.subr.bf16.mxu0 %v7861_v38  ;;  %5686 = vmatprep.subr.bf16.mxu1 %v7864_v57  ;;  %v7910_v38 = vld [vmem:[#allocation8 + $0x208] ss:$16 sps:$4 sm:$0xff]   ;;  %v7918_v57 = vld [vmem:[#allocation8 + $0x3ec] ss:$16 sps:$4 sm:$0xff]  }
 0x271   :  { %5646 = vmatpush2.bf16.msra.mxu0 %v7859_v49  ;;  %5687 = vmatpush2.bf16.msra.mxu1 %v7862_v6  ;;  %v7913_v49 = vld [vmem:[#allocation8 + $0x1e8] ss:$16 sps:$4 sm:$0xff]   ;;  %v7921_v6 = vld [vmem:[#allocation8 + $0x1cc] ss:$16 sps:$4 sm:$0xff]  }
 0x272   :  { %5697 = vmatprep.subr.bf16.mxu0 %v7867_v50  ;;  %5738 = vmatprep.subr.bf16.mxu1 %v7870_v21  ;;  %v7924_v50 = vld [vmem:[#allocation8 + $0x3cc] ss:$16 sps:$4 sm:$0xff]   ;;  %v7922_v21 = vld [vmem:[#allocation8 + $0x3c8] ss:$16 sps:$4 sm:$0xff]  }
 0x274   :  { %v5403_v59 = vpop.f32.mrf.mxu0  ;;  %5648 = vmatmul.mubr.bf16.vlgmr.msra.gmra.mxu0 %v8767_v52  ;;  %v5444_v7 = vpop.f32.mrf.mxu1  ;;  %5689 = vmatmul.mubr.bf16.vlgmr.msra.gmra.mxu1 %v8769_v35 }
 0x275   :  { %5698 = vmatpush1.bf16.msra.mxu0 %v7865_v51  ;;  %v8773_v9 = vadd.f32 %v5444_v7, %v5403_v59  ;;  %5729 = vmatprep.mubr.bf16.mxu0 %v8650_v63  ;;  %v7880_v63 = vld [vmem:[#allocation8 + $0x2a8] ss:$16 sps:$4 sm:$0xff]   ;;  %v7927_v51 = vld [vmem:[#allocation8 + $0x1ac] ss:$16 sps:$4 sm:$0xff]  }
 0x276   :  { %5739 = vmatpush1.bf16.msra.mxu1 %v7868_v54  ;;  %v5405_v10 = vpop.f32.mrf.mxu0  ;;  %5770 = vmatprep.mubr.bf16.mxu1 %v8652_v0  ;;  %v5446_v16 = vpop.f32.mrf.mxu1  ;;  %v7883_v0 = vld [vmem:[#allocation8 + $0x88] ss:$16 sps:$4 sm:$0xff]   ;;  %v7930_v54 = vld [vmem:[#allocation8 + $0x3ac] ss:$16 sps:$4 sm:$0xff]  }
 0x277   :  { %5699 = vmatprep.subr.bf16.mxu0 %v7873_v56  ;;  %v8777_v19 = vadd.f32 %v5446_v16, %v5405_v10  ;;  %5740 = vmatprep.subr.bf16.mxu1 %v7876_v1  ;;  %v7925_v56 = vld [vmem:[#allocation8 + $0x1a8] ss:$16 sps:$4 sm:$0xff]   ;;  %v7933_v1 = vld [vmem:[#allocation8 + $0x18c] ss:$16 sps:$4 sm:$0xff]  }
 0x278   :  { %v5407_v20 = vpop.f32.mrf.mxu0  ;;  %v5448_v22 = vpop.f32.mrf.mxu1  ;;  %v7928_v59 = vld [vmem:[#allocation8 + $0x3a8] ss:$16 sps:$4 sm:$0xff]   ;;  %v7936_v7 = vld [vmem:[#allocation8 + $0x38c] ss:$16 sps:$4 sm:$0xff]  }
 0x279   :  { %5700 = vmatpush1.bf16.msra.mxu0 %v7871_v8  ;;  %v7931_v8 = vld [vmem:[#allocation8 + $0x188] ss:$16 sps:$4 sm:$0xff]   ;;  %v7945_v20 = vld [vmem:[#allocation8 + $0x14c] ss:$16 sps:$4 sm:$0xff]  }
 0x27a   :  { %5741 = vmatpush1.bf16.msra.mxu1 %v7874_v11  ;;  %v5408_v23 = vpop.f32.mrf.mxu0  ;;  %5701 = vmatprep.subr.bf16.mxu0 %v7879_v14  ;;  %v5449_v29 = vpop.f32.mrf.mxu1  ;;  %v7934_v10 = vld [vmem:[#allocation8 + $0x388] ss:$16 sps:$4 sm:$0xff]   ;;  %v7939_v11 = vld [vmem:[#allocation8 + $0x16c] ss:$16 sps:$4 sm:$0xff]  }
 0x27b   :  { %5742 = vmatprep.subr.bf16.mxu1 %v7882_v17  ;;  %v7942_v14 = vld [vmem:[#allocation8 + $0x36c] ss:$16 sps:$4 sm:$0xff]   ;;  %v7937_v16 = vld [vmem:[#allocation8 + $0x168] ss:$16 sps:$4 sm:$0xff]  }
 0x27c   :  { %v7940_v17 = vld [vmem:[#allocation8 + $0x368] ss:$16 sps:$4 sm:$0xff]   ;;  %v7948_v22 = vld [vmem:[#allocation8 + $0x34c] ss:$16 sps:$4 sm:$0xff]  }
 0x27d   :  { %5702 = vmatpush1.bf16.msra.mxu0 %v7877_v53  ;;  %v7943_v53 = vld [vmem:[#allocation8 + $0x148] ss:$16 sps:$4 sm:$0xff]  }
 0x27e   :  { %5743 = vmatpush1.bf16.msra.mxu1 %v7880_v63  ;;  %5703 = vmatprep.subr.bf16.mxu0 %v7885_v24  ;;  %v7946_v23 = vld [vmem:[#allocation8 + $0x348] ss:$16 sps:$4 sm:$0xff]   ;;  %v7951_v63 = vld [vmem:[#allocation8 + $0x12c] ss:$16 sps:$4 sm:$0xff]  }
 0x27f   :  { %5744 = vmatprep.subr.bf16.mxu1 %v7888_v26  ;;  %v7954_v24 = vld [vmem:[#allocation8 + $0x32c] ss:$16 sps:$4 sm:$0xff]   ;;  %v7949_v29 = vld [vmem:[#allocation8 + $0x128] ss:$16 sps:$4 sm:$0xff]  }
 0x280   :  { %v7952_v26 = vld [vmem:[#allocation8 + $0x328] ss:$16 sps:$4 sm:$0xff]  }
 0x281   :  { %5704 = vmatpush1.bf16.msra.mxu0 %v7883_v0  ;;  %v7957_v0 = vld [vmem:[#allocation8 + $0x10c] ss:$16 sps:$4 sm:$0xff]  }
 0x282   :  { %5745 = vmatpush1.bf16.msra.mxu1 %v7886_v28  ;;  %5705 = vmatprep.subr.bf16.mxu0 %v7891_v44  ;;  %v7960_v28 = vld [vmem:[#allocation8 + $0x30c] ss:$16 sps:$4 sm:$0xff]   ;;  %v7955_v44 = vld [vmem:[#allocation8 + $0x108] ss:$16 sps:$4 sm:$0xff]  }
 0x283   :  { %5746 = vmatprep.subr.bf16.mxu1 %v7894_v30  ;;  %v7958_v30 = vld [vmem:[#allocation8 + $0x308] ss:$16 sps:$4 sm:$0xff]  }
 0x285   :  { %5706 = vmatpush1.bf16.msra.mxu0 %v7889_v25  ;;  %v7963_v25 = vld [vmem:[#allocation8 + $0x4ec] ss:$16 sps:$4 sm:$0xff]  }
 0x286   :  { %5747 = vmatpush1.bf16.msra.mxu1 %v7892_v27  ;;  %5707 = vmatprep.subr.bf16.mxu0 %v7897_v31  ;;  %v7966_v27 = vld [vmem:[#allocation8 + $0x6ec] ss:$16 sps:$4 sm:$0xff]   ;;  %v7961_v31 = vld [vmem:[#allocation8 + $0x4e8] ss:$16 sps:$4 sm:$0xff]  }
 0x287   :  { %5748 = vmatprep.subr.bf16.mxu1 %v7900_v33  ;;  %v7964_v33 = vld [vmem:[#allocation8 + $0x6e8] ss:$16 sps:$4 sm:$0xff]  }
 0x289   :  { %5708 = vmatpush1.bf16.msra.mxu0 %v7895_v39  ;;  %v7969_v39 = vld [vmem:[#allocation8 + $0x4cc] ss:$16 sps:$4 sm:$0xff]  }
 0x28a   :  { %5749 = vmatpush1.bf16.msra.mxu1 %v7898_v41  ;;  %5709 = vmatprep.subr.bf16.mxu0 %v7903_v42  ;;  %v7972_v42 = vld [vmem:[#allocation8 + $0x6cc] ss:$16 sps:$4 sm:$0xff]  }
 0x28b   :  { %5750 = vmatprep.subr.bf16.mxu1 %v7906_v5 }
 0x28d   :  { %5710 = vmatpush1.bf16.msra.mxu0 %v7901_v43 }
 0x28e   :  { %5751 = vmatpush1.bf16.msra.mxu1 %v7904_v3  ;;  %5711 = vmatprep.subr.bf16.mxu0 %v7909_v45  ;;  %v7967_v3 = vld [vmem:[#allocation8 + $0x4c8] ss:$16 sps:$4 sm:$0xff]  }
 0x28f   :  { %5752 = vmatprep.subr.bf16.mxu1 %v7912_v18  ;;  %v7970_v18 = vld [vmem:[#allocation8 + $0x6c8] ss:$16 sps:$4 sm:$0xff]  }
 0x291   :  { %5712 = vmatpush1.bf16.msra.mxu0 %v7907_v62  ;;  %v7975_v62 = vld [vmem:[#allocation8 + $0x4ac] ss:$16 sps:$4 sm:$0xff]  }
 0x292   :  { %5753 = vmatpush1.bf16.msra.mxu1 %v7910_v38  ;;  %5713 = vmatprep.subr.bf16.mxu0 %v7915_v48 }
 0x293   :  { %5754 = vmatprep.subr.bf16.mxu1 %v7918_v57 }
 0x295   :  { %5714 = vmatpush2.bf16.msra.mxu0 %v7913_v49 }
 0x296   :  { %5755 = vmatpush2.bf16.msra.mxu1 %v7916_v4  ;;  %5715 = vmatprep.subr.bf16.mxu0 %v7921_v6  ;;  %v7976_v6 = vld [vmem:[#allocation8 + $0x6a8] ss:$16 sps:$4 sm:$0xff]  }
 0x297   :  { %5756 = vmatprep.subr.bf16.mxu1 %v7924_v50  ;;  %v7981_v50 = vld [vmem:[#allocation8 + $0x48c] ss:$16 sps:$4 sm:$0xff]  }
 0x299   :  { %5716 = vmatpush2.bf16.msra.mxu0 %v7919_v12 }
 0x29a   :  { %5757 = vmatpush2.bf16.msra.mxu1 %v7922_v21  ;;  %5717 = vmatprep.subr.bf16.mxu0 %v7927_v51  ;;  %v7982_v21 = vld [vmem:[#allocation8 + $0x688] ss:$16 sps:$4 sm:$0xff]   ;;  %v7987_v51 = vld [vmem:[#allocation8 + $0x46c] ss:$16 sps:$4 sm:$0xff]  }
 0x29b   :  { %5758 = vmatprep.subr.bf16.mxu1 %v7930_v54  ;;  %v7990_v54 = vld [vmem:[#allocation8 + $0x66c] ss:$16 sps:$4 sm:$0xff]  }
 0x29d   :  { %5718 = vmatpush2.bf16.msra.mxu0 %v7925_v56  ;;  %v7985_v56 = vld [vmem:[#allocation8 + $0x468] ss:$16 sps:$4 sm:$0xff]  }
 0x29e   :  { %5759 = vmatpush2.bf16.msra.mxu1 %v7928_v59  ;;  %5719 = vmatprep.subr.bf16.mxu0 %v7933_v1  ;;  %v7988_v59 = vld [vmem:[#allocation8 + $0x668] ss:$16 sps:$4 sm:$0xff]   ;;  %v7993_v1 = vld [vmem:[#allocation8 + $0x44c] ss:$16 sps:$4 sm:$0xff]  }
 0x29f   :  { %5760 = vmatprep.subr.bf16.mxu1 %v7936_v7  ;;  %v7996_v7 = vld [vmem:[#allocation8 + $0x64c] ss:$16 sps:$4 sm:$0xff]  }
 0x2a1   :  { %5720 = vmatpush2.bf16.msra.mxu0 %v7931_v8  ;;  %v7991_v8 = vld [vmem:[#allocation8 + $0x448] ss:$16 sps:$4 sm:$0xff]  }
 0x2a2   :  { %5761 = vmatpush2.bf16.msra.mxu1 %v7934_v10  ;;  %5721 = vmatprep.subr.bf16.mxu0 %v7939_v11  ;;  %v7994_v10 = vld [vmem:[#allocation8 + $0x648] ss:$16 sps:$4 sm:$0xff]   ;;  %v7999_v11 = vld [vmem:[#allocation8 + $0x42c] ss:$16 sps:$4 sm:$0xff]  }
 0x2a3   :  { %5762 = vmatprep.subr.bf16.mxu1 %v7942_v14  ;;  %v8002_v14 = vld [vmem:[#allocation8 + $0x62c] ss:$16 sps:$4 sm:$0xff]  }
 0x2a5   :  { %5722 = vmatpush2.bf16.msra.mxu0 %v7937_v16  ;;  %v7997_v16 = vld [vmem:[#allocation8 + $0x428] ss:$16 sps:$4 sm:$0xff]  }
 0x2a6   :  { %5763 = vmatpush2.bf16.msra.mxu1 %v7940_v17  ;;  %5723 = vmatprep.subr.bf16.mxu0 %v7945_v20  ;;  %v8000_v17 = vld [vmem:[#allocation8 + $0x628] ss:$16 sps:$4 sm:$0xff]   ;;  %v8005_v20 = vld [vmem:[#allocation8 + $0x40c] ss:$16 sps:$4 sm:$0xff]  }
 0x2a7   :  { %5764 = vmatprep.subr.bf16.mxu1 %v7948_v22  ;;  %v8008_v22 = vld [vmem:[#allocation8 + $0x60c] ss:$16 sps:$4 sm:$0xff]  }
 0x2a9   :  { %5724 = vmatpush2.bf16.msra.mxu0 %v7943_v53  ;;  %v8003_v53 = vld [vmem:[#allocation8 + $0x408] ss:$16 sps:$4 sm:$0xff]  }
 0x2aa   :  { %5765 = vmatpush2.bf16.msra.mxu1 %v7946_v23  ;;  %5725 = vmatprep.subr.bf16.mxu0 %v7951_v63  ;;  %v8006_v23 = vld [vmem:[#allocation8 + $0x608] ss:$16 sps:$4 sm:$0xff]   ;;  %v8011_v63 = vld [vmem:[#allocation8 + $0x5ec] ss:$16 sps:$4 sm:$0xff]  }
 0x2ab   :  { %5766 = vmatprep.subr.bf16.mxu1 %v7954_v24  ;;  %v8014_v24 = vld [vmem:[#allocation8 + $0x7ec] ss:$16 sps:$4 sm:$0xff]  }
 0x2ad   :  { %5726 = vmatpush2.bf16.msra.mxu0 %v7949_v29  ;;  %v8009_v29 = vld [vmem:[#allocation8 + $0x5e8] ss:$16 sps:$4 sm:$0xff]  }
 0x2ae   :  { %5767 = vmatpush2.bf16.msra.mxu1 %v7952_v26  ;;  %5727 = vmatprep.subr.bf16.mxu0 %v7957_v0  ;;  %v8012_v26 = vld [vmem:[#allocation8 + $0x7e8] ss:$16 sps:$4 sm:$0xff]   ;;  %v8017_v0 = vld [vmem:[#allocation8 + $0x5cc] ss:$16 sps:$4 sm:$0xff]  }
 0x2af   :  { %5768 = vmatprep.subr.bf16.mxu1 %v7960_v28  ;;  %v8020_v28 = vld [vmem:[#allocation8 + $0x7cc] ss:$16 sps:$4 sm:$0xff]  }
 0x2b1   :  { %5728 = vmatpush2.bf16.msra.mxu0 %v7955_v44  ;;  %v8015_v44 = vld [vmem:[#allocation8 + $0x5c8] ss:$16 sps:$4 sm:$0xff]  }
 0x2b2   :  { %5769 = vmatpush2.bf16.msra.mxu1 %v7958_v30  ;;  %5779 = vmatprep.subr.bf16.mxu0 %v7963_v25  ;;  %v8018_v30 = vld [vmem:[#allocation8 + $0x7c8] ss:$16 sps:$4 sm:$0xff]   ;;  %v8023_v25 = vld [vmem:[#allocation8 + $0x5ac] ss:$16 sps:$4 sm:$0xff]  }
 0x2b3   :  { %5820 = vmatprep.subr.bf16.mxu1 %v7966_v27  ;;  %v8026_v27 = vld [vmem:[#allocation8 + $0x7ac] ss:$16 sps:$4 sm:$0xff]  }
 0x2b4   :  { %v5485_v41 = vpop.f32.mrf.mxu0  ;;  %5730 = vmatmul.mubr.bf16.vlgmr.msra.gmra.mxu0 %v8672_v13  ;;  %v5526_v43 = vpop.f32.mrf.mxu1 }
 0x2b5   :  { %v5486_v5 = vadd.f32 %v5485_v41, %v8773_v9  ;;  %5771 = vmatmul.mubr.bf16.vlgmr.msra.gmra.mxu1 %v8674_v15  ;;  %5780 = vmatpush1.bf16.msra.mxu0 %v7961_v31  ;;  %v7978_v9 = vld [vmem:[#allocation8 + $0x6ac] ss:$16 sps:$4 sm:$0xff]   ;;  %v8021_v31 = vld [vmem:[#allocation8 + $0x5a8] ss:$16 sps:$4 sm:$0xff]  }
 0x2b6   :  { %5811 = vmatprep.mubr.bf16.mxu0 %v8684_v46  ;;  %5821 = vmatpush1.bf16.msra.mxu1 %v7964_v33  ;;  %v5487_v45 = vpop.f32.mrf.mxu0  ;;  %v5528_v48 = vpop.f32.mrf.mxu1  ;;  %v7973_v46 = vld [vmem:[#allocation8 + $0x4a8] ss:$16 sps:$4 sm:$0xff]   ;;  %v8032_v41 = vld [vmem:[#allocation8 + $0x78c] ss:$16 sps:$4 sm:$0xff]  }
 0x2b7   :  { %v8783_v38 = vadd.f32 %v5526_v43, %v5486_v5  ;;  %5852 = vmatprep.mubr.bf16.mxu1 %v8686_v47  ;;  %v5488_v13 = vadd.f32 %v5487_v45, %v8777_v19  ;;  %5781 = vmatprep.subr.bf16.mxu0 %v7969_v39  ;;  %v7984_v47 = vld [vmem:[#allocation8 + $0x68c] ss:$16 sps:$4 sm:$0xff]   ;;  %v7979_v19 = vld [vmem:[#allocation8 + $0x488] ss:$16 sps:$4 sm:$0xff]  }
 0x2b8   :  { %v5489_v57 = vpop.f32.mrf.mxu0  ;;  %5822 = vmatprep.subr.bf16.mxu1 %v7972_v42  ;;  %v5530_v49 = vpop.f32.mrf.mxu1  ;;  %v8024_v33 = vld [vmem:[#allocation8 + $0x7a8] ss:$16 sps:$4 sm:$0xff]   ;;  %v8029_v39 = vld [vmem:[#allocation8 + $0x58c] ss:$16 sps:$4 sm:$0xff]  }
 0x2b9   :  { %v8787_v15 = vadd.f32 %v5528_v48, %v5488_v13  ;;  %5782 = vmatpush1.bf16.msra.mxu0 %v7967_v3  ;;  %v8027_v42 = vld [vmem:[#allocation8 + $0x588] ss:$16 sps:$4 sm:$0xff]   ;;  %v8035_v43 = vld [vmem:[#allocation8 + $0x56c] ss:$16 sps:$4 sm:$0xff]  }
 0x2ba   :  { %5823 = vmatpush1.bf16.msra.mxu1 %v7970_v18  ;;  %v5490_v4 = vpop.f32.mrf.mxu0  ;;  %5783 = vmatprep.subr.bf16.mxu0 %v7975_v62  ;;  %v5531_v12 = vpop.f32.mrf.mxu1  ;;  %v8030_v5 = vld [vmem:[#allocation8 + $0x788] ss:$16 sps:$4 sm:$0xff]   ;;  %v8038_v3 = vld [vmem:[#allocation8 + $0x76c] ss:$16 sps:$4 sm:$0xff]  }
 0x2bb   :  { %5824 = vmatprep.subr.bf16.mxu1 %v7978_v9  ;;  %v8033_v45 = vld [vmem:[#allocation8 + $0x568] ss:$16 sps:$4 sm:$0xff]   ;;  %v8041_v62 = vld [vmem:[#allocation8 + $0x54c] ss:$16 sps:$4 sm:$0xff]  }
 0x2bc   :  { %v8036_v18 = vld [vmem:[#allocation8 + $0x768] ss:$16 sps:$4 sm:$0xff]   ;;  %v8044_v13 = vld [vmem:[#allocation8 + $0x74c] ss:$16 sps:$4 sm:$0xff]  }
 0x2bd   :  { %5784 = vmatpush1.bf16.msra.mxu0 %v7973_v46  ;;  %v8039_v48 = vld [vmem:[#allocation8 + $0x548] ss:$16 sps:$4 sm:$0xff]   ;;  %v8047_v57 = vld [vmem:[#allocation8 + $0x52c] ss:$16 sps:$4 sm:$0xff]  }
 0x2be   :  { %5825 = vmatpush1.bf16.msra.mxu1 %v7976_v6  ;;  %5785 = vmatprep.subr.bf16.mxu0 %v7981_v50  ;;  %v8042_v9 = vld [vmem:[#allocation8 + $0x748] ss:$16 sps:$4 sm:$0xff]   ;;  %v8050_v49 = vld [vmem:[#allocation8 + $0x72c] ss:$16 sps:$4 sm:$0xff]  }
 0x2bf   :  { %5826 = vmatprep.subr.bf16.mxu1 %v7984_v47  ;;  %v8045_v46 = vld [vmem:[#allocation8 + $0x528] ss:$16 sps:$4 sm:$0xff]   ;;  %v8053_v6 = vld [vmem:[#allocation8 + $0x50c] ss:$16 sps:$4 sm:$0xff]  }
 0x2c0   :  { %v8048_v4 = vld [vmem:[#allocation8 + $0x728] ss:$16 sps:$4 sm:$0xff]   ;;  %v8056_v50 = vld [vmem:[#allocation8 + $0x70c] ss:$16 sps:$4 sm:$0xff]  }
 0x2c1   :  { %5786 = vmatpush1.bf16.msra.mxu0 %v7979_v19  ;;  %v8051_v12 = vld [vmem:[#allocation8 + $0x508] ss:$16 sps:$4 sm:$0xff]   ;;  %v8059_v19 = vld [vmem:[#allocation8 + $0x8ec] ss:$16 sps:$4 sm:$0xff]  }
 0x2c2   :  { %5827 = vmatpush1.bf16.msra.mxu1 %v7982_v21  ;;  %5787 = vmatprep.subr.bf16.mxu0 %v7987_v51  ;;  %v8054_v47 = vld [vmem:[#allocation8 + $0x708] ss:$16 sps:$4 sm:$0xff]   ;;  %v8062_v21 = vld [vmem:[#allocation8 + $0xaec] ss:$16 sps:$4 sm:$0xff]  }
 0x2c3   :  { %5828 = vmatprep.subr.bf16.mxu1 %v7990_v54  ;;  %v8057_v51 = vld [vmem:[#allocation8 + $0x8e8] ss:$16 sps:$4 sm:$0xff]  }
 0x2c4   :  { %v8060_v54 = vld [vmem:[#allocation8 + $0xae8] ss:$16 sps:$4 sm:$0xff]  }
 0x2c5   :  { %5788 = vmatpush1.bf16.msra.mxu0 %v7985_v56  ;;  %v8065_v56 = vld [vmem:[#allocation8 + $0x8cc] ss:$16 sps:$4 sm:$0xff]  }
 0x2c6   :  { %5829 = vmatpush1.bf16.msra.mxu1 %v7988_v59  ;;  %5789 = vmatprep.subr.bf16.mxu0 %v7993_v1  ;;  %v8068_v1 = vld [vmem:[#allocation8 + $0xacc] ss:$16 sps:$4 sm:$0xff]  }
 0x2c7   :  { %5830 = vmatprep.subr.bf16.mxu1 %v7996_v7 }
 0x2c9   :  { %5790 = vmatpush1.bf16.msra.mxu0 %v7991_v8 }
 0x2ca   :  { %5831 = vmatpush1.bf16.msra.mxu1 %v7994_v10  ;;  %5791 = vmatprep.subr.bf16.mxu0 %v7999_v11  ;;  %v8063_v10 = vld [vmem:[#allocation8 + $0x8c8] ss:$16 sps:$4 sm:$0xff]  }
 0x2cb   :  { %5832 = vmatprep.subr.bf16.mxu1 %v8002_v14  ;;  %v8066_v14 = vld [vmem:[#allocation8 + $0xac8] ss:$16 sps:$4 sm:$0xff]  }
 0x2cd   :  { %5792 = vmatpush1.bf16.msra.mxu0 %v7997_v16  ;;  %v8071_v16 = vld [vmem:[#allocation8 + $0x8ac] ss:$16 sps:$4 sm:$0xff]  }
 0x2ce   :  { %5833 = vmatpush1.bf16.msra.mxu1 %v8000_v17  ;;  %5793 = vmatprep.subr.bf16.mxu0 %v8005_v20 }
 0x2cf   :  { %5834 = vmatprep.subr.bf16.mxu1 %v8008_v22 }
 0x2d1   :  { %5794 = vmatpush1.bf16.msra.mxu0 %v8003_v53 }
 0x2d2   :  { %5835 = vmatpush1.bf16.msra.mxu1 %v8006_v23  ;;  %5795 = vmatprep.subr.bf16.mxu0 %v8011_v63  ;;  %v8072_v63 = vld [vmem:[#allocation8 + $0xaa8] ss:$16 sps:$4 sm:$0xff]  }
 0x2d3   :  { %5836 = vmatprep.subr.bf16.mxu1 %v8014_v24  ;;  %v8077_v24 = vld [vmem:[#allocation8 + $0x88c] ss:$16 sps:$4 sm:$0xff]  }
 0x2d5   :  { %5796 = vmatpush2.bf16.msra.mxu0 %v8009_v29 }
 0x2d6   :  { %5837 = vmatpush2.bf16.msra.mxu1 %v8012_v26  ;;  %5797 = vmatprep.subr.bf16.mxu0 %v8017_v0  ;;  %v8078_v26 = vld [vmem:[#allocation8 + $0xa88] ss:$16 sps:$4 sm:$0xff]   ;;  %v8083_v0 = vld [vmem:[#allocation8 + $0x86c] ss:$16 sps:$4 sm:$0xff]  }
 0x2d7   :  { %5838 = vmatprep.subr.bf16.mxu1 %v8020_v28  ;;  %v8086_v28 = vld [vmem:[#allocation8 + $0xa6c] ss:$16 sps:$4 sm:$0xff]  }
 0x2d9   :  { %5798 = vmatpush2.bf16.msra.mxu0 %v8015_v44  ;;  %v8081_v44 = vld [vmem:[#allocation8 + $0x868] ss:$16 sps:$4 sm:$0xff]  }
 0x2da   :  { %5839 = vmatpush2.bf16.msra.mxu1 %v8018_v30  ;;  %5799 = vmatprep.subr.bf16.mxu0 %v8023_v25  ;;  %v8084_v30 = vld [vmem:[#allocation8 + $0xa68] ss:$16 sps:$4 sm:$0xff]   ;;  %v8089_v25 = vld [vmem:[#allocation8 + $0x84c] ss:$16 sps:$4 sm:$0xff]  }
 0x2db   :  { %5840 = vmatprep.subr.bf16.mxu1 %v8026_v27  ;;  %v8092_v27 = vld [vmem:[#allocation8 + $0xa4c] ss:$16 sps:$4 sm:$0xff]  }
 0x2dd   :  { %5800 = vmatpush2.bf16.msra.mxu0 %v8021_v31  ;;  %v8087_v31 = vld [vmem:[#allocation8 + $0x848] ss:$16 sps:$4 sm:$0xff]  }
 0x2de   :  { %5841 = vmatpush2.bf16.msra.mxu1 %v8024_v33  ;;  %5801 = vmatprep.subr.bf16.mxu0 %v8029_v39  ;;  %v8090_v33 = vld [vmem:[#allocation8 + $0xa48] ss:$16 sps:$4 sm:$0xff]   ;;  %v8095_v39 = vld [vmem:[#allocation8 + $0x82c] ss:$16 sps:$4 sm:$0xff]  }
 0x2df   :  { %5842 = vmatprep.subr.bf16.mxu1 %v8032_v41  ;;  %v8098_v41 = vld [vmem:[#allocation8 + $0xa2c] ss:$16 sps:$4 sm:$0xff]  }
 0x2e1   :  { %5802 = vmatpush2.bf16.msra.mxu0 %v8027_v42  ;;  %v8093_v42 = vld [vmem:[#allocation8 + $0x828] ss:$16 sps:$4 sm:$0xff]  }
 0x2e2   :  { %5843 = vmatpush2.bf16.msra.mxu1 %v8030_v5  ;;  %5803 = vmatprep.subr.bf16.mxu0 %v8035_v43  ;;  %v8096_v5 = vld [vmem:[#allocation8 + $0xa28] ss:$16 sps:$4 sm:$0xff]   ;;  %v8101_v43 = vld [vmem:[#allocation8 + $0x80c] ss:$16 sps:$4 sm:$0xff]  }
 0x2e3   :  { %5844 = vmatprep.subr.bf16.mxu1 %v8038_v3  ;;  %v8104_v3 = vld [vmem:[#allocation8 + $0xa0c] ss:$16 sps:$4 sm:$0xff]  }
 0x2e5   :  { %5804 = vmatpush2.bf16.msra.mxu0 %v8033_v45  ;;  %v8099_v45 = vld [vmem:[#allocation8 + $0x808] ss:$16 sps:$4 sm:$0xff]  }
 0x2e6   :  { %5845 = vmatpush2.bf16.msra.mxu1 %v8036_v18  ;;  %5805 = vmatprep.subr.bf16.mxu0 %v8041_v62  ;;  %v8102_v18 = vld [vmem:[#allocation8 + $0xa08] ss:$16 sps:$4 sm:$0xff]   ;;  %v8107_v62 = vld [vmem:[#allocation8 + $0x9ec] ss:$16 sps:$4 sm:$0xff]  }
 0x2e7   :  { %5846 = vmatprep.subr.bf16.mxu1 %v8044_v13  ;;  %v8110_v13 = vld [vmem:[#allocation8 + $0xbec] ss:$16 sps:$4 sm:$0xff]  }
 0x2e9   :  { %5806 = vmatpush2.bf16.msra.mxu0 %v8039_v48  ;;  %v8105_v48 = vld [vmem:[#allocation8 + $0x9e8] ss:$16 sps:$4 sm:$0xff]  }
 0x2ea   :  { %5847 = vmatpush2.bf16.msra.mxu1 %v8042_v9  ;;  %5807 = vmatprep.subr.bf16.mxu0 %v8047_v57  ;;  %v8108_v9 = vld [vmem:[#allocation8 + $0xbe8] ss:$16 sps:$4 sm:$0xff]   ;;  %v8113_v57 = vld [vmem:[#allocation8 + $0x9cc] ss:$16 sps:$4 sm:$0xff]  }
 0x2eb   :  { %5848 = vmatprep.subr.bf16.mxu1 %v8050_v49  ;;  %v8116_v49 = vld [vmem:[#allocation8 + $0xbcc] ss:$16 sps:$4 sm:$0xff]  }
 0x2ed   :  { %5808 = vmatpush2.bf16.msra.mxu0 %v8045_v46  ;;  %v8111_v46 = vld [vmem:[#allocation8 + $0x9c8] ss:$16 sps:$4 sm:$0xff]  }
 0x2ee   :  { %5849 = vmatpush2.bf16.msra.mxu1 %v8048_v4  ;;  %5809 = vmatprep.subr.bf16.mxu0 %v8053_v6  ;;  %v8114_v4 = vld [vmem:[#allocation8 + $0xbc8] ss:$16 sps:$4 sm:$0xff]   ;;  %v8119_v6 = vld [vmem:[#allocation8 + $0x9ac] ss:$16 sps:$4 sm:$0xff]  }
 0x2ef   :  { %5850 = vmatprep.subr.bf16.mxu1 %v8056_v50  ;;  %v8122_v50 = vld [vmem:[#allocation8 + $0xbac] ss:$16 sps:$4 sm:$0xff]  }
 0x2f1   :  { %5810 = vmatpush2.bf16.msra.mxu0 %v8051_v12  ;;  %v8117_v12 = vld [vmem:[#allocation8 + $0x9a8] ss:$16 sps:$4 sm:$0xff]  }
 0x2f2   :  { %5851 = vmatpush2.bf16.msra.mxu1 %v8054_v47  ;;  %5861 = vmatprep.subr.bf16.mxu0 %v8059_v19  ;;  %v8120_v47 = vld [vmem:[#allocation8 + $0xba8] ss:$16 sps:$4 sm:$0xff]   ;;  %v8125_v19 = vld [vmem:[#allocation8 + $0x98c] ss:$16 sps:$4 sm:$0xff]  }
 0x2f3   :  { %5902 = vmatprep.subr.bf16.mxu1 %v8062_v21  ;;  %v8128_v21 = vld [vmem:[#allocation8 + $0xb8c] ss:$16 sps:$4 sm:$0xff]  }
 0x2f4   :  { %v5567_v59 = vpop.f32.mrf.mxu0  ;;  %5812 = vmatmul.mubr.bf16.vlgmr.msra.gmra.mxu0 %v8707_v58  ;;  %v5608_v8 = vpop.f32.mrf.mxu1 }
 0x2f5   :  { %v5568_v7 = vadd.f32 %v5567_v59, %v8783_v38  ;;  %5853 = vmatmul.mubr.bf16.vlgmr.msra.gmra.mxu1 %v8709_v2  ;;  %5862 = vmatpush1.bf16.msra.mxu0 %v8057_v51  ;;  %v8074_v38 = vld [vmem:[#allocation8 + $0xaac] ss:$16 sps:$4 sm:$0xff]   ;;  %v8123_v51 = vld [vmem:[#allocation8 + $0x988] ss:$16 sps:$4 sm:$0xff]  }
 0x2f6   :  { %5893 = vmatprep.mubr.bf16.mxu0 %v8719_v34  ;;  %5903 = vmatpush1.bf16.msra.mxu1 %v8060_v54  ;;  %v5569_v11 = vpop.f32.mrf.mxu0  ;;  %v5610_v20 = vpop.f32.mrf.mxu1  ;;  %v8069_v34 = vld [vmem:[#allocation8 + $0x8a8] ss:$16 sps:$4 sm:$0xff]   ;;  %v8134_v59 = vld [vmem:[#allocation8 + $0xb6c] ss:$16 sps:$4 sm:$0xff]  }
 0x2f7   :  { %v8793_v17 = vadd.f32 %v5608_v8, %v5568_v7  ;;  %5934 = vmatprep.mubr.bf16.mxu1 %v8721_v37  ;;  %v5570_v58 = vadd.f32 %v5569_v11, %v8787_v15  ;;  %5863 = vmatprep.subr.bf16.mxu0 %v8065_v56  ;;  %v8080_v37 = vld [vmem:[#allocation8 + $0xa8c] ss:$16 sps:$4 sm:$0xff]   ;;  %v8075_v15 = vld [vmem:[#allocation8 + $0x888] ss:$16 sps:$4 sm:$0xff]  }
 0x2f8   :  { %v5571_v22 = vpop.f32.mrf.mxu0  ;;  %5904 = vmatprep.subr.bf16.mxu1 %v8068_v1  ;;  %v5612_v53 = vpop.f32.mrf.mxu1  ;;  %v8126_v54 = vld [vmem:[#allocation8 + $0xb88] ss:$16 sps:$4 sm:$0xff]   ;;  %v8131_v56 = vld [vmem:[#allocation8 + $0x96c] ss:$16 sps:$4 sm:$0xff]  }
 0x2f9   :  { %v8797_v2 = vadd.f32 %v5610_v20, %v5570_v58  ;;  %5864 = vmatpush1.bf16.msra.mxu0 %v8063_v10  ;;  %v8129_v1 = vld [vmem:[#allocation8 + $0x968] ss:$16 sps:$4 sm:$0xff]   ;;  %v8137_v8 = vld [vmem:[#allocation8 + $0x94c] ss:$16 sps:$4 sm:$0xff]  }
 0x2fa   :  { %5905 = vmatpush1.bf16.msra.mxu1 %v8066_v14  ;;  %v5572_v23 = vpop.f32.mrf.mxu0  ;;  %5865 = vmatprep.subr.bf16.mxu0 %v8071_v16  ;;  %v5613_v29 = vpop.f32.mrf.mxu1  ;;  %v8132_v7 = vld [vmem:[#allocation8 + $0xb68] ss:$16 sps:$4 sm:$0xff]   ;;  %v8140_v10 = vld [vmem:[#allocation8 + $0xb4c] ss:$16 sps:$4 sm:$0xff]  }
 0x2fb   :  { %5906 = vmatprep.subr.bf16.mxu1 %v8074_v38  ;;  %v8135_v11 = vld [vmem:[#allocation8 + $0x948] ss:$16 sps:$4 sm:$0xff]   ;;  %v8143_v16 = vld [vmem:[#allocation8 + $0x92c] ss:$16 sps:$4 sm:$0xff]  }
 0x2fc   :  { %v8138_v14 = vld [vmem:[#allocation8 + $0xb48] ss:$16 sps:$4 sm:$0xff]   ;;  %v8146_v58 = vld [vmem:[#allocation8 + $0xb2c] ss:$16 sps:$4 sm:$0xff]  }
 0x2fd   :  { %5866 = vmatpush1.bf16.msra.mxu0 %v8069_v34  ;;  %v8141_v20 = vld [vmem:[#allocation8 + $0x928] ss:$16 sps:$4 sm:$0xff]   ;;  %v8149_v22 = vld [vmem:[#allocation8 + $0x90c] ss:$16 sps:$4 sm:$0xff]  }
 0x2fe   :  { %5907 = vmatpush1.bf16.msra.mxu1 %v8072_v63  ;;  %5867 = vmatprep.subr.bf16.mxu0 %v8077_v24  ;;  %v8144_v38 = vld [vmem:[#allocation8 + $0xb28] ss:$16 sps:$4 sm:$0xff]   ;;  %v8152_v53 = vld [vmem:[#allocation8 + $0xb0c] ss:$16 sps:$4 sm:$0xff]  }
 0x2ff   :  { %5908 = vmatprep.subr.bf16.mxu1 %v8080_v37  ;;  %v8147_v34 = vld [vmem:[#allocation8 + $0x908] ss:$16 sps:$4 sm:$0xff]   ;;  %v8155_v63 = vld [vmem:[#allocation8 + $0xcec] ss:$16 sps:$4 sm:$0xff]  }
 0x300   :  { %v8150_v23 = vld [vmem:[#allocation8 + $0xb08] ss:$16 sps:$4 sm:$0xff]   ;;  %v8158_v24 = vld [vmem:[#allocation8 + $0xeec] ss:$16 sps:$4 sm:$0xff]  }
 0x301   :  { %5868 = vmatpush1.bf16.msra.mxu0 %v8075_v15  ;;  %v8153_v29 = vld [vmem:[#allocation8 + $0xce8] ss:$16 sps:$4 sm:$0xff]   ;;  %v8161_v15 = vld [vmem:[#allocation8 + $0xccc] ss:$16 sps:$4 sm:$0xff]  }
 0x302   :  { %5909 = vmatpush1.bf16.msra.mxu1 %v8078_v26  ;;  %5869 = vmatprep.subr.bf16.mxu0 %v8083_v0  ;;  %v8156_v37 = vld [vmem:[#allocation8 + $0xee8] ss:$16 sps:$4 sm:$0xff]   ;;  %v8164_v0 = vld [vmem:[#allocation8 + $0xecc] ss:$16 sps:$4 sm:$0xff]  }
 0x303   :  { %5910 = vmatprep.subr.bf16.mxu1 %v8086_v28 }
 0x305   :  { %5870 = vmatpush1.bf16.msra.mxu0 %v8081_v44 }
 0x306   :  { %5911 = vmatpush1.bf16.msra.mxu1 %v8084_v30  ;;  %5871 = vmatprep.subr.bf16.mxu0 %v8089_v25  ;;  %v8159_v30 = vld [vmem:[#allocation8 + $0xcc8] ss:$16 sps:$4 sm:$0xff]  }
 0x307   :  { %5912 = vmatprep.subr.bf16.mxu1 %v8092_v27  ;;  %v8162_v27 = vld [vmem:[#allocation8 + $0xec8] ss:$16 sps:$4 sm:$0xff]  }
 0x309   :  { %5872 = vmatpush1.bf16.msra.mxu0 %v8087_v31  ;;  %v8167_v31 = vld [vmem:[#allocation8 + $0xcac] ss:$16 sps:$4 sm:$0xff]  }
 0x30a   :  { %5913 = vmatpush1.bf16.msra.mxu1 %v8090_v33  ;;  %5873 = vmatprep.subr.bf16.mxu0 %v8095_v39 }
 0x30b   :  { %5914 = vmatprep.subr.bf16.mxu1 %v8098_v41  ;;  %v8165_v41 = vld [vmem:[#allocation8 + $0xca8] ss:$16 sps:$4 sm:$0xff]  }
 0x30d   :  { %5874 = vmatpush1.bf16.msra.mxu0 %v8093_v42  ;;  %v8168_v42 = vld [vmem:[#allocation8 + $0xea8] ss:$16 sps:$4 sm:$0xff]  }
 0x30e   :  { %5915 = vmatpush1.bf16.msra.mxu1 %v8096_v5  ;;  %5875 = vmatprep.subr.bf16.mxu0 %v8101_v43  ;;  %v8173_v5 = vld [vmem:[#allocation8 + $0xc8c] ss:$16 sps:$4 sm:$0xff]  }
 0x30f   :  { %5916 = vmatprep.subr.bf16.mxu1 %v8104_v3  ;;  %v8176_v3 = vld [vmem:[#allocation8 + $0xe8c] ss:$16 sps:$4 sm:$0xff]  }
 0x311   :  { %5876 = vmatpush1.bf16.msra.mxu0 %v8099_v45  ;;  %v8171_v45 = vld [vmem:[#allocation8 + $0xc88] ss:$16 sps:$4 sm:$0xff]  }
 0x312   :  { %5917 = vmatpush1.bf16.msra.mxu1 %v8102_v18  ;;  %5877 = vmatprep.subr.bf16.mxu0 %v8107_v62  ;;  %v8179_v18 = vld [vmem:[#allocation8 + $0xc6c] ss:$16 sps:$4 sm:$0xff]  }
 0x313   :  { %5918 = vmatprep.subr.bf16.mxu1 %v8110_v13  ;;  %v8182_v62 = vld [vmem:[#allocation8 + $0xe6c] ss:$16 sps:$4 sm:$0xff]   ;;  %v8177_v13 = vld [vmem:[#allocation8 + $0xc68] ss:$16 sps:$4 sm:$0xff]  }
 0x315   :  { %5878 = vmatpush2.bf16.msra.mxu0 %v8105_v48  ;;  %v8180_v48 = vld [vmem:[#allocation8 + $0xe68] ss:$16 sps:$4 sm:$0xff]  }
 0x316   :  { %5919 = vmatpush2.bf16.msra.mxu1 %v8108_v9  ;;  %5879 = vmatprep.subr.bf16.mxu0 %v8113_v57  ;;  %v8185_v9 = vld [vmem:[#allocation8 + $0xc4c] ss:$16 sps:$4 sm:$0xff]  }
 0x317   :  { %5920 = vmatprep.subr.bf16.mxu1 %v8116_v49  ;;  %v8188_v57 = vld [vmem:[#allocation8 + $0xe4c] ss:$16 sps:$4 sm:$0xff]   ;;  %v8183_v49 = vld [vmem:[#allocation8 + $0xc48] ss:$16 sps:$4 sm:$0xff]  }
 0x319   :  { %5880 = vmatpush2.bf16.msra.mxu0 %v8111_v46  ;;  %v8186_v46 = vld [vmem:[#allocation8 + $0xe48] ss:$16 sps:$4 sm:$0xff]  }
 0x31a   :  { %5921 = vmatpush2.bf16.msra.mxu1 %v8114_v4  ;;  %5881 = vmatprep.subr.bf16.mxu0 %v8119_v6  ;;  %v8191_v4 = vld [vmem:[#allocation8 + $0xc2c] ss:$16 sps:$4 sm:$0xff]  }
 0x31b   :  { %5922 = vmatprep.subr.bf16.mxu1 %v8122_v50  ;;  %v8194_v6 = vld [vmem:[#allocation8 + $0xe2c] ss:$16 sps:$4 sm:$0xff]   ;;  %v8189_v50 = vld [vmem:[#allocation8 + $0xc28] ss:$16 sps:$4 sm:$0xff]  }
 0x31d   :  { %5882 = vmatpush2.bf16.msra.mxu0 %v8117_v12  ;;  %v8192_v12 = vld [vmem:[#allocation8 + $0xe28] ss:$16 sps:$4 sm:$0xff]  }
 0x31e   :  { %5923 = vmatpush2.bf16.msra.mxu1 %v8120_v47  ;;  %5883 = vmatprep.subr.bf16.mxu0 %v8125_v19  ;;  %v8197_v47 = vld [vmem:[#allocation8 + $0xc0c] ss:$16 sps:$4 sm:$0xff]  }
 0x31f   :  { %5924 = vmatprep.subr.bf16.mxu1 %v8128_v21  ;;  %v8200_v19 = vld [vmem:[#allocation8 + $0xe0c] ss:$16 sps:$4 sm:$0xff]   ;;  %v8195_v21 = vld [vmem:[#allocation8 + $0xc08] ss:$16 sps:$4 sm:$0xff]  }
 0x321   :  { %5884 = vmatpush2.bf16.msra.mxu0 %v8123_v51  ;;  %v8198_v51 = vld [vmem:[#allocation8 + $0xe08] ss:$16 sps:$4 sm:$0xff]  }
 0x322   :  { %5925 = vmatpush2.bf16.msra.mxu1 %v8126_v54  ;;  %5885 = vmatprep.subr.bf16.mxu0 %v8131_v56  ;;  %v8203_v54 = vld [vmem:[#allocation8 + $0xdec] ss:$16 sps:$4 sm:$0xff]  }
 0x323   :  { %5926 = vmatprep.subr.bf16.mxu1 %v8134_v59  ;;  %v8206_v56 = vld [vmem:[#allocation8 + $0xfec] ss:$16 sps:$4 sm:$0xff]   ;;  %v8201_v59 = vld [vmem:[#allocation8 + $0xde8] ss:$16 sps:$4 sm:$0xff]  }
 0x325   :  { %5886 = vmatpush2.bf16.msra.mxu0 %v8129_v1  ;;  %v8204_v1 = vld [vmem:[#allocation8 + $0xfe8] ss:$16 sps:$4 sm:$0xff]  }
 0x326   :  { %5927 = vmatpush2.bf16.msra.mxu1 %v8132_v7  ;;  %5887 = vmatprep.subr.bf16.mxu0 %v8137_v8  ;;  %v8209_v7 = vld [vmem:[#allocation8 + $0xdcc] ss:$16 sps:$4 sm:$0xff]  }
 0x327   :  { %5928 = vmatprep.subr.bf16.mxu1 %v8140_v10  ;;  %v8212_v8 = vld [vmem:[#allocation8 + $0xfcc] ss:$16 sps:$4 sm:$0xff]   ;;  %v8207_v10 = vld [vmem:[#allocation8 + $0xdc8] ss:$16 sps:$4 sm:$0xff]  }
 0x329   :  { %5888 = vmatpush2.bf16.msra.mxu0 %v8135_v11  ;;  %v8210_v11 = vld [vmem:[#allocation8 + $0xfc8] ss:$16 sps:$4 sm:$0xff]  }
 0x32a   :  { %5929 = vmatpush2.bf16.msra.mxu1 %v8138_v14  ;;  %5889 = vmatprep.subr.bf16.mxu0 %v8143_v16  ;;  %v8215_v14 = vld [vmem:[#allocation8 + $0xdac] ss:$16 sps:$4 sm:$0xff]  }
 0x32b   :  { %5930 = vmatprep.subr.bf16.mxu1 %v8146_v58  ;;  %v8218_v16 = vld [vmem:[#allocation8 + $0xfac] ss:$16 sps:$4 sm:$0xff]   ;;  %v8810_v58 = vld.sshfl [vmem:[#allocation10] sm:$0x33 pattern:$0x75316420] }
 0x32d   :  { %5890 = vmatpush2.bf16.msra.mxu0 %v8141_v20  ;;  %v8213_v20 = vld [vmem:[#allocation8 + $0xda8] ss:$16 sps:$4 sm:$0xff]  }
 0x32e   :  { %5931 = vmatpush2.bf16.msra.mxu1 %v8144_v38  ;;  %5891 = vmatprep.subr.bf16.mxu0 %v8149_v22  ;;  %v8216_v38 = vld [vmem:[#allocation8 + $0xfa8] ss:$16 sps:$4 sm:$0xff]   ;;  %v8221_v22 = vld [vmem:[#allocation8 + $0xd8c] ss:$16 sps:$4 sm:$0xff]  }
 0x32f   :  { %5932 = vmatprep.subr.bf16.mxu1 %v8152_v53  ;;  %v8224_v53 = vld [vmem:[#allocation8 + $0xf8c] ss:$16 sps:$4 sm:$0xff]  }
 0x331   :  { %5892 = vmatpush2.bf16.msra.mxu0 %v8147_v34  ;;  %v6038_v34 = vcombine.high %v8810_v58, %v8810_v58 }
 0x332   :  { %5933 = vmatpush2.bf16.msra.mxu1 %v8150_v23  ;;  %5943 = vmatprep.subr.bf16.mxu0 %v8155_v63  ;;  %v8219_v23 = vld [vmem:[#allocation8 + $0xd88] ss:$16 sps:$4 sm:$0xff]  }
 0x333   :  { %5984 = vmatprep.subr.bf16.mxu1 %v8158_v24  ;;  %v8222_v63 = vld [vmem:[#allocation8 + $0xf88] ss:$16 sps:$4 sm:$0xff]   ;;  %v8227_v24 = vld [vmem:[#allocation8 + $0xd6c] ss:$16 sps:$4 sm:$0xff]  }
 0x334   :  { %v5649_v26 = vpop.f32.mrf.mxu0  ;;  %5894 = vmatmul.mubr.bf16.vlgmr.msra.gmra.mxu0 %v8741_v55  ;;  %v5690_v44 = vpop.f32.mrf.mxu1 }
 0x335   :  { %v5650_v28 = vadd.f32 %v5649_v26, %v8793_v17  ;;  %5935 = vmatmul.mubr.bf16.vlgmr.msra.gmra.mxu1 %v8743_v61  ;;  %5944 = vmatpush1.bf16.msra.mxu0 %v8153_v29  ;;  %v8170_v17 = vld [vmem:[#allocation8 + $0xeac] ss:$16 sps:$4 sm:$0xff]   ;;  %v8225_v26 = vld [vmem:[#allocation8 + $0xd68] ss:$16 sps:$4 sm:$0xff]  }
 0x336   :  { %5975 = vmatprep.mubr.bf16.mxu0 %v8753_v36  ;;  %5985 = vmatpush1.bf16.msra.mxu1 %v8156_v37  ;;  %v8803_v25 = vpop.f32.mrf.mxu0  ;;  %v8808_v55 = vpop.f32.mrf.mxu1  ;;  %v8230_v29 = vld [vmem:[#allocation8 + $0xf6c] ss:$16 sps:$4 sm:$0xff]  }
 0x337   :  { %v8805_v33 = vadd.f32 %v5690_v44, %v5650_v28  ;;  %6016 = vmatprep.mubr.bf16.mxu1 %v8755_v40  ;;  %5945 = vmatprep.subr.bf16.mxu0 %v8161_v15  ;;  %v8174_v40 = vld [vmem:[#allocation8 + $0xe88] ss:$16 sps:$4 sm:$0xff]   ;;  %v5652_v37 = vadd.f32 %v8803_v25, %v8797_v2  ;;  %v8817_v15 = vrot.slane %v6038_v34, %v8628_v60  ;;  %v8233_v28 = vld [vmem:[#allocation8 + $0xd4c] ss:$16 sps:$4 sm:$0xff]  }
 0x338   :  { %v5653_v39 = vpop.f32.mrf.mxu0  ;;  %5986 = vmatprep.subr.bf16.mxu1 %v8164_v0  ;;  %v5694_v61 = vpop.f32.mrf.mxu1  ;;  %v8228_v0 = vld [vmem:[#allocation8 + $0xf68] ss:$16 sps:$4 sm:$0xff]   ;;  %v8236_v44 = vld [vmem:[#allocation8 + $0xf4c] ss:$16 sps:$4 sm:$0xff]  }
 0x339   :  { %5946 = vmatpush1.bf16.msra.mxu0 %v8159_v30  ;;  %v5693_v30 = vadd.f32 %v8808_v55, %v5652_v37  ;;  %v8234_v2 = vld [vmem:[#allocation8 + $0xf48] ss:$16 sps:$4 sm:$0xff]   ;;  %v8239_v25 = vld [vmem:[#allocation8 + $0xd2c] ss:$16 sps:$4 sm:$0xff]  }
 0x33a   :  { %5987 = vmatpush1.bf16.msra.mxu1 %v8162_v27  ;;  %v5654_v36 = vpop.f32.mrf.mxu0  ;;  %5947 = vmatprep.subr.bf16.mxu0 %v8167_v31  ;;  %v5695_v43 = vpop.f32.mrf.mxu1  ;;  %v6063_v27 = vpack.i.b16 %v8817_v15, %v8817_v15  ;;  %v8231_v31 = vld [vmem:[#allocation8 + $0xd48] ss:$16 sps:$4 sm:$0xff]   ;;  %v8245_v55 = vld [vmem:[#allocation8 + $0xd0c] ss:$16 sps:$4 sm:$0xff]  }
 0x33b   :  { %5988 = vmatprep.subr.bf16.mxu1 %v8170_v17  ;;  %v8242_v17 = vld [vmem:[#allocation8 + $0xf2c] ss:$16 sps:$4 sm:$0xff]   ;;  %v6027_v39 = vpack.c.bf16 %v5693_v30, %v5693_v30  ;;  %v8240_v36 = vld [vmem:[#allocation8 + $0xf28] ss:$16 sps:$4 sm:$0xff]  }
 0x33c   :  { %v6068_v61 = vrot.slane %v6063_v27, %v8640_v32  ;;  %v8243_v43 = vld [vmem:[#allocation8 + $0xd08] ss:$16 sps:$4 sm:$0xff]   ;;  %v8274_v30 = vld [vmem:[#allocation11 + $0x98] sm:$0xff]  }
 0x33d   :  { %5948 = vmatpush1.bf16.msra.mxu0 %v8165_v41  ;;  %v8237_v41 = vld [vmem:[#allocation8 + $0xd28] ss:$16 sps:$4 sm:$0xff]  }
 0x33e   :  { %5989 = vmatpush1.bf16.msra.mxu1 %v8168_v42  ;;  %5949 = vmatprep.subr.bf16.mxu0 %v8173_v5  ;;  %v8248_v42 = vld [vmem:[#allocation8 + $0xf0c] ss:$16 sps:$4 sm:$0xff]   ;;  %v6084_v5 = vadd.bf16 %v6068_v61, %v6027_v39  ;;  %v8272_v34 = vld [vmem:[#allocation11 + $0xa0] sm:$0xff]   ;;  %v8275_v39 = vld [vmem:[#allocation11 + $0xd0] sm:$0xff]  }
 0x33f   :  { %5990 = vmatprep.subr.bf16.mxu1 %v8176_v3  ;;  %v8246_v3 = vld [vmem:[#allocation8 + $0xf08] ss:$16 sps:$4 sm:$0xff]  }
 0x341   :  { %5950 = vmatpush1.bf16.msra.mxu0 %v8171_v45  ;;  %v8249_v45 = vld [vmem:[#allocation11 + $0x78] sm:$0xff]  }
 0x342   :  { %5991 = vmatpush1.bf16.msra.mxu1 %v8174_v40  ;;  %5951 = vmatprep.subr.bf16.mxu0 %v8179_v18  ;;  %v6088_v40 = vmul.bf16 1009007652, %v6084_v5  ;;  %v8250_v18 = vld [vmem:[#allocation11 + $0x38] sm:$0xff]  }
 0x343   :  { %5992 = vmatprep.subr.bf16.mxu1 %v8182_v62  ;;  %v8251_v62 = vld [vmem:[#allocation11 + $0x70] sm:$0xff]  }
 0x345   :  { %5952 = vmatpush1.bf16.msra.mxu0 %v8177_v13 }
 0x346   :  { %5993 = vmatpush1.bf16.msra.mxu1 %v8180_v48  ;;  %5953 = vmatprep.subr.bf16.mxu0 %v8185_v9  ;;  %v6092_v48 = vmax.bf16 %v6088_v40, %v6084_v5  ;;  %v8277_v5 = vld [vmem:[#allocation11 + $0xc8] sm:$0xff]   ;;  %v8281_v40 = vld [vmem:[#allocation14 + $0x38] sm:$0xff]  }
 0x347   :  { %5994 = vmatprep.subr.bf16.mxu1 %v8188_v57  ;;  %v8252_v57 = vld [vmem:[#allocation11 + $0x30] sm:$0xff]  }
 0x349   :  { %5954 = vmatpush1.bf16.msra.mxu0 %v8183_v49 }
 0x34a   :  { %5995 = vmatpush1.bf16.msra.mxu1 %v8186_v46  ;;  %5955 = vmatprep.subr.bf16.mxu0 %v8191_v4  ;;  %v8253_v4 = vld [vmem:[#allocation11 + $0x68] sm:$0xff]  }
 0x34b   :  { %5996 = vmatprep.subr.bf16.mxu1 %v8194_v6 }
 0x34d   :  { %5956 = vmatpush1.bf16.msra.mxu0 %v8189_v50 }
 0x34e   :  { %5997 = vmatpush1.bf16.msra.mxu1 %v8192_v12  ;;  %5957 = vmatprep.subr.bf16.mxu0 %v8197_v47 }
 0x34f   :  { %5998 = vmatprep.subr.bf16.mxu1 %v8200_v19  ;;  %v8254_v19 = vld [vmem:[#allocation11 + $0x28] sm:$0xff]  }
 0x351   :  { %5958 = vmatpush1.bf16.msra.mxu0 %v8195_v21 }
 0x352   :  { %5999 = vmatpush1.bf16.msra.mxu1 %v8198_v51  ;;  %5959 = vmatprep.subr.bf16.mxu0 %v8203_v54  ;;  %v8265_v54 = vld [vmem:[#allocation11 + $0xf8] sm:$0xff]  }
 0x353   :  { %6000 = vmatprep.subr.bf16.mxu1 %v8206_v56  ;;  %v8266_v56 = vld [vmem:[#allocation11 + $0xb8] sm:$0xff]  }
 0x355   :  { %5960 = vmatpush2.bf16.msra.mxu0 %v8201_v59  ;;  %v8256_v59 = vld [vmem:[#allocation11 + $0x20] sm:$0xff]  }
 0x356   :  { %6001 = vmatpush2.bf16.msra.mxu1 %v8204_v1  ;;  %5961 = vmatprep.subr.bf16.mxu0 %v8209_v7  ;;  %v8827_v1 = vrot.slane %v8810_v58, %v8628_v60  ;;  %v8257_v7 = vld [vmem:[#allocation11 + $0x58] sm:$0xff]   ;;  %v8260_v60 = vld [vmem:[#allocation11 + $0x10] sm:$0xff]   ;;  %v6026_v58 = vpack.c.bf16 %v8805_v33, %v8805_v33 }
 0x357   :  { %6002 = vmatprep.subr.bf16.mxu1 %v8212_v8  ;;  %v8268_v8 = vld [vmem:[#allocation11 + $0xb0] sm:$0xff]  }
 0x359   :  { %5962 = vmatpush2.bf16.msra.mxu0 %v8207_v10  ;;  %v8269_v10 = vld [vmem:[#allocation11 + $0xe8] sm:$0xff]  }
 0x35a   :  { %6003 = vmatpush2.bf16.msra.mxu1 %v8210_v11  ;;  %5963 = vmatprep.subr.bf16.mxu0 %v8215_v14  ;;  %v8258_v11 = vld [vmem:[#allocation11 + $0x18] sm:$0xff]   ;;  %v6056_v14 = vpack.i.b16 %v8827_v1, %v8827_v1 }
 0x35b   :  { %6004 = vmatprep.subr.bf16.mxu1 %v8218_v16  ;;  %v8259_v16 = vld [vmem:[#allocation11 + $0x50] sm:$0xff]  }
 0x35d   :  { %5964 = vmatpush2.bf16.msra.mxu0 %v8213_v20  ;;  %v8270_v20 = vld [vmem:[#allocation11 + $0xa8] sm:$0xff]  }
 0x35e   :  { %6005 = vmatpush2.bf16.msra.mxu1 %v8216_v38  ;;  %5965 = vmatprep.subr.bf16.mxu0 %v8221_v22  ;;  %v8271_v38 = vld [vmem:[#allocation11 + $0xe0] sm:$0xff]   ;;  %v6061_v22 = vrot.slane %v6056_v14, %v8640_v32 }
 0x35f   :  { %6006 = vmatprep.subr.bf16.mxu1 %v8224_v53  ;;  %v8261_v53 = vld [vmem:[#allocation11 + $0x48] sm:$0xff]  }
 0x361   :  { %5966 = vmatpush2.bf16.msra.mxu0 %v8219_v23  ;;  %v8262_v23 = vld [vmem:[#allocation11 + $0x8] sm:$0xff]  }
 0x362   :  { %6007 = vmatpush2.bf16.msra.mxu1 %v8222_v63  ;;  %5967 = vmatprep.subr.bf16.mxu0 %v8227_v24  ;;  %v6083_v63 = vadd.bf16 %v6061_v22, %v6026_v58  ;;  %v8263_v24 = vld [vmem:[#allocation11 + $0x40] sm:$0xff]  }
 0x363   :  { %6008 = vmatprep.subr.bf16.mxu1 %v8230_v29  ;;  %v8264_v29 = vld [vmem:[#allocation11] sm:$0xff]  }
 0x364   :  { %v6087_v37 = vmul.bf16 1009007652, %v6083_v63 }
 0x365   :  { %5968 = vmatpush2.bf16.msra.mxu0 %v8225_v26 }
 0x366   :  { %6009 = vmatpush2.bf16.msra.mxu1 %v8228_v0  ;;  %5969 = vmatprep.subr.bf16.mxu0 %v8233_v28  ;;  %v6091_v26 = vmax.bf16 %v6087_v37, %v6083_v63  ;;  %v8273_v0 = vld [vmem:[#allocation11 + $0xd8] sm:$0xff]  }
 0x367   :  { %6010 = vmatprep.subr.bf16.mxu1 %v8236_v44 }
 0x369   :  { %5970 = vmatpush2.bf16.msra.mxu0 %v8231_v31 }
 0x36a   :  { %6011 = vmatpush2.bf16.msra.mxu1 %v8234_v2  ;;  %5971 = vmatprep.subr.bf16.mxu0 %v8239_v25 }
 0x36b   :  { %6012 = vmatprep.subr.bf16.mxu1 %v8242_v17 }
 0x36d   :  { %5972 = vmatpush2.bf16.msra.mxu0 %v8237_v41 }
 0x36e   :  { %6013 = vmatpush2.bf16.msra.mxu1 %v8240_v36  ;;  %5973 = vmatprep.subr.bf16.mxu0 %v8245_v55  ;;  %v8276_v36 = vld [vmem:[#allocation11 + $0x90] sm:$0xff]  }
 0x36f   :  { %6014 = vmatprep.subr.bf16.mxu1 %v8248_v42 }
 0x371   :  { %5974 = vmatpush2.bf16.msra.mxu0 %v8243_v43  ;;  %v8278_v43 = vld [vmem:[#allocation11 + $0x88] sm:$0xff]  }
 0x372   :  { %6015 = vmatpush2.bf16.msra.mxu1 %v8246_v3  ;;  %7386 = vmatprep.subr.bf16.mxu0 %v8249_v45  ;;  %v8279_v3 = vld [vmem:[#allocation11 + $0xc0] sm:$0xff]  }
 0x373   :  { %7408 = vmatprep.subr.bf16.mxu1 %v8265_v54  ;;  %v8280_v45 = vld [vmem:[#allocation11 + $0x80] sm:$0xff]  }
 0x374   :  { %v5731_v13 = vpop.f32.mrf.mxu0  ;;  %5976 = vmatmul.mubr.bf16.vlgmr.msra.gmra.mxu0 %v8767_v52  ;;  %v8255_v52 = vld [vmem:[#allocation11 + $0x60] sm:$0xff]  }
 0x375   :  { %v5772_v9 = vpop.f32.mrf.mxu1  ;;  %6017 = vmatmul.mubr.bf16.vlgmr.msra.gmra.mxu1 %v8769_v35  ;;  %7387 = vmatpush3.bf16.msra.mxu0 %v8250_v18  ;;  %v8267_v35 = vld [vmem:[#allocation11 + $0xf0] sm:$0xff]   ;;  %v8516_v18 = vmov 0.0  }
 0x376   :  { %v5773_v49 = vadd.f32 %v5772_v9, %v5731_v13  ;;  %6383 = vmatprep.mubr.bf16.mxu0 %v6092_v48  ;;  %v5733_v46 = vpop.f32.mrf.mxu0  ;;  %7388 = vmatprep.subr.bf16.mxu0 %v8251_v62  ;;  %v8282_v62 = vld [vmem:[#allocation14 + $0x30] sm:$0xff]   ;;  %v8283_v13 = vld [vmem:[#allocation14 + $0x28] sm:$0xff]   ;;  %v8284_v48 = vld [vmem:[#allocation14 + $0x20] sm:$0xff]  }
 0x377   :  { %v5774_v6 = vpop.f32.mrf.mxu1  ;;  %7409 = vmatpush3.bf16.msra.mxu1 %v8266_v56 }
 0x378   :  { %v5775_v50 = vadd.f32 %v5774_v6, %v5733_v46  ;;  %v5735_v12 = vpop.f32.mrf.mxu0  ;;  %7410 = vmatprep.subr.bf16.mxu1 %v8267_v35 }
 0x379   :  { %v5776_v47 = vpop.f32.mrf.mxu1  ;;  %7389 = vmatpush3.bf16.msra.mxu0 %v8252_v57 }
 0x37a   :  { %v5736_v21 = vpop.f32.mrf.mxu0  ;;  %7390 = vmatprep.subr.bf16.mxu0 %v8253_v4 }
 0x37b   :  { %v5777_v51 = vpop.f32.mrf.mxu1  ;;  %7411 = vmatpush3.bf16.msra.mxu1 %v8268_v8  ;;  %v6053_v21 = vcombine.high %v8827_v1, %v8827_v1 }
 0x37c   :  { %7412 = vmatprep.subr.bf16.mxu1 %v8269_v10  ;;  %v6054_v51 = vcombine.high %v8817_v15, %v8817_v15 }
 0x37d   :  { %7391 = vmatpush3.bf16.msra.mxu0 %v8254_v19  ;;  %v6070_v54 = vpack.i.b16 %v6053_v21, %v6053_v21 }
 0x37e   :  { %7392 = vmatprep.subr.bf16.mxu0 %v8255_v52  ;;  %v6077_v8 = vpack.i.b16 %v6054_v51, %v6054_v51 }
 0x37f   :  { %7413 = vmatpush3.bf16.msra.mxu1 %v8270_v20  ;;  %v6075_v14 = vrot.slane %v6070_v54, %v8640_v32 }
 0x380   :  { %7414 = vmatprep.subr.bf16.mxu1 %v8271_v38  ;;  %v6082_v1 = vrot.slane %v6077_v8, %v8640_v32 }
 0x381   :  { %7393 = vmatpush3.bf16.msra.mxu0 %v8256_v59 }
 0x382   :  { %7394 = vmatprep.subr.bf16.mxu0 %v8257_v7 }
 0x383   :  { %7415 = vmatpush3.bf16.msra.mxu1 %v8272_v34 }
 0x384   :  { %7416 = vmatprep.subr.bf16.mxu1 %v8273_v0 }
 0x385   :  { %7395 = vmatpush3.bf16.msra.mxu0 %v8258_v11 }
 0x386   :  { %7396 = vmatprep.subr.bf16.mxu0 %v8259_v16 }
 0x387   :  { %7417 = vmatpush3.bf16.msra.mxu1 %v8274_v30 }
 0x388   :  { %7418 = vmatprep.subr.bf16.mxu1 %v8275_v39 }
 0x389   :  { %7397 = vmatpush3.bf16.msra.mxu0 %v8260_v60 }
 0x38a   :  { %7398 = vmatprep.subr.bf16.mxu0 %v8261_v53 }
 0x38b   :  { %7419 = vmatpush3.bf16.msra.mxu1 %v8276_v36 }
 0x38c   :  { %7420 = vmatprep.subr.bf16.mxu1 %v8277_v5 }
 0x38d   :  { %7399 = vmatpush3.bf16.msra.mxu0 %v8262_v23 }
 0x38e   :  { %7400 = vmatprep.subr.bf16.mxu0 %v8263_v24 }
 0x38f   :  { %7421 = vmatpush3.bf16.msra.mxu1 %v8278_v43 }
 0x390   :  { %7422 = vmatprep.subr.bf16.mxu1 %v8279_v3 }
 0x391   :  { %7401 = vmatpush3.bf16.msra.mxu0 %v8264_v29 }
 0x392   :  { %7439 = vmatprep.subr.bf16.mxu0 %v8516_v18 }
 0x393   :  { %7423 = vmatpush3.bf16.msra.mxu1 %v8280_v45 }
 0x394   :  { %6384 = vmatmul.mubr.bf16.vlgmr.msra.gmra.mxu0 %v6091_v26 }
 0x395   :  { %7440 = vmatpush3.bf16.msra.mxu0 %v8281_v40  ;;  %7455 = vmatprep.mubr.msk.bf16.mxu0 %vm8517_vm0, %v8516_v18 }
 0x396   :  { %7441 = vmatprep.subr.bf16.mxu0 %v8516_v18 }
 0x399   :  { %7442 = vmatpush3.bf16.msra.mxu0 %v8282_v62 }
 0x39a   :  { %7443 = vmatprep.subr.bf16.mxu0 %v8516_v18 }
 0x39d   :  { %7444 = vmatpush3.bf16.msra.mxu0 %v8283_v13  ;;  %v7377_v13 = vld [vmem:[#allocation16] ss:$0 sm:$0xff] }
 0x39e   :  { %7445 = vmatprep.subr.bf16.mxu0 %v8516_v18 }
 0x3a1   :  { %7446 = vmatpush3.bf16.msra.mxu0 %v8284_v48 }
 0x3a2   :  { %7447 = vmatprep.subr.bf16.mxu0 %v8516_v18 }
 0x3b4   :  { %v5813_v33 = vpop.f32.mrf.mxu0 }
 0x3b5   :  { %v5814_v28 = vadd.f32 %v5813_v33, %v5773_v49  ;;  %v5854_v44 = vpop.f32.mrf.mxu1 }
 0x3b6   :  { %v5815_v27 = vpop.f32.mrf.mxu0 }
 0x3b7   :  { %v5855_v31 = vadd.f32 %v5854_v44, %v5814_v28  ;;  %v5816_v2 = vadd.f32 %v5815_v27, %v5775_v50  ;;  %v5856_v25 = vpop.f32.mrf.mxu1  ;;  %v8285_v27 = vld [vmem:[#allocation14 + $0x18] sm:$0xff]  }
 0x3b8   :  { %v5817_v17 = vpop.f32.mrf.mxu0  ;;  %7448 = vmatpush3.bf16.msra.mxu0 %v8285_v27 }
 0x3b9   :  { %v5857_v61 = vadd.f32 %v5856_v25, %v5816_v2  ;;  %v5858_v41 = vpop.f32.mrf.mxu1  ;;  %7449 = vmatprep.subr.bf16.mxu0 %v8516_v18  ;;  %v8287_v2 = vld [vmem:[#allocation14 + $0x8] sm:$0xff]   ;;  %v8288_v25 = vld [vmem:[#allocation14] sm:$0xff]   ;;  %v6431_v17 = vld [vmem:[#allocation13] sm:$0x1] }
 0x3ba   :  { %v5818_v55 = vpop.f32.mrf.mxu0 }
 0x3bb   :  { %v5859_v42 = vpop.f32.mrf.mxu1 }
 0x3f4   :  { %v5895_v9 = vpop.f32.mrf.mxu0 }
 0x3f5   :  { %v5896_v57 = vadd.f32 %v5895_v9, %v5855_v31  ;;  %v5936_v49 = vpop.f32.mrf.mxu1  ;;  %v8286_v31 = vld [vmem:[#allocation14 + $0x10] sm:$0xff]  }
 0x3f6   :  { %v5897_v46 = vpop.f32.mrf.mxu0  ;;  %7450 = vmatpush3.bf16.msra.mxu0 %v8286_v31 }
 0x3f7   :  { %v5937_v4 = vadd.f32 %v5936_v49, %v5896_v57  ;;  %v5938_v6 = vpop.f32.mrf.mxu1  ;;  %v5898_v52 = vadd.f32 %v5897_v46, %v5857_v61  ;;  %7451 = vmatprep.subr.bf16.mxu0 %v8516_v18  ;;  %v6434_v61 = vpack.i.b16 %v6431_v17, %v6431_v17 }
 0x3f8   :  { %v5899_v50 = vpop.f32.mrf.mxu0 }
 0x3f9   :  { %v5940_v12 = vpop.f32.mrf.mxu1  ;;  %v5939_v35 = vadd.f32 %v5938_v6, %v5898_v52  ;;  %v6439_v5 = vrot.slane %v6434_v61, %v8640_v32 }
 0x3fa   :  { %v5900_v47 = vpop.f32.mrf.mxu0  ;;  %7452 = vmatpush3.bf16.msra.mxu0 %v8287_v2 }
 0x3fb   :  { %v5941_v19 = vpop.f32.mrf.mxu1  ;;  %7453 = vmatprep.subr.bf16.mxu0 %v8516_v18 }
 0x3fe   :  { %7454 = vmatpush3.bf16.msra.mxu0 %v8288_v25 }
 0x434   :  { %v5977_v56 = vpop.f32.mrf.mxu0 }
 0x435   :  { %v5978_v59 = vadd.f32 %v5977_v56, %v5937_v4  ;;  %v6018_v7 = vpop.f32.mrf.mxu1 }
 0x436   :  { %v5979_v10 = vpop.f32.mrf.mxu0 }
 0x437   :  { %v6019_v11 = vadd.f32 %v6018_v7, %v5978_v59  ;;  %v5980_v16 = vadd.f32 %v5979_v10, %v5939_v35  ;;  %v6020_v20 = vpop.f32.mrf.mxu1 }
 0x438   :  { %v5981_v38 = vpop.f32.mrf.mxu0 }
 0x439   :  { %v6028_v60 = vpack.c.bf16 %v6019_v11, %v6019_v11  ;;  %v6021_v58 = vadd.f32 %v6020_v20, %v5980_v16  ;;  %v6022_v22 = vpop.f32.mrf.mxu1 }
 0x43a   :  { %v5982_v53 = vpop.f32.mrf.mxu0 }
 0x43b   :  { %v6085_v15 = vadd.bf16 %v6075_v14, %v6028_v60  ;;  %v6029_v34 = vpack.c.bf16 %v6021_v58, %v6021_v58  ;;  %v6023_v23 = vpop.f32.mrf.mxu1 }
 0x43d   :  { %v6086_v63 = vadd.bf16 %v6082_v1, %v6029_v34  ;;  %v6089_v24 = vmul.bf16 1009007652, %v6085_v15 }
 0x43f   :  { %v6090_v29 = vmul.bf16 1009007652, %v6086_v63  ;;  %v6093_v26 = vmax.bf16 %v6089_v24, %v6085_v15 }
 0x441   :  { %v6094_v37 = vmax.bf16 %v6090_v29, %v6086_v63 }
 0x443   :  { %6423 = vmatprep.mubr.bf16.mxu1 %v6094_v37 }
 0x444   :  { %6424 = vmatmul.mubr.bf16.vlgmr.msra.gmra.mxu1 %v6093_v26 }
 0x454   :  { %v7402_v33 = vpop.f32.mrf.mxu0 }
 0x456   :  { %v7403_v0 = vpop.f32.mrf.mxu0 }
 0x457   :  { %v7404_v28 = vadd.f32 %v7403_v0, %v7402_v33 }
 0x458   :  { %v7405_v44 = vpop.f32.mrf.mxu0 }
 0x45a   :  { %v7406_v30 = vpop.f32.mrf.mxu0 }
 0x504   :  { %v7424_v39 = vpop.f32.mrf.mxu1 }
 0x506   :  { %v7425_v41 = vpop.f32.mrf.mxu1 }
 0x507   :  { %v7426_v36 = vadd.f32 %v7425_v41, %v7424_v39 }
 0x508   :  { %v7427_v55 = vpop.f32.mrf.mxu1 }
 0x509   :  { %v6426_v42 = vadd.f32 %v7426_v36, %v7404_v28 }
 0x50a   :  { %v7428_v43 = vpop.f32.mrf.mxu1 }
 0x50b   :  { %v6432_v3 = vpack.c.bf16 %v6426_v42, %v6426_v42 }
 0x50d   :  { %v6440_v45 = vadd.bf16 %v6439_v5, %v6432_v3 }
 0x50f   :  { %v6441_v40 = vmul.bf16 1009007652, %v6440_v45 }
 0x511   :  { %v6442_v62 = vmax.bf16 %v6441_v40, %v6440_v45 }
 0x513   :  { %7456 = vmatmul.mubr.bf16.vlgmr.msra.gmra.mxu0 %v6442_v62 }
 0x5d3   :  { %v6548_v48 = vpop.f32.mrf.mxu0 }
 0x5d4   :  { %v6549_v18 = vadd.f32 %v7377_v13, %v6548_v48 }
 0x5d5   :  { %v7457_v9 = vpop.f32.mrf.mxu0 }
 0x5d6   :  { %6554 = vst [vmem:[#allocation17] sm:$0xff] %v6549_v18 }
 0x5d7   :  { %v6551_v57 = vpop.f32.mrf.mxu0 }
 0x5d8   :  { %8480 = shalt.err (!%p8477_p7)
}
 0x5d9   :  { %6564 = dma.vmem_to_hbm [thread:$0]  %s6562_s8, 128, %s8862_s9, [#allocation4]   ;;  %v7458_v32 = vpop.f32.mrf.mxu0 }
 0x5da   :  { %8499 = dma.done.wait [#allocation4], 128  }
 0x5db   :  { %8500 = vsyncadd [#allocation4], 4294967168 }
 0x5dc   :  { %6568 = vsyncpa [#allocation3], 1 }
 0x5dd   :  { %6569 = vsyncpa [#allocation6], 1 }
 0x5de   :  { %6570 = vsyncpa [#allocation9], 1 }
 0x5df   :  { %6571 = vsyncpa [#allocation12], 1 }
 0x5e0   :  { %6572 = vsyncpa [#allocation15], 1 }
 0x5e1   :  { %6573 = vsyncpa [#allocation4], 1 }

</bundles_post_ra>
